<compile_context>
chip_gen: v5e
topology: v5e:2x2
jax: 0.10.0
libtpu: 0.0.40
codegen_flags: <defaults>
</compile_context>

<pallas_src>
import jax
import jax.numpy as jnp
from jax.experimental import pallas as pl
from jax.experimental.pallas import tpu as pltpu


def _round_up(x, m):
    return ((x + m - 1) // m) * m


def _largest_divisor_tile(n, max_tile, step=128):
    """Largest multiple of `step` that divides n and is <= max_tile (None if none)."""
    best = None
    d = step
    while d <= min(max_tile, n):
        if n % d == 0:
            best = d
        d += step
    return best


def ffwd_kernel(x_ref, w1_ref, b1_ref, w2_ref, b2_ref, o_ref):
    """Fully weight-resident path (one grid axis over M)."""
    # x: (tm, C) bf16, w1: (C, H) bf16, b1: (1, H) f32, w2: (H, C) bf16, b2: (1, C) f32
    h = jnp.dot(x_ref[...], w1_ref[...], preferred_element_type=jnp.float32)
    h = jnp.maximum(h + b1_ref[...], 0.0)                    # bias + ReLU in f32
    o = jnp.dot(h.astype(w2_ref.dtype), w2_ref[...],
                preferred_element_type=jnp.float32)
    o_ref[...] = (o + b2_ref[...]).astype(o_ref.dtype)


def ffwd_kernel_htiled(x_ref, w1_ref, b1_ref, w2_ref, b2_ref, o_ref, acc_ref):
    """H-tiled fallback: weights streamed over the hidden axis, f32 accumulator."""
    j = pl.program_id(1)

    @pl.when(j == 0)
    def _():
        acc_ref[...] = jnp.zeros_like(acc_ref)

    h = jnp.dot(x_ref[...], w1_ref[...], preferred_element_type=jnp.float32)
    h = jnp.maximum(h + b1_ref[...], 0.0)
    acc_ref[...] += jnp.dot(h.astype(w2_ref.dtype), w2_ref[...],
                            preferred_element_type=jnp.float32)

    @pl.when(j == pl.num_programs(1) - 1)
    def _():
        o_ref[...] = (acc_ref[...] + b2_ref[...]).astype(o_ref.dtype)


def prepare_params(w1, b1, w2, b2):
    """One-time dtype/layout prep (do NOT call per forward step):
    bf16 weights for the MXU, f32 row-vector biases."""
    return (w1.astype(jnp.bfloat16),
            jnp.asarray(b1, jnp.float32).reshape(1, -1),
            w2.astype(jnp.bfloat16),
            jnp.asarray(b2, jnp.float32).reshape(1, -1))


def feedforward(x, w1, b1, w2, b2, *, tm=512, th=1024, out_dtype=jnp.bfloat16):
    """x: (B, T, C) -> (B, T, C) in out_dtype. Weights: w1 (C, 4C), w2 (4C, C)."""
    B, T, C = x.shape
    H = w1.shape[1]
    M = B * T

    # No-ops if params were already prepared via prepare_params().
    w1b = w1 if w1.dtype == jnp.bfloat16 else w1.astype(jnp.bfloat16)
    w2b = w2 if w2.dtype == jnp.bfloat16 else w2.astype(jnp.bfloat16)
    b1f = jnp.asarray(b1, jnp.float32).reshape(1, H)
    b2f = jnp.asarray(b2, jnp.float32).reshape(1, C)

    # TODO(synk): if upstream can hand us bf16 activations, drop this cast
    # (it is a separate full HBM pass over x at large M).
    x2 = x.reshape(M, C)
    if x2.dtype != jnp.bfloat16:
        x2 = x2.astype(jnp.bfloat16)

    out_bytes = jnp.dtype(out_dtype).itemsize

    # VMEM capacity of this chip generation (v5e/v6e: 128 MiB, v7x: 64 MiB).
    try:
        vmem_cap = int(pltpu.get_tpu_info().vmem_capacity_bytes)
    except Exception:
        vmem_cap = 64 * 1024 * 1024  # conservative fallback (v7x per-TC VMEM)

    # M tile: multiple of 16 (bf16 sublane packing); ensure >= 2 tiles for large
    # M so the "parallel" axis can shard across v7x's two TensorCores.
    tm_eff = min(tm, _round_up(M, 16))
    if M >= 512 and pl.cdiv(M, tm_eff) < 2:
        tm_eff = max(256, _round_up(pl.cdiv(M, 2), 256))
    grid_m = pl.cdiv(M, tm_eff)

    weight_bytes = 2 * C * H * 2  # w1 + w2 in bf16
    cost = pl.CostEstimate(
        flops=4 * M * C * H,                      # two GEMMs, 2*M*C*H each
        bytes_accessed=(M * C * 2                 # x (bf16)
                        + weight_bytes            # w1 + w2 (bf16)
                        + (H + C) * 4             # biases (f32)
                        + M * C * out_bytes),     # output
        transcendentals=0,
    )

    use_h_tiling = weight_bytes > int(0.4 * vmem_cap)
    th_eff = _largest_divisor_tile(H, th) if use_h_tiling else None

    if not use_h_tiling or th_eff is None:
        # ---------------- fully weight-resident path ----------------
        est = (2 * tm_eff * C * 2             # x tiles (bf16, double-buffered)
               + 2 * tm_eff * C * out_bytes   # out tiles (double-buffered)
               + weight_bytes                 # weights (single-buffered)
               + (H + C) * 4                  # biases
               + tm_eff * H * 4)              # f32 hidden intermediate
        vmem_limit = int(min(max(2 * est, 32 * 1024 * 1024),
                             int(0.75 * vmem_cap)))
        resident = dict(pipeline_mode=pl.Buffered(1))   # constant index_map
        out2 = pl.pallas_call(
            ffwd_kernel,
            out_shape=jax.ShapeDtypeStruct((M, C), out_dtype),
            grid=(grid_m,),
            in_specs=[
                pl.BlockSpec((tm_eff, C), lambda i: (i, 0)),          # x streams
                pl.BlockSpec((C, H), lambda i: (0, 0), **resident),   # w1 resident
                pl.BlockSpec((1, H), lambda i: (0, 0), **resident),   # b1 resident
                pl.BlockSpec((H, C), lambda i: (0, 0), **resident),   # w2 resident
                pl.BlockSpec((1, C), lambda i: (0, 0), **resident),   # b2 resident
            ],
            out_specs=pl.BlockSpec((tm_eff, C), lambda i: (i, 0)),
            compiler_params=pltpu.CompilerParams(
                dimension_semantics=("parallel",),
                vmem_limit_bytes=vmem_limit,
            ),
            cost_estimate=cost,
        )(x2, w1b, b1f, w2b, b2f)
    else:
        # ---------------- H-tiled fallback (e.g. big n_embd on v7x) ----------------
        grid_h = H // th_eff
        est = (2 * tm_eff * C * 2                    # x tiles
               + 2 * tm_eff * C * out_bytes          # out tiles
               + 2 * (C * th_eff + th_eff * C) * 2   # streamed w1/w2 tiles
               + 2 * (th_eff + C) * 4                # biases
               + tm_eff * th_eff * 4                 # f32 hidden slice
               + tm_eff * C * 4)                     # f32 accumulator scratch
        vmem_limit = int(min(max(2 * est, 32 * 1024 * 1024),
                             int(0.75 * vmem_cap)))
        out2 = pl.pallas_call(
            ffwd_kernel_htiled,
            out_shape=jax.ShapeDtypeStruct((M, C), out_dtype),
            grid=(grid_m, grid_h),
            in_specs=[
                pl.BlockSpec((tm_eff, C), lambda i, j: (i, 0)),
                pl.BlockSpec((C, th_eff), lambda i, j: (0, j)),
                pl.BlockSpec((1, th_eff), lambda i, j: (0, j)),
                pl.BlockSpec((th_eff, C), lambda i, j: (j, 0)),
                pl.BlockSpec((1, C), lambda i, j: (0, 0),
                             pipeline_mode=pl.Buffered(1)),
            ],
            out_specs=pl.BlockSpec((tm_eff, C), lambda i, j: (i, 0)),
            scratch_shapes=[pltpu.VMEM((tm_eff, C), jnp.float32)],
            compiler_params=pltpu.CompilerParams(
                dimension_semantics=("parallel", "arbitrary"),
                vmem_limit_bytes=vmem_limit,
            ),
            cost_estimate=cost,
        )(x2, w1b, b1f, w2b, b2f)

    return out2.reshape(B, T, C)


def feedforward_ref(x, w1, b1, w2, b2):
    """Reference with the same bf16-input / f32-accumulate precision policy."""
    xb = x.astype(jnp.bfloat16)
    w1b = w1.astype(jnp.bfloat16)
    w2b = w2.astype(jnp.bfloat16)
    h = jnp.dot(xb, w1b, preferred_element_type=jnp.float32) + b1.reshape(-1)
    h = jnp.maximum(h, 0.0)
    return jnp.dot(h.astype(jnp.bfloat16), w2b,
                   preferred_element_type=jnp.float32) + b2.reshape(-1)


if __name__ == "__main__":
    # Shapes consistent with the module: (B, block_size, n_embd) with
    # n_embd=384 (multiple of 128), hidden = 4 * n_embd = 1536.
    B, T, n_embd = 2, 8, 384
    hidden = 4 * n_embd

    key = jax.random.PRNGKey(0)
    kx, k1, k2, k3, k4 = jax.random.split(key, 5)

    x = jax.random.normal(kx, (B, T, n_embd), dtype=jnp.float32)

    # Deterministic synthetic parameters (nn.Linear shapes: W1 (C,4C), W2 (4C,C)).
    w1 = jax.random.normal(k1, (n_embd, hidden), dtype=jnp.float32) * 0.02
    b1 = jax.random.normal(k2, (1, hidden), dtype=jnp.float32) * 0.02
    w2 = jax.random.normal(k3, (hidden, n_embd), dtype=jnp.float32) * 0.02
    b2 = jax.random.normal(k4, (1, n_embd), dtype=jnp.float32) * 0.02

    # One-time param prep (hoisted out of the per-call path).
    w1b, b1f, w2b, b2f = prepare_params(w1, b1, w2, b2)

    out = feedforward(x, w1b, b1f, w2b, b2f)
    out = jax.block_until_ready(out)
    assert out.shape == (B, T, n_embd)
    out_f32 = out.astype(jnp.float32)

    # Check against a reference using the same mixed-precision policy
    # (tolerance includes the final bf16 output rounding).
    ref = feedforward_ref(x, w1, b1, w2, b2)
    assert jnp.allclose(out_f32, ref, atol=2e-2, rtol=2e-2), "mismatch vs bf16-policy reference"

    # Sanity check against the pure-f32 reference (looser tolerance for bf16 math).
    ref_f32 = jnp.maximum(x @ w1 + b1[0], 0.0) @ w2 + b2[0]
    assert jnp.allclose(out_f32, ref_f32, atol=5e-2, rtol=5e-2), "mismatch vs f32 reference"

    print("KERNEL_OK")
</pallas_src>

<mosaic_0001>
module attributes {stable_mosaic.version = 11 : i64} {
  func.func @ffwd_kernel(%arg0: i32, %arg1: memref<16x384xbf16, #tpu.memory_space<vmem>>, %arg2: memref<384x1536xbf16, #tpu.memory_space<vmem>>, %arg3: memref<1x1536xf32, #tpu.memory_space<vmem>>, %arg4: memref<1536x384xbf16, #tpu.memory_space<vmem>>, %arg5: memref<1x384xf32, #tpu.memory_space<vmem>>, %arg6: memref<16x384xbf16, #tpu.memory_space<vmem>>) attributes {dimension_semantics = [#tpu.dimension_semantics<parallel>], iteration_bounds = array<i64: 1>, scalar_prefetch = 0 : i64, scratch_operands = 0 : i64, tpu.core_type = #tpu.core_type<tc>, window_params = [{transform_indices = @transform_0, window_bounds = array<i64: 16, 384>}, {pipeline_mode = #tpu.pipeline_mode<synchronous>, transform_indices = @transform_1, window_bounds = array<i64: 384, 1536>}, {pipeline_mode = #tpu.pipeline_mode<synchronous>, transform_indices = @transform_2, window_bounds = array<i64: 1, 1536>}, {pipeline_mode = #tpu.pipeline_mode<synchronous>, transform_indices = @transform_3, window_bounds = array<i64: 1536, 384>}, {pipeline_mode = #tpu.pipeline_mode<synchronous>, transform_indices = @transform_4, window_bounds = array<i64: 1, 384>}, {transform_indices = @transform_5, window_bounds = array<i64: 16, 384>}]} {
    %c0 = arith.constant 0 : index
    %c0_0 = arith.constant 0 : index
    %0 = vector.load %arg1[%c0, %c0_0] : memref<16x384xbf16, #tpu.memory_space<vmem>>, vector<16x384xbf16>
    %c0_1 = arith.constant 0 : index
    %c0_2 = arith.constant 0 : index
    %1 = vector.load %arg2[%c0_1, %c0_2] : memref<384x1536xbf16, #tpu.memory_space<vmem>>, vector<384x1536xbf16>
    %cst = arith.constant dense<0.000000e+00> : vector<16x1536xf32>
    %2 = tpu.matmul %0, %1, %cst {dimension_numbers = #tpu.dot_dimension_numbers<[1], [0], [0], [1], [0, 0, 1, 1], [], []>} : vector<16x384xbf16>, vector<384x1536xbf16>, vector<16x1536xf32> -> vector<16x1536xf32>
    %c0_3 = arith.constant 0 : index
    %c0_4 = arith.constant 0 : index
    %3 = vector.load %arg3[%c0_3, %c0_4] : memref<1x1536xf32, #tpu.memory_space<vmem>>, vector<1x1536xf32>
    %4 = vector.broadcast %3 : vector<1x1536xf32> to vector<16x1536xf32>
    %5 = arith.addf %2, %4 : vector<16x1536xf32>
    %cst_5 = arith.constant 0.000000e+00 : f32
    %6 = vector.broadcast %cst_5 : f32 to vector<16x1536xf32>
    %7 = arith.maximumf %5, %6 : vector<16x1536xf32>
    %8 = arith.truncf %7 : vector<16x1536xf32> to vector<16x1536xbf16>
    %c0_6 = arith.constant 0 : index
    %c0_7 = arith.constant 0 : index
    %9 = vector.load %arg4[%c0_6, %c0_7] : memref<1536x384xbf16, #tpu.memory_space<vmem>>, vector<1536x384xbf16>
    %cst_8 = arith.constant dense<0.000000e+00> : vector<16x384xf32>
    %10 = tpu.matmul %8, %9, %cst_8 {dimension_numbers = #tpu.dot_dimension_numbers<[1], [0], [0], [1], [0, 0, 1, 1], [], []>} : vector<16x1536xbf16>, vector<1536x384xbf16>, vector<16x384xf32> -> vector<16x384xf32>
    %c0_9 = arith.constant 0 : index
    %c0_10 = arith.constant 0 : index
    %11 = vector.load %arg5[%c0_9, %c0_10] : memref<1x384xf32, #tpu.memory_space<vmem>>, vector<1x384xf32>
    %12 = vector.broadcast %11 : vector<1x384xf32> to vector<16x384xf32>
    %13 = arith.addf %10, %12 : vector<16x384xf32>
    %14 = arith.truncf %13 : vector<16x384xf32> to vector<16x384xbf16>
    %c0_11 = arith.constant 0 : index
    %c0_12 = arith.constant 0 : index
    %15 = vector.load %arg6[%c0_11, %c0_12] : memref<16x384xbf16, #tpu.memory_space<vmem>>, vector<16x384xbf16>
    tpu.vector_store %arg6[%c0_11, %c0_12], %14 {strides = array<i32>} : memref<16x384xbf16, #tpu.memory_space<vmem>>, vector<16x384xbf16>,
    return
  }
  func.func @transform_0(%arg0: i32) -> (i32, i32) {
    %c0_i32 = arith.constant 0 : i32
    %c0_i32_0 = arith.constant 0 : i32
    return %arg0, %c0_i32 : i32, i32
  }
  func.func @transform_1(%arg0: i32) -> (i32, i32) {
    %c0_i32 = arith.constant 0 : i32
    %c0_i32_0 = arith.constant 0 : i32
    %c0_i32_1 = arith.constant 0 : i32
    return %c0_i32, %c0_i32_0 : i32, i32
  }
  func.func @transform_2(%arg0: i32) -> (i32, i32) {
    %c0_i32 = arith.constant 0 : i32
    %c0_i32_0 = arith.constant 0 : i32
    %c0_i32_1 = arith.constant 0 : i32
    return %c0_i32, %c0_i32_0 : i32, i32
  }
  func.func @transform_3(%arg0: i32) -> (i32, i32) {
    %c0_i32 = arith.constant 0 : i32
    %c0_i32_0 = arith.constant 0 : i32
    %c0_i32_1 = arith.constant 0 : i32
    return %c0_i32, %c0_i32_0 : i32, i32
  }
  func.func @transform_4(%arg0: i32) -> (i32, i32) {
    %c0_i32 = arith.constant 0 : i32
    %c0_i32_0 = arith.constant 0 : i32
    %c0_i32_1 = arith.constant 0 : i32
    return %c0_i32, %c0_i32_0 : i32, i32
  }
  func.func @transform_5(%arg0: i32) -> (i32, i32) {
    %c0_i32 = arith.constant 0 : i32
    %c0_i32_0 = arith.constant 0 : i32
    return %arg0, %c0_i32 : i32, i32
  }
}

</mosaic_0001>

<bundles_post_ra>
// kernel: tpu_custom_call.1
= control target key start
LH: loop header
LB: loop body
LE: loop exit
PB: predicated region body
PF: predicated region fallthrough
CT: control target
= control target key end

     0   :  { %10 = vsyncpa [#allocation3], 0  ;;  %s8319_s0 = inlined_call_operand.hbm [shape: bf16[16,384], index: 0, kind: input, shape index: {}]   ;;  %s8320_s1 = inlined_call_operand.hbm [shape: bf16[384,1536], index: 1, kind: input, shape index: {}]   ;;  %s8321_s2 = inlined_call_operand.hbm [shape: f32[1,1536], index: 2, kind: input, shape index: {}]   ;;  %s8322_s3 = inlined_call_operand.hbm [shape: bf16[1536,384], index: 3, kind: input, shape index: {}]   ;;  %s8323_s4 = inlined_call_operand.hbm [shape: f32[1,384], index: 4, kind: input, shape index: {}]   ;;  %s8324_s5 = inlined_call_operand.hbm [shape: bf16[16,384], index: 5, kind: output, shape index: {}]  }
   0x1   :  { %11 = vsyncpa [#allocation6], 0 }
   0x2   :  { %12 = vsyncpa [#allocation9], 0  ;;  %s31_s20 = sshll.u32 %s8320_s1, 4  ;;  %s32_s20 = int_to_ptr.hbm [resolvable:$true] %s31_s20 }
   0x3   :  { %13 = vsyncpa [#allocation4], 0  ;;  %s7930_s21 = smov [#allocation5]   ;;  %s7931_s23 = smov 768  }
   0x4   :  { %s33_s22 = sshll.u32 %s7930_s21, 4  ;;  %s7932_s24 = smov 48   ;;  %s34_s22 = int_to_ptr.vmem [resolvable:$true] %s33_s22 }
   0x5   :  { %39 = dma.hbm_to_vmem [thread:$0]  %s32_s20, 36864, %s34_s22, [#allocation6], %s7931_s23, %s7931_s23, %s7932_s24  }
   0x6   :  { %s55_s27 = sshll.u32 %s8322_s3, 4  ;;  %s7933_s28 = smov [#allocation8]   ;;  %s56_s27 = int_to_ptr.hbm [resolvable:$true] %s55_s27 }
   0x7   :  { %s57_s29 = sshll.u32 %s7933_s28, 4  ;;  %s18_s7 = sshll.u32 %s8319_s0, 4  ;;  %s58_s29 = int_to_ptr.vmem [resolvable:$true] %s57_s29  ;;  %s19_s7 = int_to_ptr.hbm [resolvable:$true] %s18_s7 }
   0x8   :  { %s7934_s1 = smov 192   ;;  %s7935_s8 = smov 12  }
   0x9   :  { %63 = dma.hbm_to_vmem [thread:$0]  %s56_s27, 36864, %s58_s29, [#allocation9], %s7934_s1, %s7934_s1, %s7935_s8  }
   0xa   :  { %s45_s11 = sshll.u32 %s8321_s2, 4  ;;  %s7936_s3 = smov [#allocation2]   ;;  %s46_s11 = int_to_ptr.hbm [resolvable:$true] %s45_s11 }
   0xb   :  { %s20_s12 = sshll.u32 %s7936_s3, 4  ;;  %s7937_s0 = smov [#allocation7]   ;;  %s21_s12 = int_to_ptr.vmem [resolvable:$true] %s20_s12 }
   0xc   :  { %26 = dma.hbm_to_vmem [thread:$0]  %s19_s7, 384, %s21_s12, [#allocation3], %s7934_s1, %s7934_s1, %s7935_s8  }
   0xd   :  { %s47_s13 = sshll.u32 %s7937_s0, 4  ;;  %s69_s16 = sshll.u32 %s8323_s4, 4  ;;  %s48_s13 = int_to_ptr.vmem [resolvable:$true] %s47_s13  ;;  %s70_s16 = int_to_ptr.hbm [resolvable:$true] %s69_s16 }
   0xe   :  { %50 = dma.hbm_to_vmem [thread:$0]  %s46_s11, 192, %s48_s13, [#allocation6]  }
   0xf   :  { %s7938_s17 = smov [#allocation10]  }
  0x10   :  { %s71_s18 = sshll.u32 %s7938_s17, 4  ;;  %s72_s18 = int_to_ptr.vmem [resolvable:$true] %s71_s18 }
  0x11   :  { %74 = dma.hbm_to_vmem [thread:$0]  %s70_s16, 48, %s72_s18, [#allocation9]  }
  0x12   :  { %7922 = dma.done.wait [#allocation3], 384  }
  0x13   :  { %7923 = vsyncadd [#allocation3], 4294966912 }
  0x14   :  { %7924 = dma.done.wait [#allocation6], 37056  }
  0x15   :  { %7925 = vsyncadd [#allocation6], 4294930240 }
  0x16   :  { %7926 = dma.done.wait [#allocation9], 36912  }
  0x17   :  { %7927 = vsyncadd [#allocation9], 4294930384  ;;  %v5222_v0 = vld [vmem:[#allocation5 + $0x2a0] sm:$0xf]  ;;  %v7281_v1 = vld [vmem:[#allocation5 + $0x2cc] sm:$0xf0] }
  0x18   :  { %v5606_v2 = vld [vmem:[#allocation5 + $0x5a0] sm:$0xf]  ;;  %v5223_v3 = vor.u32 %v7281_v1, %v5222_v0  ;;  %v7377_v4 = vld [vmem:[#allocation5 + $0x5cc] sm:$0xf0]  ;;  %v7275_v9 = vld [vmem:[#allocation5 + $0x2a4] sm:$0xf] }
  0x19   :  { %v5990_v5 = vld [vmem:[#allocation5 + $0x8a0] sm:$0xf]  ;;  %v7473_v6 = vld [vmem:[#allocation5 + $0x8cc] sm:$0xf0]  ;;  %v5607_v7 = vor.u32 %v7377_v4, %v5606_v2  ;;  %v5224_v10 = vld [vmem:[#allocation5 + $0x2d0] sm:$0xf0] }
  0x1a   :  { %v5991_v8 = vor.u32 %v7473_v6, %v5990_v5  ;;  %v5174_v11 = vld [vmem:[#allocation5 + $0x240] sm:$0xf]  ;;  %1871 = vmatpush.bf16.msra.mxu0 %v5223_v3  ;;  %v5227_v12 = vor.u32 %v7275_v9, %v5224_v10  ;;  %v7269_v13 = vld [vmem:[#allocation5 + $0x26c] sm:$0xf0]  ;;  %v7263_v20 = vld [vmem:[#allocation5 + $0x244] sm:$0xf] }
  0x1b   :  { %v5558_v14 = vld [vmem:[#allocation5 + $0x540] sm:$0xf]  ;;  %v7365_v15 = vld [vmem:[#allocation5 + $0x56c] sm:$0xf0]  ;;  %1885 = vmatpush.bf16.msra.mxu1 %v5607_v7  ;;  %v5175_v16 = vor.u32 %v7269_v13, %v5174_v11  ;;  %v5176_v22 = vld [vmem:[#allocation5 + $0x270] sm:$0xf0] }
  0x1c   :  { %1899 = vmatpush.bf16.msra.mxu2 %v5991_v8  ;;  %v5559_v17 = vor.u32 %v7365_v15, %v5558_v14  ;;  %v5942_v18 = vld [vmem:[#allocation5 + $0x840] sm:$0xf]  ;;  %v7461_v19 = vld [vmem:[#allocation5 + $0x86c] sm:$0xf0]  ;;  %1913 = vmatpush.bf16.msra.mxu3 %v5227_v12  ;;  %v5179_v25 = vor.u32 %v7263_v20, %v5176_v22  ;;  %v7251_v31 = vld [vmem:[#allocation5 + $0x1e4] sm:$0xf] }
  0x1d   :  { %v5943_v21 = vor.u32 %v7461_v19, %v5942_v18  ;;  %v5126_v23 = vld [vmem:[#allocation5 + $0x1e0] sm:$0xf]  ;;  %v7257_v24 = vld [vmem:[#allocation5 + $0x20c] sm:$0xf0]  ;;  %v5128_v32 = vld [vmem:[#allocation5 + $0x210] sm:$0xf0] }
  0x1e   :  { %v5510_v26 = vld [vmem:[#allocation5 + $0x4e0] sm:$0xf]  ;;  %v7353_v27 = vld [vmem:[#allocation5 + $0x50c] sm:$0xf0]  ;;  %1872 = vmatpush.bf16.msra.mxu0 %v5175_v16  ;;  %v5127_v29 = vor.u32 %v7257_v24, %v5126_v23  ;;  %v5131_v38 = vor.u32 %v7251_v31, %v5128_v32  ;;  %v7239_v42 = vld [vmem:[#allocation5 + $0x184] sm:$0xf] }
  0x1f   :  { %v5894_v28 = vld [vmem:[#allocation5 + $0x7e0] sm:$0xf]  ;;  %v7449_v30 = vld [vmem:[#allocation5 + $0x80c] sm:$0xf0]  ;;  %1886 = vmatpush.bf16.msra.mxu1 %v5559_v17  ;;  %v5511_v33 = vor.u32 %v7353_v27, %v5510_v26  ;;  %v5080_v43 = vld [vmem:[#allocation5 + $0x1b0] sm:$0xf0] }
  0x20   :  { %1900 = vmatpush.bf16.msra.mxu2 %v5943_v21  ;;  %v5895_v34 = vor.u32 %v7449_v30, %v5894_v28  ;;  %v5078_v35 = vld [vmem:[#allocation5 + $0x180] sm:$0xf]  ;;  %v7245_v36 = vld [vmem:[#allocation5 + $0x1ac] sm:$0xf0]  ;;  %1914 = vmatpush.bf16.msra.mxu3 %v5179_v25  ;;  %v5083_v50 = vor.u32 %v7239_v42, %v5080_v43  ;;  %v7227_v54 = vld [vmem:[#allocation5 + $0x124] sm:$0xf] }
  0x21   :  { %v5462_v37 = vld [vmem:[#allocation5 + $0x480] sm:$0xf]  ;;  %v7341_v39 = vld [vmem:[#allocation5 + $0x4ac] sm:$0xf0]  ;;  %v5079_v44 = vor.u32 %v7245_v36, %v5078_v35  ;;  %v5032_v55 = vld [vmem:[#allocation5 + $0x150] sm:$0xf0] }
  0x22   :  { %v5846_v40 = vld [vmem:[#allocation5 + $0x780] sm:$0xf]  ;;  %v7437_v41 = vld [vmem:[#allocation5 + $0x7ac] sm:$0xf0]  ;;  %1873 = vmatpush.bf16.msra.mxu0 %v5127_v29  ;;  %v5463_v45 = vor.u32 %v7341_v39, %v5462_v37  ;;  %v5035_v62 = vor.u32 %v7227_v54, %v5032_v55  ;;  %v7215_v2 = vld [vmem:[#allocation5 + $0xc4] sm:$0xf] }
  0x23   :  { %1887 = vmatpush.bf16.msra.mxu1 %v5511_v33  ;;  %v5847_v46 = vor.u32 %v7437_v41, %v5846_v40  ;;  %v5030_v47 = vld [vmem:[#allocation5 + $0x120] sm:$0xf]  ;;  %v7233_v48 = vld [vmem:[#allocation5 + $0x14c] sm:$0xf0]  ;;  %v4984_v3 = vld [vmem:[#allocation5 + $0xf0] sm:$0xf0] }
  0x24   :  { %1901 = vmatpush.bf16.msra.mxu2 %v5895_v34  ;;  %v5414_v49 = vld [vmem:[#allocation5 + $0x420] sm:$0xf]  ;;  %1915 = vmatpush.bf16.msra.mxu3 %v5131_v38  ;;  %v7329_v51 = vld [vmem:[#allocation5 + $0x44c] sm:$0xf0]  ;;  %v5031_v56 = vor.u32 %v7233_v48, %v5030_v47  ;;  %v4987_v10 = vor.u32 %v7215_v2, %v4984_v3  ;;  %v7203_v14 = vld [vmem:[#allocation5 + $0x64] sm:$0xf] }
  0x25   :  { %v5798_v52 = vld [vmem:[#allocation5 + $0x720] sm:$0xf]  ;;  %v7425_v53 = vld [vmem:[#allocation5 + $0x74c] sm:$0xf0]  ;;  %v5415_v57 = vor.u32 %v7329_v51, %v5414_v49  ;;  %v4936_v15 = vld [vmem:[#allocation5 + $0x90] sm:$0xf0] }
  0x26   :  { %1874 = vmatpush.bf16.msra.mxu0 %v5079_v44  ;;  %v5799_v58 = vor.u32 %v7425_v53, %v5798_v52  ;;  %v4982_v59 = vld [vmem:[#allocation5 + $0xc0] sm:$0xf]  ;;  %v7221_v60 = vld [vmem:[#allocation5 + $0xec] sm:$0xf0]  ;;  %v4939_v24 = vor.u32 %v7203_v14, %v4936_v15  ;;  %v7191_v26 = vld [vmem:[#allocation5 + $0x4] sm:$0xf] }
  0x27   :  { %1888 = vmatpush.bf16.msra.mxu1 %v5463_v45  ;;  %v5366_v61 = vld [vmem:[#allocation5 + $0x3c0] sm:$0xf]  ;;  %v7317_v63 = vld [vmem:[#allocation5 + $0x3ec] sm:$0xf0]  ;;  %v4983_v4 = vor.u32 %v7221_v60, %v4982_v59  ;;  %v4888_v27 = vld [vmem:[#allocation5 + $0x30] sm:$0xf0] }
  0x28   :  { %1902 = vmatpush.bf16.msra.mxu2 %v5847_v46  ;;  %1916 = vmatpush.bf16.msra.mxu3 %v5083_v50  ;;  %v5750_v0 = vld [vmem:[#allocation5 + $0x6c0] sm:$0xf]  ;;  %v7413_v1 = vld [vmem:[#allocation5 + $0x6ec] sm:$0xf0]  ;;  %v5367_v5 = vor.u32 %v7317_v63, %v5366_v61  ;;  %v7371_v28 = vld [vmem:[#allocation5 + $0x5a4] sm:$0xf]  ;;  %v4891_v39 = vor.u32 %v7191_v26, %v4888_v27 }
  0x29   :  { %v5751_v6 = vor.u32 %v7413_v1, %v5750_v0  ;;  %v4934_v7 = vld [vmem:[#allocation5 + $0x60] sm:$0xf]  ;;  %v7209_v8 = vld [vmem:[#allocation5 + $0x8c] sm:$0xf0]  ;;  %v5608_v29 = vld [vmem:[#allocation5 + $0x5d0] sm:$0xf0] }
  0x2a   :  { %1875 = vmatpush.bf16.msra.mxu0 %v5031_v56  ;;  %v5318_v9 = vld [vmem:[#allocation5 + $0x360] sm:$0xf]  ;;  %v7305_v11 = vld [vmem:[#allocation5 + $0x38c] sm:$0xf0]  ;;  %v4935_v16 = vor.u32 %v7209_v8, %v4934_v7  ;;  %v7467_v30 = vld [vmem:[#allocation5 + $0x8a4] sm:$0xf]  ;;  %v5611_v40 = vor.u32 %v7371_v28, %v5608_v29 }
  0x2b   :  { %1889 = vmatpush.bf16.msra.mxu1 %v5415_v57  ;;  %v5702_v12 = vld [vmem:[#allocation5 + $0x660] sm:$0xf]  ;;  %v7401_v13 = vld [vmem:[#allocation5 + $0x68c] sm:$0xf0]  ;;  %v5319_v19 = vor.u32 %v7305_v11, %v5318_v9  ;;  %v5992_v32 = vld [vmem:[#allocation5 + $0x8d0] sm:$0xf0] }
  0x2c   :  { %1903 = vmatpush.bf16.msra.mxu2 %v5799_v58  ;;  %1917 = vmatpush.bf16.msra.mxu3 %v5035_v62  ;;  %v4886_v17 = vld [vmem:[#allocation5] sm:$0xf]  ;;  %v7197_v18 = vld [vmem:[#allocation5 + $0x2c] sm:$0xf0]  ;;  %v5703_v20 = vor.u32 %v7401_v13, %v5702_v12  ;;  %v5230_v33 = vld [vmem:[#allocation5 + $0x2a8] sm:$0xf]  ;;  %v5995_v42 = vor.u32 %v7467_v30, %v5992_v32 }
  0x2d   :  { %v5270_v21 = vld [vmem:[#allocation5 + $0x300] sm:$0xf]  ;;  %v7293_v22 = vld [vmem:[#allocation5 + $0x32c] sm:$0xf0]  ;;  %v4887_v31 = vor.u32 %v7197_v18, %v4886_v17  ;;  %v7282_v34 = vld [vmem:[#allocation5 + $0x2d4] sm:$0xf0] }
  0x2e   :  { %1876 = vmatpush.bf16.msra.mxu0 %v4983_v4  ;;  %v5654_v23 = vld [vmem:[#allocation5 + $0x600] sm:$0xf]  ;;  %v7389_v25 = vld [vmem:[#allocation5 + $0x62c] sm:$0xf0]  ;;  %v5271_v35 = vor.u32 %v7293_v22, %v5270_v21  ;;  %v5614_v37 = vld [vmem:[#allocation5 + $0x5a8] sm:$0xf]  ;;  %v5231_v43 = vor.u32 %v7282_v34, %v5230_v33 }
  0x2f   :  { %1890 = vmatpush.bf16.msra.mxu1 %v5367_v5  ;;  %v5655_v36 = vor.u32 %v7389_v25, %v5654_v23  ;;  %v7378_v38 = vld [vmem:[#allocation5 + $0x5d4] sm:$0xf0]  ;;  %v7359_v41 = vld [vmem:[#allocation5 + $0x544] sm:$0xf]  ;;  %v5560_v44 = vld [vmem:[#allocation5 + $0x570] sm:$0xf0] }
  0x30   :  { %1904 = vmatpush.bf16.msra.mxu2 %v5751_v6  ;;  %1918 = vmatpush.bf16.msra.mxu3 %v4987_v10  ;;  %v7455_v45 = vld [vmem:[#allocation5 + $0x844] sm:$0xf]  ;;  %v5944_v46 = vld [vmem:[#allocation5 + $0x870] sm:$0xf0]  ;;  %v5615_v47 = vor.u32 %v7378_v38, %v5614_v37  ;;  %v5182_v48 = vld [vmem:[#allocation5 + $0x248] sm:$0xf]  ;;  %v5563_v54 = vor.u32 %v7359_v41, %v5560_v44 }
  0x31   :  { %v7270_v49 = vld [vmem:[#allocation5 + $0x274] sm:$0xf0]  ;;  %v5566_v50 = vld [vmem:[#allocation5 + $0x548] sm:$0xf]  ;;  %v7189_v53 = vld [vmem:[#allocation2 + $0x8] sm:$0xf0]  ;;  %v5947_v58 = vor.u32 %v7455_v45, %v5944_v46 }
  0x32   :  { %1877 = vmatpush.bf16.msra.mxu0 %v4935_v16  ;;  %v7366_v51 = vld [vmem:[#allocation5 + $0x574] sm:$0xf0]  ;;  %v4874_v52 = vld [vmem:[#allocation2] sm:$0xf]  ;;  %v7347_v55 = vld [vmem:[#allocation5 + $0x4e4] sm:$0xf]  ;;  %v5183_v59 = vor.u32 %v7270_v49, %v5182_v48 }
  0x33   :  { %1891 = vmatpush.bf16.msra.mxu1 %v5319_v19  ;;  %v5512_v56 = vld [vmem:[#allocation5 + $0x510] sm:$0xf0]  ;;  %v7991_v57 = vor.u32 %v7189_v53, %v4874_v52  ;;  %v7443_v60 = vld [vmem:[#allocation5 + $0x7e4] sm:$0xf]  ;;  %v5134_v62 = vld [vmem:[#allocation5 + $0x1e8] sm:$0xf]  ;;  %v5567_v63 = vor.u32 %v7366_v51, %v5566_v50 }
  0x34   :  { %1905 = vmatpush.bf16.msra.mxu2 %v5703_v20  ;;  %1919 = vmatpush.bf16.msra.mxu3 %v4939_v24  ;;  %v5896_v61 = vld [vmem:[#allocation5 + $0x810] sm:$0xf0]  ;;  %v7258_v0 = vld [vmem:[#allocation5 + $0x214] sm:$0xf0]  ;;  %v7188_v1 = vld [vmem:[#allocation2 + $0x4] sm:$0xf]  ;;  %v5515_v6 = vor.u32 %v7347_v55, %v5512_v56 }
  0x35   :  { %v4876_v2 = vld [vmem:[#allocation2 + $0xc] sm:$0xf0]  ;;  %v5518_v3 = vld [vmem:[#allocation5 + $0x4e8] sm:$0xf]  ;;  %v7335_v7 = vld [vmem:[#allocation5 + $0x484] sm:$0xf]  ;;  %v5899_v9 = vor.u32 %v7443_v60, %v5896_v61  ;;  %v5135_v10 = vor.u32 %v7258_v0, %v5134_v62 }
  0x36   :  { %1878 = vmatpush.bf16.msra.mxu0 %v4887_v31  ;;  %v7354_v4 = vld [vmem:[#allocation5 + $0x514] sm:$0xf0]  ;;  %v7994_v5 = vor.u32 %v7188_v1, %v4876_v2  ;;  %v5464_v8 = vld [vmem:[#allocation5 + $0x4b0] sm:$0xf0]  ;;  %v7431_v11 = vld [vmem:[#allocation5 + $0x784] sm:$0xf] }
  0x37   :  { %1892 = vmatpush.bf16.msra.mxu1 %v5271_v35  ;;  %v5848_v12 = vld [vmem:[#allocation5 + $0x7b0] sm:$0xf0]  ;;  %v4882_v13 = vld [vmem:[#allocation2 + $0x8] sm:$0xf]  ;;  %v5519_v14 = vor.u32 %v7354_v4, %v5518_v3  ;;  %v5086_v15 = vld [vmem:[#allocation5 + $0x188] sm:$0xf]  ;;  %v5467_v21 = vor.u32 %v7335_v7, %v5464_v8 }
  0x38   :  { %1906 = vmatpush.bf16.msra.mxu2 %v5655_v36  ;;  %1920 = vmatpush.bf16.msra.mxu3 %v4891_v39  ;;  %v7246_v16 = vld [vmem:[#allocation5 + $0x1b4] sm:$0xf0]  ;;  %v7190_v17 = vld [vmem:[#allocation2 + $0x10] sm:$0xf0]  ;;  %v5470_v18 = vld [vmem:[#allocation5 + $0x488] sm:$0xf]  ;;  %v5851_v22 = vor.u32 %v7431_v11, %v5848_v12 }
  0x39   :  { %1879 = vmatmul.bf16.vlgmr.msra.gmra.mxu0 %v7991_v57  ;;  %v7342_v19 = vld [vmem:[#allocation5 + $0x4b4] sm:$0xf0]  ;;  %v7998_v20 = vor.u32 %v7190_v17, %v4882_v13  ;;  %v5087_v23 = vor.u32 %v7246_v16, %v5086_v15  ;;  %v7323_v24 = vld [vmem:[#allocation5 + $0x424] sm:$0xf]  ;;  %v5416_v25 = vld [vmem:[#allocation5 + $0x450] sm:$0xf0] }
  0x3a   :  { %1927 = vmatpush.bf16.msrb.mxu0 %v5611_v40  ;;  %1893 = vmatmul.bf16.vlgmr.msra.gmra.mxu1 %v7994_v5  ;;  %v7419_v26 = vld [vmem:[#allocation5 + $0x724] sm:$0xf]  ;;  %v5471_v27 = vor.u32 %v7342_v19, %v5470_v18  ;;  %v5800_v28 = vld [vmem:[#allocation5 + $0x750] sm:$0xf0]  ;;  %v5038_v29 = vld [vmem:[#allocation5 + $0x128] sm:$0xf]  ;;  %v5419_v33 = vor.u32 %v7323_v24, %v5416_v25 }
  0x3b   :  { %1941 = vmatpush.bf16.msrb.mxu1 %v5995_v42  ;;  %1921 = vmatmul.bf16.vlgmr.msra.gmra.mxu3 %v7991_v57  ;;  %v7234_v30 = vld [vmem:[#allocation5 + $0x154] sm:$0xf0]  ;;  %v5422_v31 = vld [vmem:[#allocation5 + $0x428] sm:$0xf]  ;;  %v5803_v34 = vor.u32 %v7419_v26, %v5800_v28  ;;  %v7311_v36 = vld [vmem:[#allocation5 + $0x3c4] sm:$0xf] }
  0x3c   :  { %1955 = vmatpush.bf16.msrb.mxu2 %v5231_v43  ;;  %1969 = vmatpush.bf16.msrb.mxu3 %v5615_v47  ;;  %v7330_v32 = vld [vmem:[#allocation5 + $0x454] sm:$0xf0]  ;;  %v5039_v35 = vor.u32 %v7234_v30, %v5038_v29  ;;  %v5368_v37 = vld [vmem:[#allocation5 + $0x3f0] sm:$0xf0]  ;;  %v7407_v38 = vld [vmem:[#allocation5 + $0x6c4] sm:$0xf] }
  0x3d   :  { %1907 = vmatmul.bf16.vlgmr.msra.gmra.mxu2 %v7998_v20  ;;  %v5423_v39 = vor.u32 %v7330_v32, %v5422_v31  ;;  %v5752_v40 = vld [vmem:[#allocation5 + $0x6f0] sm:$0xf0]  ;;  %v4990_v41 = vld [vmem:[#allocation5 + $0xc8] sm:$0xf]  ;;  %v7222_v42 = vld [vmem:[#allocation5 + $0xf4] sm:$0xf0]  ;;  %v5371_v45 = vor.u32 %v7311_v36, %v5368_v37 }
  0x3e   :  { %1928 = vmatpush.bf16.msrb.mxu0 %v5563_v54  ;;  %v5374_v43 = vld [vmem:[#allocation5 + $0x3c8] sm:$0xf]  ;;  %v7318_v44 = vld [vmem:[#allocation5 + $0x3f4] sm:$0xf0]  ;;  %v5755_v46 = vor.u32 %v7407_v38, %v5752_v40  ;;  %v4991_v47 = vor.u32 %v7222_v42, %v4990_v41  ;;  %v7299_v48 = vld [vmem:[#allocation5 + $0x364] sm:$0xf] }
  0x3f   :  { %1942 = vmatpush.bf16.msrb.mxu1 %v5947_v58  ;;  %v5320_v49 = vld [vmem:[#allocation5 + $0x390] sm:$0xf0]  ;;  %v7395_v50 = vld [vmem:[#allocation5 + $0x664] sm:$0xf]  ;;  %v5375_v51 = vor.u32 %v7318_v44, %v5374_v43  ;;  %v4942_v53 = vld [vmem:[#allocation5 + $0x68] sm:$0xf] }
  0x40   :  { %1956 = vmatpush.bf16.msrb.mxu2 %v5183_v59  ;;  %1970 = vmatpush.bf16.msrb.mxu3 %v5567_v63  ;;  %v5704_v52 = vld [vmem:[#allocation5 + $0x690] sm:$0xf0]  ;;  %v7210_v54 = vld [vmem:[#allocation5 + $0x94] sm:$0xf0]  ;;  %v5326_v55 = vld [vmem:[#allocation5 + $0x368] sm:$0xf]  ;;  %v5323_v58 = vor.u32 %v7299_v48, %v5320_v49 }
  0x41   :  { %v7306_v56 = vld [vmem:[#allocation5 + $0x394] sm:$0xf0]  ;;  %v7287_v59 = vld [vmem:[#allocation5 + $0x304] sm:$0xf]  ;;  %v5272_v60 = vld [vmem:[#allocation5 + $0x330] sm:$0xf0]  ;;  %v5707_v61 = vor.u32 %v7395_v50, %v5704_v52  ;;  %v4943_v62 = vor.u32 %v7210_v54, %v4942_v53 }
  0x42   :  { %1929 = vmatpush.bf16.msrb.mxu0 %v5515_v6  ;;  %v7383_v63 = vld [vmem:[#allocation5 + $0x604] sm:$0xf]  ;;  %v5656_v0 = vld [vmem:[#allocation5 + $0x630] sm:$0xf0]  ;;  %v4894_v1 = vld [vmem:[#allocation5 + $0x8] sm:$0xf]  ;;  %v5327_v2 = vor.u32 %v7306_v56, %v5326_v55 }
  0x43   :  { %1943 = vmatpush.bf16.msrb.mxu1 %v5899_v9  ;;  %v7198_v3 = vld [vmem:[#allocation5 + $0x34] sm:$0xf0]  ;;  %v5278_v4 = vld [vmem:[#allocation5 + $0x308] sm:$0xf]  ;;  %v7276_v9 = vld [vmem:[#allocation5 + $0x2ac] sm:$0xf] }
  0x44   :  { %1957 = vmatpush.bf16.msrb.mxu2 %v5135_v10  ;;  %1971 = vmatpush.bf16.msrb.mxu3 %v5519_v14  ;;  %v7294_v6 = vld [vmem:[#allocation5 + $0x334] sm:$0xf0]  ;;  %v5998_v7 = vld [vmem:[#allocation5 + $0x8a8] sm:$0xf]  ;;  %v5275_v10 = vor.u32 %v7287_v59, %v5272_v60  ;;  %v5232_v11 = vld [vmem:[#allocation5 + $0x2d8] sm:$0xf0]  ;;  %v5659_v14 = vor.u32 %v7383_v63, %v5656_v0  ;;  %v4895_v15 = vor.u32 %v7198_v3, %v4894_v1 }
  0x45   :  { %v7474_v8 = vld [vmem:[#allocation5 + $0x8d4] sm:$0xf0]  ;;  %v7372_v12 = vld [vmem:[#allocation5 + $0x5ac] sm:$0xf]  ;;  %v5616_v13 = vld [vmem:[#allocation5 + $0x5d8] sm:$0xf0]  ;;  %v5279_v18 = vor.u32 %v7294_v6, %v5278_v4 }
  0x46   :  { %1930 = vmatpush.bf16.msrb.mxu0 %v5467_v21  ;;  %v7468_v16 = vld [vmem:[#allocation5 + $0x8ac] sm:$0xf]  ;;  %v6000_v17 = vld [vmem:[#allocation5 + $0x8d8] sm:$0xf0]  ;;  %v5999_v19 = vor.u32 %v7474_v8, %v5998_v7  ;;  %v5235_v21 = vor.u32 %v7276_v9, %v5232_v11  ;;  %v7462_v24 = vld [vmem:[#allocation5 + $0x874] sm:$0xf0] }
  0x47   :  { %1944 = vmatpush.bf16.msrb.mxu1 %v5851_v22  ;;  %v5619_v22 = vor.u32 %v7372_v12, %v5616_v13  ;;  %v7264_v25 = vld [vmem:[#allocation5 + $0x24c] sm:$0xf]  ;;  %v6003_v26 = vor.u32 %v7468_v16, %v6000_v17  ;;  %v5568_v29 = vld [vmem:[#allocation5 + $0x578] sm:$0xf0]  ;;  %v7450_v36 = vld [vmem:[#allocation5 + $0x814] sm:$0xf0] }
  0x48   :  { %1958 = vmatpush.bf16.msrb.mxu2 %v5087_v23  ;;  %1972 = vmatpush.bf16.msrb.mxu3 %v5471_v27  ;;  %v5950_v23 = vld [vmem:[#allocation5 + $0x848] sm:$0xf]  ;;  %v5184_v27 = vld [vmem:[#allocation5 + $0x278] sm:$0xf0]  ;;  %v7360_v28 = vld [vmem:[#allocation5 + $0x54c] sm:$0xf] }
  0x49   :  { %v7456_v30 = vld [vmem:[#allocation5 + $0x84c] sm:$0xf]  ;;  %v5952_v31 = vld [vmem:[#allocation5 + $0x878] sm:$0xf0]  ;;  %v5951_v32 = vor.u32 %v7462_v24, %v5950_v23  ;;  %v7438_v48 = vld [vmem:[#allocation5 + $0x7b4] sm:$0xf0] }
  0x4a   :  { %1931 = vmatpush.bf16.msrb.mxu0 %v5419_v33  ;;  %v5187_v33 = vor.u32 %v7264_v25, %v5184_v27  ;;  %v7252_v37 = vld [vmem:[#allocation5 + $0x1ec] sm:$0xf]  ;;  %v5955_v38 = vor.u32 %v7456_v30, %v5952_v31  ;;  %v5520_v41 = vld [vmem:[#allocation5 + $0x518] sm:$0xf0]  ;;  %v5806_v60 = vld [vmem:[#allocation5 + $0x728] sm:$0xf] }
  0x4b   :  { %1945 = vmatpush.bf16.msrb.mxu1 %v5803_v34  ;;  %v5571_v34 = vor.u32 %v7360_v28, %v5568_v29  ;;  %v7348_v40 = vld [vmem:[#allocation5 + $0x4ec] sm:$0xf]  ;;  %v5904_v43 = vld [vmem:[#allocation5 + $0x818] sm:$0xf0]  ;;  %v5758_v9 = vld [vmem:[#allocation5 + $0x6c8] sm:$0xf] }
  0x4c   :  { %1959 = vmatpush.bf16.msrb.mxu2 %v5039_v35  ;;  %1973 = vmatpush.bf16.msrb.mxu3 %v5423_v39  ;;  %v5902_v35 = vld [vmem:[#allocation5 + $0x7e8] sm:$0xf]  ;;  %v5136_v39 = vld [vmem:[#allocation5 + $0x218] sm:$0xf0]  ;;  %v7444_v42 = vld [vmem:[#allocation5 + $0x7ec] sm:$0xf] }
  0x4d   :  { %v5903_v44 = vor.u32 %v7450_v36, %v5902_v35  ;;  %v7240_v49 = vld [vmem:[#allocation5 + $0x18c] sm:$0xf]  ;;  %v5907_v50 = vor.u32 %v7444_v42, %v5904_v43  ;;  %v5472_v53 = vld [vmem:[#allocation5 + $0x4b8] sm:$0xf0]  ;;  %v7402_v23 = vld [vmem:[#allocation5 + $0x694] sm:$0xf0] }
  0x4e   :  { %1932 = vmatpush.bf16.msrb.mxu0 %v5371_v45  ;;  %v5139_v45 = vor.u32 %v7252_v37, %v5136_v39  ;;  %v7336_v52 = vld [vmem:[#allocation5 + $0x48c] sm:$0xf]  ;;  %v5856_v55 = vld [vmem:[#allocation5 + $0x7b8] sm:$0xf0]  ;;  %v5238_v43 = vld [vmem:[#allocation5 + $0x2b0] sm:$0xf] }
  0x4f   :  { %1946 = vmatpush.bf16.msrb.mxu1 %v5755_v46  ;;  %v5523_v46 = vor.u32 %v7348_v40, %v5520_v41  ;;  %v7432_v54 = vld [vmem:[#allocation5 + $0x78c] sm:$0xf]  ;;  %v5475_v59 = vor.u32 %v7336_v52, %v5472_v53  ;;  %v5040_v0 = vld [vmem:[#allocation5 + $0x158] sm:$0xf0]  ;;  %v7277_v52 = vld [vmem:[#allocation5 + $0x2b4] sm:$0xf] }
  0x50   :  { %1960 = vmatpush.bf16.msrb.mxu2 %v4991_v47  ;;  %1974 = vmatpush.bf16.msrb.mxu3 %v5375_v51  ;;  %v5854_v47 = vld [vmem:[#allocation5 + $0x788] sm:$0xf]  ;;  %v5088_v51 = vld [vmem:[#allocation5 + $0x1b8] sm:$0xf0]  ;;  %v5859_v63 = vor.u32 %v7432_v54, %v5856_v55  ;;  %v7324_v1 = vld [vmem:[#allocation5 + $0x42c] sm:$0xf] }
  0x51   :  { %v5855_v56 = vor.u32 %v7438_v48, %v5854_v47  ;;  %v7420_v3 = vld [vmem:[#allocation5 + $0x72c] sm:$0xf]  ;;  %v5808_v4 = vld [vmem:[#allocation5 + $0x758] sm:$0xf0]  ;;  %v7379_v47 = vld [vmem:[#allocation5 + $0x5dc] sm:$0xf0] }
  0x52   :  { %1933 = vmatpush.bf16.msrb.mxu0 %v5323_v58  ;;  %v5091_v58 = vor.u32 %v7240_v49, %v5088_v51  ;;  %v7216_v11 = vld [vmem:[#allocation5 + $0xcc] sm:$0xf]  ;;  %v5811_v12 = vor.u32 %v7420_v3, %v5808_v4  ;;  %v4992_v13 = vld [vmem:[#allocation5 + $0xf8] sm:$0xf0]  ;;  %v6006_v48 = vld [vmem:[#allocation5 + $0x8b0] sm:$0xf] }
  0x53   :  { %1947 = vmatpush.bf16.msrb.mxu1 %v5707_v61  ;;  %v7426_v61 = vld [vmem:[#allocation5 + $0x754] sm:$0xf0]  ;;  %v7408_v16 = vld [vmem:[#allocation5 + $0x6cc] sm:$0xf]  ;;  %v5760_v17 = vld [vmem:[#allocation5 + $0x6f8] sm:$0xf0] }
  0x54   :  { %1961 = vmatpush.bf16.msrb.mxu2 %v4943_v62  ;;  %1975 = vmatpush.bf16.msrb.mxu3 %v5327_v2  ;;  %v7228_v62 = vld [vmem:[#allocation5 + $0x12c] sm:$0xf]  ;;  %v5424_v2 = vld [vmem:[#allocation5 + $0x458] sm:$0xf0]  ;;  %v5807_v6 = vor.u32 %v7426_v61, %v5806_v60  ;;  %v5763_v25 = vor.u32 %v7408_v16, %v5760_v17  ;;  %v7475_v49 = vld [vmem:[#allocation5 + $0x8dc] sm:$0xf0] }
  0x55   :  { %v5043_v7 = vor.u32 %v7228_v62, %v5040_v0  ;;  %v5427_v8 = vor.u32 %v7324_v1, %v5424_v2  ;;  %v7204_v24 = vld [vmem:[#allocation5 + $0x6c] sm:$0xf]  ;;  %v5328_v28 = vld [vmem:[#allocation5 + $0x398] sm:$0xf0]  ;;  %v5240_v53 = vld [vmem:[#allocation5 + $0x2e0] sm:$0xf0] }
  0x56   :  { %1934 = vmatpush.bf16.msrb.mxu0 %v5275_v10  ;;  %v7414_v10 = vld [vmem:[#allocation5 + $0x6f4] sm:$0xf0]  ;;  %v7300_v27 = vld [vmem:[#allocation5 + $0x36c] sm:$0xf]  ;;  %v5712_v30 = vld [vmem:[#allocation5 + $0x698] sm:$0xf0]  ;;  %v5243_v62 = vor.u32 %v7277_v52, %v5240_v53 }
  0x57   :  { %1948 = vmatpush.bf16.msrb.mxu1 %v5659_v14  ;;  %v7312_v14 = vld [vmem:[#allocation5 + $0x3cc] sm:$0xf]  ;;  %v5331_v35 = vor.u32 %v7300_v27, %v5328_v28  ;;  %v4896_v37 = vld [vmem:[#allocation5 + $0x38] sm:$0xf0]  ;;  %v7271_v60 = vld [vmem:[#allocation5 + $0x27c] sm:$0xf0] }
  0x58   :  { %1962 = vmatpush.bf16.msrb.mxu2 %v4895_v15  ;;  %1976 = vmatpush.bf16.msrb.mxu3 %v5279_v18  ;;  %v5376_v15 = vld [vmem:[#allocation5 + $0x3f8] sm:$0xf0]  ;;  %v5759_v18 = vor.u32 %v7414_v10, %v5758_v9  ;;  %v7396_v29 = vld [vmem:[#allocation5 + $0x66c] sm:$0xf]  ;;  %v5574_v61 = vld [vmem:[#allocation5 + $0x550] sm:$0xf] }
  0x59   :  { %1935 = vmatmul.bf16.vlgmr.msrb.gmra.mxu0 %v7994_v5  ;;  %v7192_v36 = vld [vmem:[#allocation5 + $0xc] sm:$0xf]  ;;  %v5715_v39 = vor.u32 %v7396_v29, %v5712_v30  ;;  %v5280_v40 = vld [vmem:[#allocation5 + $0x338] sm:$0xf0]  ;;  %v5958_v0 = vld [vmem:[#allocation5 + $0x850] sm:$0xf] }
  0x5a   :  { %1983 = vmatpush.bf16.msra.mxu0 %v5999_v19  ;;  %1949 = vmatmul.bf16.vlgmr.msrb.gmra.mxu1 %v7998_v20  ;;  %v4995_v19 = vor.u32 %v7216_v11, %v4992_v13  ;;  %v7384_v41 = vld [vmem:[#allocation5 + $0x60c] sm:$0xf]  ;;  %v5664_v42 = vld [vmem:[#allocation5 + $0x638] sm:$0xf0]  ;;  %v7463_v1 = vld [vmem:[#allocation5 + $0x87c] sm:$0xf0] }
  0x5b   :  { %1997 = vmatpush.bf16.msra.mxu1 %v5235_v21  ;;  %1963 = vmatmul.bf16.vlgmr.msrb.gmra.mxu2 %v7991_v57  ;;  %v5379_v21 = vor.u32 %v7312_v14, %v5376_v15  ;;  %v5667_v54 = vor.u32 %v7384_v41, %v5664_v42  ;;  %v7265_v2 = vld [vmem:[#allocation5 + $0x254] sm:$0xf]  ;;  %v5192_v3 = vld [vmem:[#allocation5 + $0x280] sm:$0xf0]  ;;  %v7259_v9 = vld [vmem:[#allocation5 + $0x21c] sm:$0xf0] }
  0x5c   :  { %2011 = vmatpush.bf16.msra.mxu2 %v5619_v22  ;;  %2025 = vmatpush.bf16.msra.mxu3 %v6003_v26  ;;  %v5710_v22 = vld [vmem:[#allocation5 + $0x668] sm:$0xf]  ;;  %v4944_v26 = vld [vmem:[#allocation5 + $0x98] sm:$0xf0]  ;;  %v5526_v10 = vld [vmem:[#allocation5 + $0x4f0] sm:$0xf]  ;;  %v5195_v11 = vor.u32 %v7265_v2, %v5192_v3 }
  0x5d   :  { %1977 = vmatmul.bf16.vlgmr.msrb.gmra.mxu3 %v7994_v5  ;;  %v5711_v31 = vor.u32 %v7402_v23, %v5710_v22  ;;  %v5910_v13 = vld [vmem:[#allocation5 + $0x7f0] sm:$0xf]  ;;  %v7451_v14 = vld [vmem:[#allocation5 + $0x81c] sm:$0xf0]  ;;  %v7253_v15 = vld [vmem:[#allocation5 + $0x1f4] sm:$0xf] }
  0x5e   :  { %1984 = vmatpush.bf16.msra.mxu0 %v5951_v32  ;;  %v5662_v32 = vld [vmem:[#allocation5 + $0x608] sm:$0xf]  ;;  %v5144_v16 = vld [vmem:[#allocation5 + $0x220] sm:$0xf0]  ;;  %v7247_v22 = vld [vmem:[#allocation5 + $0x1bc] sm:$0xf0] }
  0x5f   :  { %1998 = vmatpush.bf16.msra.mxu1 %v5187_v33  ;;  %v7390_v33 = vld [vmem:[#allocation5 + $0x634] sm:$0xf0]  ;;  %v5478_v23 = vld [vmem:[#allocation5 + $0x490] sm:$0xf]  ;;  %v7439_v27 = vld [vmem:[#allocation5 + $0x7bc] sm:$0xf0] }
  0x60   :  { %2012 = vmatpush.bf16.msra.mxu2 %v5571_v34  ;;  %2026 = vmatpush.bf16.msra.mxu3 %v5955_v38  ;;  %v4947_v34 = vor.u32 %v7204_v24, %v4944_v26  ;;  %v7288_v38 = vld [vmem:[#allocation5 + $0x30c] sm:$0xf]  ;;  %v5147_v24 = vor.u32 %v7253_v15, %v5144_v16  ;;  %v5862_v26 = vld [vmem:[#allocation5 + $0x790] sm:$0xf]  ;;  %v7241_v28 = vld [vmem:[#allocation5 + $0x194] sm:$0xf] }
  0x61   :  { %v5283_v51 = vor.u32 %v7288_v38, %v5280_v40  ;;  %v5096_v29 = vld [vmem:[#allocation5 + $0x1c0] sm:$0xf0]  ;;  %v5814_v38 = vld [vmem:[#allocation5 + $0x730] sm:$0xf]  ;;  %v7229_v40 = vld [vmem:[#allocation5 + $0x134] sm:$0xf] }
  0x62   :  { %1985 = vmatpush.bf16.msra.mxu0 %v5903_v44  ;;  %v7283_v44 = vld [vmem:[#allocation5 + $0x2dc] sm:$0xf0]  ;;  %v5048_v41 = vld [vmem:[#allocation5 + $0x160] sm:$0xf0]  ;;  %v7217_v52 = vld [vmem:[#allocation5 + $0xd4] sm:$0xf] }
  0x63   :  { %1999 = vmatpush.bf16.msra.mxu1 %v5139_v45  ;;  %v5622_v45 = vld [vmem:[#allocation5 + $0x5b0] sm:$0xf]  ;;  %v5239_v55 = vor.u32 %v7283_v44, %v5238_v43  ;;  %v5000_v53 = vld [vmem:[#allocation5 + $0x100] sm:$0xf0]  ;;  %v7373_v16 = vld [vmem:[#allocation5 + $0x5b4] sm:$0xf] }
  0x64   :  { %2013 = vmatpush.bf16.msra.mxu2 %v5523_v46  ;;  %2027 = vmatpush.bf16.msra.mxu3 %v5907_v50  ;;  %v5663_v46 = vor.u32 %v7390_v33, %v5662_v32  ;;  %v4899_v50 = vor.u32 %v7192_v36, %v4896_v37  ;;  %v5863_v32 = vor.u32 %v7439_v27, %v5862_v26  ;;  %v5046_v33 = vld [vmem:[#allocation5 + $0x130] sm:$0xf]  ;;  %v7331_v37 = vld [vmem:[#allocation5 + $0x45c] sm:$0xf0]  ;;  %v4952_v2 = vld [vmem:[#allocation5 + $0xa0] sm:$0xf0] }
  0x65   :  { %v5099_v36 = vor.u32 %v7241_v28, %v5096_v29  ;;  %v4904_v15 = vld [vmem:[#allocation5 + $0x40] sm:$0xf0]  ;;  %v5630_v26 = vld [vmem:[#allocation5 + $0x5b8] sm:$0xf]  ;;  %v7380_v27 = vld [vmem:[#allocation5 + $0x5e4] sm:$0xf0] }
  0x66   :  { %1986 = vmatpush.bf16.msra.mxu0 %v5855_v56  ;;  %v5623_v56 = vor.u32 %v7379_v47, %v5622_v45  ;;  %v4998_v45 = vld [vmem:[#allocation5 + $0xd0] sm:$0xf]  ;;  %s7939_s2 = smov [#allocation11]   ;;  %s4857_s21 = sshll.u32 %s8324_s5, 4  ;;  %s4858_s21 = int_to_ptr.hbm [resolvable:$true] %s4857_s21 }
  0x67   :  { %2000 = vmatpush.bf16.msra.mxu1 %v5091_v58  ;;  %v6007_v58 = vor.u32 %v7475_v49, %v6006_v48  ;;  %v5382_v47 = vld [vmem:[#allocation5 + $0x3d0] sm:$0xf]  ;;  %v5051_v48 = vor.u32 %v7229_v40, %v5048_v41  ;;  %v7319_v49 = vld [vmem:[#allocation5 + $0x3fc] sm:$0xf0]  ;;  %v7368_v40 = vld [vmem:[#allocation5 + $0x584] sm:$0xf0] }
  0x68   :  { %2014 = vmatpush.bf16.msra.mxu2 %v5475_v59  ;;  %2028 = vmatpush.bf16.msra.mxu3 %v5859_v63  ;;  %v5190_v59 = vld [vmem:[#allocation5 + $0x250] sm:$0xf]  ;;  %v7367_v63 = vld [vmem:[#allocation5 + $0x57c] sm:$0xf0]  ;;  %s4855_s4 = sshll.u32 %s7939_s2, 4  ;;  %s4856_s4 = int_to_ptr.vmem [resolvable:$true] %s4855_s4 }
  0x69   :  { %v5191_v4 = vor.u32 %v7271_v60, %v5190_v59  ;;  %v7211_v59 = vld [vmem:[#allocation5 + $0x9c] sm:$0xf0]  ;;  %v5334_v60 = vld [vmem:[#allocation5 + $0x370] sm:$0xf] }
  0x6a   :  { %1987 = vmatpush.bf16.msra.mxu0 %v5807_v6  ;;  %v5575_v6 = vor.u32 %v7367_v63, %v5574_v61  ;;  %v5003_v61 = vor.u32 %v7217_v52, %v5000_v53  ;;  %v5718_v63 = vld [vmem:[#allocation5 + $0x670] sm:$0xf]  ;;  %v7356_v52 = vld [vmem:[#allocation5 + $0x524] sm:$0xf0] }
  0x6b   :  { %2001 = vmatpush.bf16.msra.mxu1 %v5043_v7  ;;  %v5959_v7 = vor.u32 %v7463_v1, %v5958_v0  ;;  %v7403_v0 = vld [vmem:[#allocation5 + $0x69c] sm:$0xf0]  ;;  %v7205_v1 = vld [vmem:[#allocation5 + $0x74] sm:$0xf] }
  0x6c   :  { %2015 = vmatpush.bf16.msra.mxu2 %v5427_v8  ;;  %2029 = vmatpush.bf16.msra.mxu3 %v5811_v12  ;;  %v5142_v8 = vld [vmem:[#allocation5 + $0x1f0] sm:$0xf]  ;;  %v7355_v12 = vld [vmem:[#allocation5 + $0x51c] sm:$0xf0] }
  0x6d   :  { %v5143_v17 = vor.u32 %v7259_v9, %v5142_v8  ;;  %v5719_v8 = vor.u32 %v7403_v0, %v5718_v63  ;;  %v5286_v9 = vld [vmem:[#allocation5 + $0x310] sm:$0xf]  ;;  %v7248_v63 = vld [vmem:[#allocation5 + $0x1c4] sm:$0xf0]  ;;  %v5486_v0 = vld [vmem:[#allocation5 + $0x498] sm:$0xf] }
  0x6e   :  { %1988 = vmatpush.bf16.msra.mxu0 %v5759_v18  ;;  %v5527_v18 = vor.u32 %v7355_v12, %v5526_v10  ;;  %v7295_v10 = vld [vmem:[#allocation5 + $0x33c] sm:$0xf0]  ;;  %v4955_v12 = vor.u32 %v7205_v1, %v4952_v2  ;;  %v7344_v1 = vld [vmem:[#allocation5 + $0x4c4] sm:$0xf0] }
  0x6f   :  { %2002 = vmatpush.bf16.msra.mxu1 %v4995_v19  ;;  %v5911_v19 = vor.u32 %v7451_v14, %v5910_v13  ;;  %v7391_v13 = vld [vmem:[#allocation5 + $0x63c] sm:$0xf0]  ;;  %v7193_v14 = vld [vmem:[#allocation5 + $0x14] sm:$0xf] }
  0x70   :  { %2016 = vmatpush.bf16.msra.mxu2 %v5379_v21  ;;  %2030 = vmatpush.bf16.msra.mxu3 %v5763_v25  ;;  %v5094_v21 = vld [vmem:[#allocation5 + $0x190] sm:$0xf]  ;;  %v7343_v25 = vld [vmem:[#allocation5 + $0x4bc] sm:$0xf0]  ;;  %v4907_v28 = vor.u32 %v7193_v14, %v4904_v15  ;;  %v7332_v14 = vld [vmem:[#allocation5 + $0x464] sm:$0xf0] }
  0x71   :  { %v5095_v30 = vor.u32 %v7247_v22, %v5094_v21  ;;  %v6008_v21 = vld [vmem:[#allocation5 + $0x8e0] sm:$0xf0]  ;;  %v5246_v22 = vld [vmem:[#allocation5 + $0x2b8] sm:$0xf] }
  0x72   :  { %1989 = vmatpush.bf16.msra.mxu0 %v5711_v31  ;;  %v5479_v31 = vor.u32 %v7343_v25, %v5478_v23  ;;  %v7284_v23 = vld [vmem:[#allocation5 + $0x2e4] sm:$0xf0] }
  0x73   :  { %2003 = vmatpush.bf16.msra.mxu1 %v4947_v34  ;;  %v7235_v34 = vld [vmem:[#allocation5 + $0x15c] sm:$0xf0] }
  0x74   :  { %2017 = vmatpush.bf16.msra.mxu2 %v5331_v35  ;;  %2031 = vmatpush.bf16.msra.mxu3 %v5715_v39  ;;  %v5430_v35 = vld [vmem:[#allocation5 + $0x430] sm:$0xf]  ;;  %v7427_v39 = vld [vmem:[#allocation5 + $0x75c] sm:$0xf0]  ;;  %v5047_v42 = vor.u32 %v7235_v34, %v5046_v33  ;;  %v5576_v33 = vld [vmem:[#allocation5 + $0x580] sm:$0xf0] }
  0x75   :  { %v5431_v43 = vor.u32 %v7331_v37, %v5430_v35  ;;  %v5815_v44 = vor.u32 %v7427_v39, %v5814_v38  ;;  %v7457_v34 = vld [vmem:[#allocation5 + $0x854] sm:$0xf]  ;;  %v5631_v35 = vor.u32 %v7380_v27, %v5630_v26  ;;  %v5198_v37 = vld [vmem:[#allocation5 + $0x258] sm:$0xf]  ;;  %v7272_v38 = vld [vmem:[#allocation5 + $0x284] sm:$0xf0] }
  0x76   :  { %1990 = vmatpush.bf16.msra.mxu0 %v5663_v46  ;;  %v7223_v46 = vld [vmem:[#allocation5 + $0xfc] sm:$0xf0]  ;;  %v5582_v39 = vld [vmem:[#allocation5 + $0x558] sm:$0xf]  ;;  %v7320_v27 = vld [vmem:[#allocation5 + $0x404] sm:$0xf0] }
  0x77   :  { %2004 = vmatpush.bf16.msra.mxu1 %v4899_v50  ;;  %v5766_v50 = vld [vmem:[#allocation5 + $0x6d0] sm:$0xf]  ;;  %v5390_v26 = vld [vmem:[#allocation5 + $0x3d8] sm:$0xf] }
  0x78   :  { %2018 = vmatpush.bf16.msra.mxu2 %v5283_v51  ;;  %2032 = vmatpush.bf16.msra.mxu3 %v5667_v54  ;;  %v7415_v51 = vld [vmem:[#allocation5 + $0x6fc] sm:$0xf0]  ;;  %v4999_v54 = vor.u32 %v7223_v46, %v4998_v45  ;;  %v5528_v45 = vld [vmem:[#allocation5 + $0x520] sm:$0xf0]  ;;  %v7445_v46 = vld [vmem:[#allocation5 + $0x7f4] sm:$0xf] }
  0x79   :  { %1991 = vmatmul.bf16.vlgmr.msra.gmra.mxu0 %v7998_v20 }
  0x7a   :  { %2039 = vmatpush.bf16.msrb.mxu0 %v5239_v55  ;;  %2005 = vmatmul.bf16.vlgmr.msra.gmra.mxu1 %v7991_v57  ;;  %v5383_v55 = vor.u32 %v7319_v49, %v5382_v47  ;;  %v5583_v47 = vor.u32 %v7368_v40, %v5582_v39  ;;  %v5150_v49 = vld [vmem:[#allocation5 + $0x1f8] sm:$0xf]  ;;  %v7308_v39 = vld [vmem:[#allocation5 + $0x3a4] sm:$0xf0] }
  0x7b   :  { %2053 = vmatpush.bf16.msrb.mxu1 %v5623_v56  ;;  %2019 = vmatmul.bf16.vlgmr.msra.gmra.mxu2 %v7994_v5  ;;  %v5767_v56 = vor.u32 %v7415_v51, %v5766_v50  ;;  %v7260_v50 = vld [vmem:[#allocation5 + $0x224] sm:$0xf0]  ;;  %v5534_v51 = vld [vmem:[#allocation5 + $0x4f8] sm:$0xf] }
  0x7c   :  { %2067 = vmatpush.bf16.msrb.mxu2 %v6007_v58  ;;  %2081 = vmatpush.bf16.msrb.mxu3 %v5243_v62  ;;  %v4950_v58 = vld [vmem:[#allocation5 + $0x70] sm:$0xf]  ;;  %v7307_v62 = vld [vmem:[#allocation5 + $0x39c] sm:$0xf0] }
  0x7d   :  { %2033 = vmatmul.bf16.vlgmr.msra.gmra.mxu3 %v7998_v20  ;;  %v4951_v3 = vor.u32 %v7211_v59, %v4950_v58  ;;  %v5480_v58 = vld [vmem:[#allocation5 + $0x4c0] sm:$0xf0]  ;;  %v7433_v59 = vld [vmem:[#allocation5 + $0x794] sm:$0xf] }
  0x7e   :  { %2040 = vmatpush.bf16.msrb.mxu0 %v5191_v4  ;;  %v4902_v4 = vld [vmem:[#allocation5 + $0x10] sm:$0xf] }
  0x7f   :  { %2054 = vmatpush.bf16.msrb.mxu1 %v5575_v6  ;;  %v7199_v6 = vld [vmem:[#allocation5 + $0x3c] sm:$0xf0] }
  0x80   :  { %2068 = vmatpush.bf16.msrb.mxu2 %v5959_v7  ;;  %2082 = vmatpush.bf16.msrb.mxu3 %v5195_v11  ;;  %v5335_v7 = vor.u32 %v7307_v62, %v5334_v60  ;;  %v5670_v11 = vld [vmem:[#allocation5 + $0x610] sm:$0xf]  ;;  %v5535_v60 = vor.u32 %v7356_v52, %v5534_v51  ;;  %v5102_v62 = vld [vmem:[#allocation5 + $0x198] sm:$0xf]  ;;  %v7296_v51 = vld [vmem:[#allocation5 + $0x344] sm:$0xf0] }
  0x81   :  { %v5671_v25 = vor.u32 %v7391_v13, %v5670_v11  ;;  %v5054_v11 = vld [vmem:[#allocation5 + $0x138] sm:$0xf] }
  0x82   :  { %2041 = vmatpush.bf16.msrb.mxu0 %v5143_v17  ;;  %v5624_v17 = vld [vmem:[#allocation5 + $0x5e0] sm:$0xf0]  ;;  %v5438_v13 = vld [vmem:[#allocation5 + $0x438] sm:$0xf] }
  0x83   :  { %2055 = vmatpush.bf16.msrb.mxu1 %v5527_v18  ;;  %v7469_v18 = vld [vmem:[#allocation5 + $0x8b4] sm:$0xf]  ;;  %v5627_v29 = vor.u32 %v7373_v16, %v5624_v17  ;;  %v6014_v52 = vld [vmem:[#allocation5 + $0x8b8] sm:$0xf] }
  0x84   :  { %2069 = vmatpush.bf16.msrb.mxu2 %v5911_v19  ;;  %2083 = vmatpush.bf16.msrb.mxu3 %v5147_v24  ;;  %v4903_v19 = vor.u32 %v7199_v6, %v4902_v4  ;;  %v5287_v24 = vor.u32 %v7295_v10, %v5286_v9  ;;  %v5103_v4 = vor.u32 %v7248_v63, %v5102_v62  ;;  %v7325_v6 = vld [vmem:[#allocation5 + $0x434] sm:$0xf]  ;;  %v5816_v10 = vld [vmem:[#allocation5 + $0x760] sm:$0xf0]  ;;  %v7470_v62 = vld [vmem:[#allocation5 + $0x8bc] sm:$0xf] }
  0x85   :  { %v5487_v9 = vor.u32 %v7344_v1, %v5486_v0  ;;  %v6016_v63 = vld [vmem:[#allocation5 + $0x8e8] sm:$0xf0] }
  0x86   :  { %2042 = vmatpush.bf16.msrb.mxu0 %v5095_v30  ;;  %v6011_v30 = vor.u32 %v7469_v18, %v6008_v21  ;;  %v7313_v18 = vld [vmem:[#allocation5 + $0x3d4] sm:$0xf] }
  0x87   :  { %2056 = vmatpush.bf16.msrb.mxu1 %v5479_v31  ;;  %v5247_v31 = vor.u32 %v7284_v23, %v5246_v22  ;;  %v7409_v21 = vld [vmem:[#allocation5 + $0x6d4] sm:$0xf]  ;;  %v5439_v22 = vor.u32 %v7332_v14, %v5438_v13  ;;  %v5768_v23 = vld [vmem:[#allocation5 + $0x700] sm:$0xf0]  ;;  %v5968_v13 = vld [vmem:[#allocation5 + $0x888] sm:$0xf0] }
  0x88   :  { %2070 = vmatpush.bf16.msrb.mxu2 %v5863_v32  ;;  %2084 = vmatpush.bf16.msrb.mxu3 %v5099_v36  ;;  %v7361_v32 = vld [vmem:[#allocation5 + $0x554] sm:$0xf]  ;;  %v5960_v36 = vld [vmem:[#allocation5 + $0x880] sm:$0xf0] }
  0x89   :  { %v5579_v41 = vor.u32 %v7361_v32, %v5576_v33  ;;  %v5336_v32 = vld [vmem:[#allocation5 + $0x3a0] sm:$0xf0]  ;;  %v7397_v33 = vld [vmem:[#allocation5 + $0x674] sm:$0xf] }
  0x8a   :  { %2043 = vmatpush.bf16.msrb.mxu0 %v5047_v42  ;;  %v5963_v42 = vor.u32 %v7457_v34, %v5960_v36  ;;  %v5391_v34 = vor.u32 %v7320_v27, %v5390_v26  ;;  %v4958_v36 = vld [vmem:[#allocation5 + $0x78] sm:$0xf]  ;;  %v5920_v26 = vld [vmem:[#allocation5 + $0x828] sm:$0xf0] }
  0x8b   :  { %2057 = vmatpush.bf16.msrb.mxu1 %v5431_v43  ;;  %v5199_v43 = vor.u32 %v7272_v38, %v5198_v37  ;;  %v7212_v37 = vld [vmem:[#allocation5 + $0xa4] sm:$0xf0]  ;;  %v5342_v38 = vld [vmem:[#allocation5 + $0x378] sm:$0xf] }
  0x8c   :  { %2071 = vmatpush.bf16.msrb.mxu2 %v5815_v44  ;;  %2085 = vmatpush.bf16.msrb.mxu3 %v5051_v48  ;;  %v7349_v44 = vld [vmem:[#allocation5 + $0x4f4] sm:$0xf]  ;;  %v5912_v48 = vld [vmem:[#allocation5 + $0x820] sm:$0xf0] }
  0x8d   :  { %v5531_v53 = vor.u32 %v7349_v44, %v5528_v45  ;;  %v4959_v44 = vor.u32 %v7212_v37, %v4958_v36  ;;  %v7385_v45 = vld [vmem:[#allocation5 + $0x614] sm:$0xf]  ;;  %v5488_v36 = vld [vmem:[#allocation5 + $0x4c8] sm:$0xf0]  ;;  %v7434_v37 = vld [vmem:[#allocation5 + $0x79c] sm:$0xf] }
  0x8e   :  { %2044 = vmatpush.bf16.msrb.mxu0 %v4999_v54  ;;  %v5915_v54 = vor.u32 %v7445_v46, %v5912_v48  ;;  %v5672_v46 = vld [vmem:[#allocation5 + $0x640] sm:$0xf0]  ;;  %v5343_v48 = vor.u32 %v7308_v39, %v5342_v38  ;;  %v5872_v38 = vld [vmem:[#allocation5 + $0x7c8] sm:$0xf0] }
  0x8f   :  { %2058 = vmatpush.bf16.msrb.mxu1 %v5383_v55  ;;  %v5151_v55 = vor.u32 %v7260_v50, %v5150_v49  ;;  %v7200_v49 = vld [vmem:[#allocation5 + $0x44] sm:$0xf0]  ;;  %v5294_v50 = vld [vmem:[#allocation5 + $0x318] sm:$0xf] }
  0x90   :  { %2072 = vmatpush.bf16.msrb.mxu2 %v5767_v56  ;;  %2086 = vmatpush.bf16.msrb.mxu3 %v5003_v61  ;;  %v7337_v56 = vld [vmem:[#allocation5 + $0x494] sm:$0xf]  ;;  %v5864_v61 = vld [vmem:[#allocation5 + $0x7c0] sm:$0xf0]  ;;  %v5295_v0 = vor.u32 %v7296_v51, %v5294_v50  ;;  %v5824_v50 = vld [vmem:[#allocation5 + $0x768] sm:$0xf0] }
  0x91   :  { %v5483_v2 = vor.u32 %v7337_v56, %v5480_v58  ;;  %v5248_v56 = vld [vmem:[#allocation5 + $0x2e8] sm:$0xf0]  ;;  %v7374_v58 = vld [vmem:[#allocation5 + $0x5bc] sm:$0xf] }
  0x92   :  { %2045 = vmatpush.bf16.msrb.mxu0 %v4951_v3  ;;  %v5867_v3 = vor.u32 %v7433_v59, %v5864_v61  ;;  %v5632_v59 = vld [vmem:[#allocation5 + $0x5e8] sm:$0xf0] }
  0x93   :  { %2059 = vmatpush.bf16.msrb.mxu1 %v5335_v7  ;;  %v5432_v7 = vld [vmem:[#allocation5 + $0x460] sm:$0xf0] }
  0x94   :  { %2073 = vmatpush.bf16.msrb.mxu2 %v5719_v8  ;;  %2087 = vmatpush.bf16.msrb.mxu3 %v4955_v12  ;;  %v7421_v8 = vld [vmem:[#allocation5 + $0x734] sm:$0xf]  ;;  %v7236_v12 = vld [vmem:[#allocation5 + $0x164] sm:$0xf0]  ;;  %v5435_v15 = vor.u32 %v7325_v6, %v5432_v7  ;;  %v7266_v7 = vld [vmem:[#allocation5 + $0x25c] sm:$0xf] }
  0x95   :  { %v5819_v16 = vor.u32 %v7421_v8, %v5816_v10  ;;  %v5055_v17 = vor.u32 %v7236_v12, %v5054_v11  ;;  %v7464_v6 = vld [vmem:[#allocation5 + $0x884] sm:$0xf0]  ;;  %v6019_v8 = vor.u32 %v7470_v62, %v6016_v63  ;;  %v7362_v10 = vld [vmem:[#allocation5 + $0x55c] sm:$0xf]  ;;  %v5584_v11 = vld [vmem:[#allocation5 + $0x588] sm:$0xf0] }
  0x96   :  { %2046 = vmatpush.bf16.msrb.mxu0 %v4903_v19  ;;  %v5384_v19 = vld [vmem:[#allocation5 + $0x400] sm:$0xf0]  ;;  %v7458_v12 = vld [vmem:[#allocation5 + $0x85c] sm:$0xf]  ;;  %v5776_v63 = vld [vmem:[#allocation5 + $0x708] sm:$0xf0] }
  0x97   :  { %2060 = vmatpush.bf16.msrb.mxu1 %v5287_v24  ;;  %v5006_v24 = vld [vmem:[#allocation5 + $0xd8] sm:$0xf]  ;;  %v7410_v62 = vld [vmem:[#allocation5 + $0x6dc] sm:$0xf] }
  0x98   :  { %2074 = vmatpush.bf16.msrb.mxu2 %v5671_v25  ;;  %2088 = vmatpush.bf16.msrb.mxu3 %v4907_v28  ;;  %v7224_v25 = vld [vmem:[#allocation5 + $0x104] sm:$0xf0]  ;;  %v5387_v28 = vor.u32 %v7313_v18, %v5384_v19  ;;  %v7254_v19 = vld [vmem:[#allocation5 + $0x1fc] sm:$0xf] }
  0x99   :  { %2047 = vmatmul.bf16.vlgmr.msrb.gmra.mxu0 %v7991_v57  ;;  %v7452_v18 = vld [vmem:[#allocation5 + $0x824] sm:$0xf0] }
  0x9a   :  { %2095 = vmatpush.bf16.msra.mxu0 %v5627_v29  ;;  %2061 = vmatmul.bf16.vlgmr.msrb.gmra.mxu1 %v7994_v5  ;;  %v5771_v29 = vor.u32 %v7409_v21, %v5768_v23  ;;  %v5971_v21 = vor.u32 %v7458_v12, %v5968_v13  ;;  %v7350_v23 = vld [vmem:[#allocation5 + $0x4fc] sm:$0xf]  ;;  %v5728_v12 = vld [vmem:[#allocation5 + $0x6a8] sm:$0xf0] }
  0x9b   :  { %2109 = vmatpush.bf16.msra.mxu1 %v6011_v30  ;;  %2075 = vmatmul.bf16.vlgmr.msrb.gmra.mxu2 %v7998_v20  ;;  %v5007_v30 = vor.u32 %v7224_v25, %v5006_v24  ;;  %v5536_v24 = vld [vmem:[#allocation5 + $0x528] sm:$0xf0]  ;;  %v7446_v25 = vld [vmem:[#allocation5 + $0x7fc] sm:$0xf] }
  0x9c   :  { %2123 = vmatpush.bf16.msra.mxu2 %v5247_v31  ;;  %2137 = vmatpush.bf16.msra.mxu3 %v5631_v35  ;;  %v7301_v31 = vld [vmem:[#allocation5 + $0x374] sm:$0xf]  ;;  %v5720_v35 = vld [vmem:[#allocation5 + $0x6a0] sm:$0xf0] }
  0x9d   :  { %2089 = vmatmul.bf16.vlgmr.msrb.gmra.mxu3 %v7991_v57  ;;  %v5339_v40 = vor.u32 %v7301_v31, %v5336_v32  ;;  %v7440_v31 = vld [vmem:[#allocation5 + $0x7c4] sm:$0xf0]  ;;  %v7242_v32 = vld [vmem:[#allocation5 + $0x19c] sm:$0xf] }
  0x9e   :  { %2096 = vmatpush.bf16.msra.mxu0 %v5579_v41  ;;  %v7289_v41 = vld [vmem:[#allocation5 + $0x314] sm:$0xf] }
  0x9f   :  { %2110 = vmatpush.bf16.msra.mxu1 %v5963_v42  ;;  %v5288_v42 = vld [vmem:[#allocation5 + $0x340] sm:$0xf0] }
  0xa0   :  { %2124 = vmatpush.bf16.msra.mxu2 %v5199_v43  ;;  %2138 = vmatpush.bf16.msra.mxu3 %v5583_v47  ;;  %v5723_v43 = vor.u32 %v7397_v33, %v5720_v35  ;;  %v4910_v47 = vld [vmem:[#allocation5 + $0x18] sm:$0xf]  ;;  %v5923_v33 = vor.u32 %v7446_v25, %v5920_v26  ;;  %v7338_v35 = vld [vmem:[#allocation5 + $0x49c] sm:$0xf]  ;;  %v5680_v25 = vld [vmem:[#allocation5 + $0x648] sm:$0xf0] }
  0xa1   :  { %v4911_v61 = vor.u32 %v7200_v49, %v4910_v47  ;;  %v7326_v47 = vld [vmem:[#allocation5 + $0x43c] sm:$0xf]  ;;  %v5254_v26 = vld [vmem:[#allocation5 + $0x2c0] sm:$0xf] }
  0xa2   :  { %2097 = vmatpush.bf16.msra.mxu0 %v5531_v53  ;;  %v7476_v53 = vld [vmem:[#allocation5 + $0x8e4] sm:$0xf0]  ;;  %v7422_v49 = vld [vmem:[#allocation5 + $0x73c] sm:$0xf] }
  0xa3   :  { %2111 = vmatpush.bf16.msra.mxu1 %v5915_v54  ;;  %v7278_v54 = vld [vmem:[#allocation5 + $0x2bc] sm:$0xf]  ;;  %v6015_v1 = vor.u32 %v7476_v53, %v6014_v52 }
  0xa4   :  { %2125 = vmatpush.bf16.msra.mxu2 %v5151_v55  ;;  %2139 = vmatpush.bf16.msra.mxu3 %v5535_v60  ;;  %v5291_v55 = vor.u32 %v7289_v41, %v5288_v42  ;;  %v5675_v60 = vor.u32 %v7385_v45, %v5672_v46  ;;  %v5491_v41 = vor.u32 %v7338_v35, %v5488_v36  ;;  %v5822_v42 = vld [vmem:[#allocation5 + $0x738] sm:$0xf]  ;;  %v5056_v46 = vld [vmem:[#allocation5 + $0x168] sm:$0xf0]  ;;  %v7279_v35 = vld [vmem:[#allocation5 + $0x2c4] sm:$0xf] }
  0xa5   :  { %v5875_v45 = vor.u32 %v7434_v37, %v5872_v38  ;;  %v5256_v36 = vld [vmem:[#allocation5 + $0x2f0] sm:$0xf0] }
  0xa6   :  { %2098 = vmatpush.bf16.msra.mxu0 %v5483_v2  ;;  %v5251_v2 = vor.u32 %v7278_v54, %v5248_v56  ;;  %v5774_v54 = vld [vmem:[#allocation5 + $0x6d8] sm:$0xf]  ;;  %v7218_v56 = vld [vmem:[#allocation5 + $0xdc] sm:$0xf] }
  0xa7   :  { %2112 = vmatpush.bf16.msra.mxu1 %v5867_v3  ;;  %v5635_v3 = vor.u32 %v7374_v58, %v5632_v59  ;;  %v5827_v58 = vor.u32 %v7422_v49, %v5824_v50  ;;  %v5008_v59 = vld [vmem:[#allocation5 + $0x108] sm:$0xf0]  ;;  %v5208_v49 = vld [vmem:[#allocation5 + $0x290] sm:$0xf0] }
  0xa8   :  { %2126 = vmatpush.bf16.msra.mxu2 %v5103_v4  ;;  %2140 = vmatpush.bf16.msra.mxu3 %v5487_v9  ;;  %v5966_v4 = vld [vmem:[#allocation5 + $0x858] sm:$0xf]  ;;  %v5200_v9 = vld [vmem:[#allocation5 + $0x288] sm:$0xf0] }
  0xa9   :  { %v5967_v14 = vor.u32 %v7464_v6, %v5966_v4  ;;  %v7404_v4 = vld [vmem:[#allocation5 + $0x6a4] sm:$0xf0]  ;;  %v7206_v6 = vld [vmem:[#allocation5 + $0x7c] sm:$0xf] }
  0xaa   :  { %2099 = vmatpush.bf16.msra.mxu0 %v5435_v15  ;;  %v5203_v15 = vor.u32 %v7266_v7, %v5200_v9  ;;  %v5779_v7 = vor.u32 %v7410_v62, %v5776_v63  ;;  %v7302_v9 = vld [vmem:[#allocation5 + $0x37c] sm:$0xf]  ;;  %v5160_v62 = vld [vmem:[#allocation5 + $0x230] sm:$0xf0] }
  0xab   :  { %2113 = vmatpush.bf16.msra.mxu1 %v5819_v16  ;;  %v5587_v16 = vor.u32 %v7362_v10, %v5584_v11  ;;  %v5344_v10 = vld [vmem:[#allocation5 + $0x3a8] sm:$0xf0]  ;;  %v7398_v11 = vld [vmem:[#allocation5 + $0x67c] sm:$0xf] }
  0xac   :  { %2127 = vmatpush.bf16.msra.mxu2 %v5055_v17  ;;  %2141 = vmatpush.bf16.msra.mxu3 %v5439_v22  ;;  %v5918_v17 = vld [vmem:[#allocation5 + $0x7f8] sm:$0xf]  ;;  %v5152_v22 = vld [vmem:[#allocation5 + $0x228] sm:$0xf0] }
  0xad   :  { %v5919_v27 = vor.u32 %v7452_v18, %v5918_v17  ;;  %v5347_v17 = vor.u32 %v7302_v9, %v5344_v10  ;;  %v7194_v18 = vld [vmem:[#allocation5 + $0x1c] sm:$0xf]  ;;  %v7441_v9 = vld [vmem:[#allocation5 + $0x7cc] sm:$0xf0]  ;;  %v7243_v10 = vld [vmem:[#allocation5 + $0x1a4] sm:$0xf] }
  0xae   :  { %2100 = vmatpush.bf16.msra.mxu0 %v5387_v28  ;;  %v5155_v28 = vor.u32 %v7254_v19, %v5152_v22  ;;  %v4912_v19 = vld [vmem:[#allocation5 + $0x48] sm:$0xf0]  ;;  %v5731_v22 = vor.u32 %v7398_v11, %v5728_v12  ;;  %v5112_v11 = vld [vmem:[#allocation5 + $0x1d0] sm:$0xf0] }
  0xaf   :  { %2114 = vmatpush.bf16.msra.mxu1 %v5771_v29  ;;  %v5539_v29 = vor.u32 %v7350_v23, %v5536_v24  ;;  %v5296_v23 = vld [vmem:[#allocation5 + $0x348] sm:$0xf0]  ;;  %v7386_v24 = vld [vmem:[#allocation5 + $0x61c] sm:$0xf] }
  0xb0   :  { %2128 = vmatpush.bf16.msra.mxu2 %v5007_v30  ;;  %2142 = vmatpush.bf16.msra.mxu3 %v5391_v34  ;;  %v5870_v30 = vld [vmem:[#allocation5 + $0x798] sm:$0xf]  ;;  %v5104_v34 = vld [vmem:[#allocation5 + $0x1c8] sm:$0xf0]  ;;  %v5683_v37 = vor.u32 %v7386_v24, %v5680_v25  ;;  %v5064_v24 = vld [vmem:[#allocation5 + $0x170] sm:$0xf0] }
  0xb1   :  { %v5871_v39 = vor.u32 %v7440_v31, %v5870_v30  ;;  %v7381_v30 = vld [vmem:[#allocation5 + $0x5ec] sm:$0xf0]  ;;  %v6022_v31 = vld [vmem:[#allocation5 + $0x8c0] sm:$0xf] }
  0xb2   :  { %2101 = vmatpush.bf16.msra.mxu0 %v5339_v40  ;;  %v5107_v40 = vor.u32 %v7242_v32, %v5104_v34  ;;  %v7477_v32 = vld [vmem:[#allocation5 + $0x8ec] sm:$0xf0] }
  0xb3   :  { %2115 = vmatpush.bf16.msra.mxu1 %v5723_v43  ;;  %v7428_v43 = vld [vmem:[#allocation5 + $0x764] sm:$0xf0] }
  0xb4   :  { %2129 = vmatpush.bf16.msra.mxu2 %v4959_v44  ;;  %2143 = vmatpush.bf16.msra.mxu3 %v5343_v48  ;;  %v7230_v44 = vld [vmem:[#allocation5 + $0x13c] sm:$0xf]  ;;  %v5440_v48 = vld [vmem:[#allocation5 + $0x468] sm:$0xf0]  ;;  %v5823_v51 = vor.u32 %v7428_v43, %v5822_v42  ;;  %v7273_v42 = vld [vmem:[#allocation5 + $0x28c] sm:$0xf0] }
  0xb5   :  { %v5059_v52 = vor.u32 %v7230_v44, %v5056_v46  ;;  %v5443_v53 = vor.u32 %v7326_v47, %v5440_v48  ;;  %v5590_v43 = vld [vmem:[#allocation5 + $0x560] sm:$0xf]  ;;  %v5259_v44 = vor.u32 %v7279_v35, %v5256_v36  ;;  %v7465_v47 = vld [vmem:[#allocation5 + $0x88c] sm:$0xf0]  ;;  %v7267_v48 = vld [vmem:[#allocation5 + $0x264] sm:$0xf] }
  0xb6   :  { %2102 = vmatpush.bf16.msra.mxu0 %v5291_v55  ;;  %v7416_v55 = vld [vmem:[#allocation5 + $0x704] sm:$0xf0]  ;;  %v5974_v46 = vld [vmem:[#allocation5 + $0x860] sm:$0xf]  ;;  %v7219_v35 = vld [vmem:[#allocation5 + $0xe4] sm:$0xf] }
  0xb7   :  { %2116 = vmatpush.bf16.msra.mxu1 %v5675_v60  ;;  %v7314_v60 = vld [vmem:[#allocation5 + $0x3dc] sm:$0xf]  ;;  %v5016_v36 = vld [vmem:[#allocation5 + $0x110] sm:$0xf0] }
  0xb8   :  { %2130 = vmatpush.bf16.msra.mxu2 %v4911_v61  ;;  %2144 = vmatpush.bf16.msra.mxu3 %v5295_v0  ;;  %v5392_v61 = vld [vmem:[#allocation5 + $0x408] sm:$0xf0]  ;;  %v5775_v0 = vor.u32 %v7416_v55, %v5774_v54  ;;  %v7261_v54 = vld [vmem:[#allocation5 + $0x22c] sm:$0xf0]  ;;  %v5542_v55 = vld [vmem:[#allocation5 + $0x500] sm:$0xf] }
  0xb9   :  { %2103 = vmatmul.bf16.vlgmr.msra.gmra.mxu0 %v7994_v5 }
  0xba   :  { %2151 = vmatpush.bf16.msrb.mxu0 %v6015_v1  ;;  %2117 = vmatmul.bf16.vlgmr.msra.gmra.mxu1 %v7998_v20  ;;  %v5011_v1 = vor.u32 %v7218_v56, %v5008_v59  ;;  %v5211_v56 = vor.u32 %v7267_v48, %v5208_v49  ;;  %v5926_v59 = vld [vmem:[#allocation5 + $0x800] sm:$0xf]  ;;  %v4968_v48 = vld [vmem:[#allocation5 + $0xb0] sm:$0xf0] }
  0xbb   :  { %2165 = vmatpush.bf16.msrb.mxu1 %v5251_v2  ;;  %2131 = vmatmul.bf16.vlgmr.msra.gmra.mxu2 %v7991_v57  ;;  %v5395_v2 = vor.u32 %v7314_v60, %v5392_v61  ;;  %v7453_v60 = vld [vmem:[#allocation5 + $0x82c] sm:$0xf0]  ;;  %v7255_v61 = vld [vmem:[#allocation5 + $0x204] sm:$0xf] }
  0xbc   :  { %2179 = vmatpush.bf16.msrb.mxu2 %v5635_v3  ;;  %2193 = vmatpush.bf16.msrb.mxu3 %v6019_v8  ;;  %v5726_v3 = vld [vmem:[#allocation5 + $0x678] sm:$0xf]  ;;  %v4960_v8 = vld [vmem:[#allocation5 + $0xa8] sm:$0xf0] }
  0xbd   :  { %2145 = vmatmul.bf16.vlgmr.msra.gmra.mxu3 %v7994_v5  ;;  %v5727_v13 = vor.u32 %v7404_v4, %v5726_v3  ;;  %v7249_v3 = vld [vmem:[#allocation5 + $0x1cc] sm:$0xf0]  ;;  %v5494_v4 = vld [vmem:[#allocation5 + $0x4a0] sm:$0xf] }
  0xbe   :  { %2152 = vmatpush.bf16.msrb.mxu0 %v5967_v14  ;;  %v5678_v14 = vld [vmem:[#allocation5 + $0x618] sm:$0xf] }
  0xbf   :  { %2166 = vmatpush.bf16.msrb.mxu1 %v5203_v15  ;;  %v7392_v15 = vld [vmem:[#allocation5 + $0x644] sm:$0xf0] }
  0xc0   :  { %2180 = vmatpush.bf16.msrb.mxu2 %v5587_v16  ;;  %2194 = vmatpush.bf16.msrb.mxu3 %v5971_v21  ;;  %v4963_v16 = vor.u32 %v7206_v6, %v4960_v8  ;;  %v7290_v21 = vld [vmem:[#allocation5 + $0x31c] sm:$0xf]  ;;  %v5163_v6 = vor.u32 %v7255_v61, %v5160_v62  ;;  %v5878_v8 = vld [vmem:[#allocation5 + $0x7a0] sm:$0xf]  ;;  %v4920_v61 = vld [vmem:[#allocation5 + $0x50] sm:$0xf0] }
  0xc1   :  { %v5299_v34 = vor.u32 %v7290_v21, %v5296_v23  ;;  %v5830_v21 = vld [vmem:[#allocation5 + $0x740] sm:$0xf]  ;;  %v7231_v23 = vld [vmem:[#allocation5 + $0x144] sm:$0xf] }
  0xc2   :  { %2153 = vmatpush.bf16.msrb.mxu0 %v5919_v27  ;;  %v7285_v27 = vld [vmem:[#allocation5 + $0x2ec] sm:$0xf0]  ;;  %v7375_v62 = vld [vmem:[#allocation5 + $0x5c4] sm:$0xf] }
  0xc3   :  { %2167 = vmatpush.bf16.msrb.mxu1 %v5155_v28  ;;  %v5638_v28 = vld [vmem:[#allocation5 + $0x5c0] sm:$0xf]  ;;  %v5255_v38 = vor.u32 %v7285_v27, %v5254_v26 }
  0xc4   :  { %2181 = vmatpush.bf16.msrb.mxu2 %v5539_v29  ;;  %2195 = vmatpush.bf16.msrb.mxu3 %v5923_v33  ;;  %v5679_v29 = vor.u32 %v7392_v15, %v5678_v14  ;;  %v4915_v33 = vor.u32 %v7194_v18, %v4912_v19  ;;  %v5879_v14 = vor.u32 %v7441_v9, %v5878_v8  ;;  %v5062_v15 = vld [vmem:[#allocation5 + $0x140] sm:$0xf]  ;;  %v7333_v19 = vld [vmem:[#allocation5 + $0x46c] sm:$0xf0]  ;;  %v5646_v8 = vld [vmem:[#allocation5 + $0x5c8] sm:$0xf] }
  0xc5   :  { %v5115_v18 = vor.u32 %v7243_v10, %v5112_v11  ;;  %v7382_v9 = vld [vmem:[#allocation5 + $0x5f4] sm:$0xf0] }
  0xc6   :  { %2154 = vmatpush.bf16.msrb.mxu0 %v5871_v39  ;;  %v5639_v39 = vor.u32 %v7381_v30, %v5638_v28  ;;  %v5014_v28 = vld [vmem:[#allocation5 + $0xe0] sm:$0xf] }
  0xc7   :  { %2168 = vmatpush.bf16.msrb.mxu1 %v5107_v40  ;;  %v6023_v40 = vor.u32 %v7477_v32, %v6022_v31  ;;  %v5398_v30 = vld [vmem:[#allocation5 + $0x3e0] sm:$0xf]  ;;  %v5067_v31 = vor.u32 %v7231_v23, %v5064_v24  ;;  %v7321_v32 = vld [vmem:[#allocation5 + $0x40c] sm:$0xf0]  ;;  %v7370_v23 = vld [vmem:[#allocation5 + $0x594] sm:$0xf0] }
  0xc8   :  { %2182 = vmatpush.bf16.msrb.mxu2 %v5491_v41  ;;  %2196 = vmatpush.bf16.msrb.mxu3 %v5875_v45  ;;  %v5206_v41 = vld [vmem:[#allocation5 + $0x260] sm:$0xf]  ;;  %v7369_v45 = vld [vmem:[#allocation5 + $0x58c] sm:$0xf0] }
  0xc9   :  { %v5207_v50 = vor.u32 %v7273_v42, %v5206_v41  ;;  %v7213_v41 = vld [vmem:[#allocation5 + $0xac] sm:$0xf0]  ;;  %v5350_v42 = vld [vmem:[#allocation5 + $0x380] sm:$0xf] }
  0xca   :  { %2155 = vmatpush.bf16.msrb.mxu0 %v5823_v51  ;;  %v5591_v51 = vor.u32 %v7369_v45, %v5590_v43  ;;  %v5019_v43 = vor.u32 %v7219_v35, %v5016_v36  ;;  %v5734_v45 = vld [vmem:[#allocation5 + $0x680] sm:$0xf]  ;;  %v7358_v35 = vld [vmem:[#allocation5 + $0x534] sm:$0xf0] }
  0xcb   :  { %2169 = vmatpush.bf16.msrb.mxu1 %v5059_v52  ;;  %v5975_v52 = vor.u32 %v7465_v47, %v5974_v46  ;;  %v7405_v46 = vld [vmem:[#allocation5 + $0x6ac] sm:$0xf0]  ;;  %v7207_v47 = vld [vmem:[#allocation5 + $0x84] sm:$0xf] }
  0xcc   :  { %2183 = vmatpush.bf16.msrb.mxu2 %v5443_v53  ;;  %2197 = vmatpush.bf16.msrb.mxu3 %v5827_v58  ;;  %v5158_v53 = vld [vmem:[#allocation5 + $0x200] sm:$0xf]  ;;  %v7357_v58 = vld [vmem:[#allocation5 + $0x52c] sm:$0xf0] }
  0xcd   :  { %v5159_v63 = vor.u32 %v7261_v54, %v5158_v53  ;;  %v5735_v53 = vor.u32 %v7405_v46, %v5734_v45  ;;  %v5302_v54 = vld [vmem:[#allocation5 + $0x320] sm:$0xf]  ;;  %v5880_v45 = vld [vmem:[#allocation5 + $0x7d0] sm:$0xf0]  ;;  %v5118_v46 = vld [vmem:[#allocation5 + $0x1a8] sm:$0xf] }
  0xce   :  { %2156 = vmatpush.bf16.msrb.mxu0 %v5775_v0  ;;  %v5543_v0 = vor.u32 %v7357_v58, %v5542_v55  ;;  %v7297_v55 = vld [vmem:[#allocation5 + $0x34c] sm:$0xf0]  ;;  %v4971_v58 = vor.u32 %v7207_v47, %v4968_v48  ;;  %v7250_v47 = vld [vmem:[#allocation5 + $0x1d4] sm:$0xf0]  ;;  %v5502_v48 = vld [vmem:[#allocation5 + $0x4a8] sm:$0xf] }
  0xcf   :  { %2170 = vmatpush.bf16.msrb.mxu1 %v5011_v1  ;;  %v5927_v1 = vor.u32 %v7453_v60, %v5926_v59  ;;  %v7393_v59 = vld [vmem:[#allocation5 + $0x64c] sm:$0xf0]  ;;  %v7195_v60 = vld [vmem:[#allocation5 + $0x24] sm:$0xf] }
  0xd0   :  { %2184 = vmatpush.bf16.msrb.mxu2 %v5395_v2  ;;  %2198 = vmatpush.bf16.msrb.mxu3 %v5779_v7  ;;  %v5110_v2 = vld [vmem:[#allocation5 + $0x1a0] sm:$0xf]  ;;  %v7345_v7 = vld [vmem:[#allocation5 + $0x4cc] sm:$0xf0]  ;;  %v4923_v10 = vor.u32 %v7195_v60, %v4920_v61  ;;  %v7238_v60 = vld [vmem:[#allocation5 + $0x174] sm:$0xf0] }
  0xd1   :  { %v5111_v12 = vor.u32 %v7249_v3, %v5110_v2  ;;  %v6024_v2 = vld [vmem:[#allocation5 + $0x8f0] sm:$0xf0]  ;;  %v5262_v3 = vld [vmem:[#allocation5 + $0x2c8] sm:$0xf] }
  0xd2   :  { %2157 = vmatpush.bf16.msrb.mxu0 %v5727_v13  ;;  %v5495_v13 = vor.u32 %v7345_v7, %v5494_v4  ;;  %v7286_v4 = vld [vmem:[#allocation5 + $0x2f4] sm:$0xf0]  ;;  %v5454_v61 = vld [vmem:[#allocation5 + $0x448] sm:$0xf] }
  0xd3   :  { %2171 = vmatpush.bf16.msrb.mxu1 %v4963_v16  ;;  %v7237_v16 = vld [vmem:[#allocation5 + $0x16c] sm:$0xf0] }
  0xd4   :  { %2185 = vmatpush.bf16.msrb.mxu2 %v5347_v17  ;;  %2199 = vmatpush.bf16.msrb.mxu3 %v5731_v22  ;;  %v5446_v17 = vld [vmem:[#allocation5 + $0x440] sm:$0xf]  ;;  %v7429_v22 = vld [vmem:[#allocation5 + $0x76c] sm:$0xf0]  ;;  %v5063_v25 = vor.u32 %v7237_v16, %v5062_v15  ;;  %v5592_v15 = vld [vmem:[#allocation5 + $0x590] sm:$0xf0] }
  0xd5   :  { %v5447_v26 = vor.u32 %v7333_v19, %v5446_v17  ;;  %v5831_v27 = vor.u32 %v7429_v22, %v5830_v21  ;;  %v7459_v16 = vld [vmem:[#allocation5 + $0x864] sm:$0xf]  ;;  %v5647_v17 = vor.u32 %v7382_v9, %v5646_v8  ;;  %v5214_v19 = vld [vmem:[#allocation5 + $0x268] sm:$0xf]  ;;  %v7274_v21 = vld [vmem:[#allocation5 + $0x294] sm:$0xf0] }
  0xd6   :  { %2158 = vmatpush.bf16.msrb.mxu0 %v5679_v29  ;;  %v7225_v29 = vld [vmem:[#allocation5 + $0x10c] sm:$0xf0]  ;;  %v5598_v22 = vld [vmem:[#allocation5 + $0x568] sm:$0xf]  ;;  %v5784_v9 = vld [vmem:[#allocation5 + $0x710] sm:$0xf0] }
  0xd7   :  { %2172 = vmatpush.bf16.msrb.mxu1 %v4915_v33  ;;  %v5782_v33 = vld [vmem:[#allocation5 + $0x6e0] sm:$0xf] }
  0xd8   :  { %2186 = vmatpush.bf16.msrb.mxu2 %v5299_v34  ;;  %2200 = vmatpush.bf16.msrb.mxu3 %v5683_v37  ;;  %v7417_v34 = vld [vmem:[#allocation5 + $0x70c] sm:$0xf0]  ;;  %v5015_v37 = vor.u32 %v7225_v29, %v5014_v28  ;;  %v5544_v28 = vld [vmem:[#allocation5 + $0x530] sm:$0xf0]  ;;  %v7447_v29 = vld [vmem:[#allocation5 + $0x804] sm:$0xf] }
  0xd9   :  { %2159 = vmatmul.bf16.vlgmr.msrb.gmra.mxu0 %v7998_v20 }
  0xda   :  { %2207 = vmatpush.bf16.msra.mxu0 %v5255_v38  ;;  %2173 = vmatmul.bf16.vlgmr.msrb.gmra.mxu1 %v7991_v57  ;;  %v5399_v38 = vor.u32 %v7321_v32, %v5398_v30  ;;  %v5599_v30 = vor.u32 %v7370_v23, %v5598_v22  ;;  %v5166_v32 = vld [vmem:[#allocation5 + $0x208] sm:$0xf]  ;;  %v7399_v22 = vld [vmem:[#allocation5 + $0x684] sm:$0xf] }
  0xdb   :  { %2221 = vmatpush.bf16.msra.mxu1 %v5639_v39  ;;  %2187 = vmatmul.bf16.vlgmr.msrb.gmra.mxu2 %v7994_v5  ;;  %v5783_v39 = vor.u32 %v7417_v34, %v5782_v33  ;;  %v7262_v33 = vld [vmem:[#allocation5 + $0x234] sm:$0xf0]  ;;  %v5550_v34 = vld [vmem:[#allocation5 + $0x508] sm:$0xf] }
  0xdc   :  { %2235 = vmatpush.bf16.msra.mxu2 %v6023_v40  ;;  %2249 = vmatpush.bf16.msra.mxu3 %v5259_v44  ;;  %v4966_v40 = vld [vmem:[#allocation5 + $0x80] sm:$0xf]  ;;  %v7309_v44 = vld [vmem:[#allocation5 + $0x3ac] sm:$0xf0] }
  0xdd   :  { %2201 = vmatmul.bf16.vlgmr.msrb.gmra.mxu3 %v7998_v20  ;;  %v4967_v49 = vor.u32 %v7213_v41, %v4966_v40  ;;  %v5167_v40 = vor.u32 %v7262_v33, %v5166_v32  ;;  %v7339_v41 = vld [vmem:[#allocation5 + $0x4a4] sm:$0xf] }
  0xde   :  { %2208 = vmatpush.bf16.msra.mxu0 %v5207_v50  ;;  %v4918_v50 = vld [vmem:[#allocation5 + $0x20] sm:$0xf] }
  0xdf   :  { %2222 = vmatpush.bf16.msra.mxu1 %v5591_v51  ;;  %v7201_v51 = vld [vmem:[#allocation5 + $0x4c] sm:$0xf0] }
  0xe0   :  { %2236 = vmatpush.bf16.msra.mxu2 %v5975_v52  ;;  %2250 = vmatpush.bf16.msra.mxu3 %v5211_v56  ;;  %v5351_v52 = vor.u32 %v7309_v44, %v5350_v42  ;;  %v5686_v56 = vld [vmem:[#allocation5 + $0x620] sm:$0xf]  ;;  %v5496_v42 = vld [vmem:[#allocation5 + $0x4d0] sm:$0xf0]  ;;  %v5551_v44 = vor.u32 %v7358_v35, %v5550_v34  ;;  %v7387_v34 = vld [vmem:[#allocation5 + $0x624] sm:$0xf] }
  0xe1   :  { %v5687_v7 = vor.u32 %v7393_v59, %v5686_v56  ;;  %v5070_v59 = vld [vmem:[#allocation5 + $0x148] sm:$0xf]  ;;  %v5688_v35 = vld [vmem:[#allocation5 + $0x650] sm:$0xf0] }
  0xe2   :  { %2209 = vmatpush.bf16.msra.mxu0 %v5159_v63  ;;  %v5640_v63 = vld [vmem:[#allocation5 + $0x5f0] sm:$0xf0] }
  0xe3   :  { %2223 = vmatpush.bf16.msra.mxu1 %v5543_v0  ;;  %v7471_v0 = vld [vmem:[#allocation5 + $0x8c4] sm:$0xf]  ;;  %v5643_v11 = vor.u32 %v7375_v62, %v5640_v63  ;;  %v7334_v62 = vld [vmem:[#allocation5 + $0x474] sm:$0xf0]  ;;  %v8029_v63 = vpop.f32.mrf.mxu2 }
  0xe4   :  { %2237 = vmatpush.bf16.msra.mxu2 %v5927_v1  ;;  %2251 = vmatpush.bf16.msra.mxu3 %v5163_v6  ;;  %v4919_v1 = vor.u32 %v7201_v51, %v4918_v50  ;;  %v5303_v6 = vor.u32 %v7297_v55, %v5302_v54  ;;  %v5499_v50 = vor.u32 %v7339_v41, %v5496_v42  ;;  %v5448_v54 = vld [vmem:[#allocation5 + $0x470] sm:$0xf0]  ;;  %v7423_v55 = vld [vmem:[#allocation5 + $0x744] sm:$0xf]  ;;  %v7202_v42 = vld [vmem:[#allocation5 + $0x54] sm:$0xf0] }
  0xe5   :  { %v5455_v8 = vor.u32 %v7334_v62, %v5454_v61 }
  0xe6   :  { %2210 = vmatpush.bf16.msra.mxu0 %v5111_v12  ;;  %v6027_v12 = vor.u32 %v7471_v0, %v6024_v2  ;;  %v8031_v0 = vpop.f32.mrf.mxu3 }
  0xe7   :  { %2224 = vmatpush.bf16.msra.mxu1 %v5495_v13  ;;  %v5263_v13 = vor.u32 %v7286_v4, %v5262_v3  ;;  %v5071_v3 = vor.u32 %v7238_v60, %v5070_v59  ;;  %v7315_v4 = vld [vmem:[#allocation5 + $0x3e4] sm:$0xf] }
  0xe8   :  { %2238 = vmatpush.bf16.msra.mxu2 %v5879_v14  ;;  %2252 = vmatpush.bf16.msra.mxu3 %v5115_v18  ;;  %v7363_v14 = vld [vmem:[#allocation5 + $0x564] sm:$0xf]  ;;  %v5976_v18 = vld [vmem:[#allocation5 + $0x890] sm:$0xf0] }
  0xe9   :  { %v5595_v24 = vor.u32 %v7363_v14, %v5592_v15  ;;  %v5406_v14 = vld [vmem:[#allocation5 + $0x3e8] sm:$0xf]  ;;  %v7322_v15 = vld [vmem:[#allocation5 + $0x414] sm:$0xf0] }
  0xea   :  { %2211 = vmatpush.bf16.msra.mxu0 %v5063_v25  ;;  %v5979_v25 = vor.u32 %v7459_v16, %v5976_v18  ;;  %v5407_v23 = vor.u32 %v7322_v15, %v5406_v14 }
  0xeb   :  { %2225 = vmatpush.bf16.msra.mxu1 %v5447_v26  ;;  %v5215_v26 = vor.u32 %v7274_v21, %v5214_v19  ;;  %v7303_v19 = vld [vmem:[#allocation5 + $0x384] sm:$0xf]  ;;  %v5352_v21 = vld [vmem:[#allocation5 + $0x3b0] sm:$0xf0] }
  0xec   :  { %2239 = vmatpush.bf16.msra.mxu2 %v5831_v27  ;;  %2253 = vmatpush.bf16.msra.mxu3 %v5067_v31  ;;  %v7351_v27 = vld [vmem:[#allocation5 + $0x504] sm:$0xf]  ;;  %v5928_v31 = vld [vmem:[#allocation5 + $0x830] sm:$0xf0] }
  0xed   :  { %v5547_v36 = vor.u32 %v7351_v27, %v5544_v28  ;;  %v5358_v27 = vld [vmem:[#allocation5 + $0x388] sm:$0xf]  ;;  %v7310_v28 = vld [vmem:[#allocation5 + $0x3b4] sm:$0xf0] }
  0xee   :  { %2212 = vmatpush.bf16.msra.mxu0 %v5015_v37  ;;  %v8025_v37 = vpop.f32.mrf.mxu0  ;;  %v5359_v41 = vor.u32 %v7310_v28, %v5358_v27  ;;  %v5936_v27 = vld [vmem:[#allocation5 + $0x838] sm:$0xf0] }
  0xef   :  { %2226 = vmatpush.bf16.msra.mxu1 %v5399_v38  ;;  %v8027_v38 = vpop.f32.mrf.mxu1 }
  0xf0   :  { %2240 = vmatpush.bf16.msra.mxu2 %v5783_v39  ;;  %2254 = vmatpush.bf16.msra.mxu3 %v5019_v43  ;;  %v5931_v39 = vor.u32 %v7447_v29, %v5928_v31  ;;  %v7435_v43 = vld [vmem:[#allocation5 + $0x7a4] sm:$0xf]  ;;  %v5355_v29 = vor.u32 %v7303_v19, %v5352_v21  ;;  %v5304_v31 = vld [vmem:[#allocation5 + $0x350] sm:$0xf0]  ;;  %v7454_v19 = vld [vmem:[#allocation5 + $0x834] sm:$0xf0] }
  0xf1   :  { %v5883_v51 = vor.u32 %v7435_v43, %v5880_v45  ;;  %v5310_v43 = vld [vmem:[#allocation5 + $0x328] sm:$0xf]  ;;  %v7256_v21 = vld [vmem:[#allocation5 + $0x20c] sm:$0xf] }
  0xf2   :  { %2213 = vmatpush.bf16.msra.mxu0 %v4967_v49  ;;  %v7346_v49 = vld [vmem:[#allocation5 + $0x4d4] sm:$0xf0]  ;;  %v6030_v45 = vld [vmem:[#allocation5 + $0x8c8] sm:$0xf] }
  0xf3   :  { %2227 = vmatpush.bf16.msra.mxu1 %v5351_v52  ;;  %v5119_v52 = vor.u32 %v7250_v47, %v5118_v46  ;;  %v5503_v56 = vor.u32 %v7346_v49, %v5502_v48  ;;  %v7478_v46 = vld [vmem:[#allocation5 + $0x8f4] sm:$0xf0]  ;;  %v7280_v47 = vld [vmem:[#allocation5 + $0x2cc] sm:$0xf]  ;;  %v5264_v49 = vld [vmem:[#allocation5 + $0x2f8] sm:$0xf0] }
  0xf4   :  { %2241 = vmatpush.bf16.msra.mxu2 %v5735_v53  ;;  %2255 = vmatpush.bf16.msra.mxu3 %v4971_v58  ;;  %v7327_v53 = vld [vmem:[#allocation5 + $0x444] sm:$0xf]  ;;  %v5832_v58 = vld [vmem:[#allocation5 + $0x770] sm:$0xf0]  ;;  %v6031_v60 = vor.u32 %v7478_v46, %v6030_v45  ;;  %v5267_v61 = vor.u32 %v7280_v47, %v5264_v49  ;;  %v5888_v45 = vld [vmem:[#allocation5 + $0x7d8] sm:$0xf0] }
  0xf5   :  { %v5835_v2 = vor.u32 %v7423_v55, %v5832_v58  ;;  %v6032_v58 = vld [vmem:[#allocation5 + $0x8f8] sm:$0xf0]  ;;  %v5838_v49 = vld [vmem:[#allocation5 + $0x748] sm:$0xf] }
  0xf6   :  { %2214 = vmatpush.bf16.msra.mxu0 %v4919_v1  ;;  %v5451_v1 = vor.u32 %v7327_v53, %v5448_v54  ;;  %v5691_v54 = vor.u32 %v7387_v34, %v5688_v35  ;;  %v7442_v34 = vld [vmem:[#allocation5 + $0x7d4] sm:$0xf0]  ;;  %v7244_v35 = vld [vmem:[#allocation5 + $0x1ac] sm:$0xf] }
  0xf7   :  { %2228 = vmatpush.bf16.msra.mxu1 %v5303_v6  ;;  %v5400_v6 = vld [vmem:[#allocation5 + $0x410] sm:$0xf0] }
  0xf8   :  { %2242 = vmatpush.bf16.msra.mxu2 %v5687_v7  ;;  %2256 = vmatpush.bf16.msra.mxu3 %v4923_v10  ;;  %v7411_v7 = vld [vmem:[#allocation5 + $0x6e4] sm:$0xf]  ;;  %v5022_v10 = vld [vmem:[#allocation5 + $0xe8] sm:$0xf]  ;;  %v5403_v16 = vor.u32 %v7315_v4, %v5400_v6  ;;  %v5216_v6 = vld [vmem:[#allocation5 + $0x298] sm:$0xf0] }
  0xf9   :  { %2215 = vmatmul.bf16.vlgmr.msra.gmra.mxu0 %v7991_v57 }
  0xfa   :  { %2263 = vmatpush.bf16.msrb.mxu0 %v5643_v11  ;;  %2229 = vmatmul.bf16.vlgmr.msra.gmra.mxu1 %v7994_v5  ;;  %v7226_v11 = vld [vmem:[#allocation5 + $0x114] sm:$0xf0] }
  0xfb   :  { %2277 = vmatpush.bf16.msrb.mxu1 %v6027_v12  ;;  %2243 = vmatmul.bf16.vlgmr.msra.gmra.mxu2 %v7998_v20  ;;  %v8033_v12 = vpop.f32.mrf.mxu0  ;;  %v5023_v18 = vor.u32 %v7226_v11, %v5022_v10  ;;  %v5984_v10 = vld [vmem:[#allocation5 + $0x898] sm:$0xf0] }
  0xfc   :  { %2291 = vmatpush.bf16.msrb.mxu2 %v5263_v13  ;;  %2305 = vmatpush.bf16.msrb.mxu3 %v5647_v17  ;;  %v8035_v13 = vpop.f32.mrf.mxu1  ;;  %v5787_v17 = vor.u32 %v7411_v7, %v5784_v9  ;;  %v7364_v7 = vld [vmem:[#allocation5 + $0x56c] sm:$0xf] }
  0xfd   :  { %2257 = vmatmul.bf16.vlgmr.msra.gmra.mxu3 %v7991_v57  ;;  %v7460_v9 = vld [vmem:[#allocation5 + $0x86c] sm:$0xf] }
  0xfe   :  { %2264 = vmatpush.bf16.msrb.mxu0 %v5595_v24  ;;  %v5736_v24 = vld [vmem:[#allocation5 + $0x6b0] sm:$0xf0] }
  0xff   :  { %2278 = vmatpush.bf16.msrb.mxu1 %v5979_v25  ;;  %v4974_v25 = vld [vmem:[#allocation5 + $0x88] sm:$0xf]  ;;  %v5739_v32 = vor.u32 %v7399_v22, %v5736_v24  ;;  %v5987_v22 = vor.u32 %v7460_v9, %v5984_v10  ;;  %v7352_v24 = vld [vmem:[#allocation5 + $0x50c] sm:$0xf] }
 0x100   :  { %2292 = vmatpush.bf16.msrb.mxu2 %v5215_v26  ;;  %2306 = vmatpush.bf16.msrb.mxu3 %v5599_v30  ;;  %v7214_v26 = vld [vmem:[#allocation5 + $0xb4] sm:$0xf0]  ;;  %v7291_v30 = vld [vmem:[#allocation5 + $0x324] sm:$0xf]  ;;  %v7220_v9 = vld [vmem:[#allocation5 + $0xec] sm:$0xf] }
 0x101   :  { %v4975_v33 = vor.u32 %v7214_v26, %v4974_v25  ;;  %v5307_v48 = vor.u32 %v7291_v30, %v5304_v31  ;;  %v5552_v25 = vld [vmem:[#allocation5 + $0x538] sm:$0xf0]  ;;  %v7448_v26 = vld [vmem:[#allocation5 + $0x80c] sm:$0xf] }
 0x102   :  { %2265 = vmatpush.bf16.msrb.mxu0 %v5547_v36  ;;  %v4926_v36 = vld [vmem:[#allocation5 + $0x28] sm:$0xf] }
 0x103   :  { %2279 = vmatpush.bf16.msrb.mxu1 %v5931_v39  ;;  %v8037_v39 = vpop.f32.mrf.mxu2  ;;  %v4927_v55 = vor.u32 %v7202_v42, %v4926_v36  ;;  %v5939_v36 = vor.u32 %v7448_v26, %v5936_v27  ;;  %v7340_v42 = vld [vmem:[#allocation5 + $0x4ac] sm:$0xf] }
 0x104   :  { %2293 = vmatpush.bf16.msrb.mxu2 %v5167_v40  ;;  %2307 = vmatpush.bf16.msrb.mxu3 %v5551_v44  ;;  %v8039_v40 = vpop.f32.mrf.mxu3  ;;  %v7298_v44 = vld [vmem:[#allocation5 + $0x354] sm:$0xf0]  ;;  %v8043_v53 = vpop.f32.mrf.mxu1  ;;  %v7208_v26 = vld [vmem:[#allocation5 + $0x8c] sm:$0xf] }
 0x105   :  { %v5311_v59 = vor.u32 %v7298_v44, %v5310_v43  ;;  %v5504_v43 = vld [vmem:[#allocation5 + $0x4d8] sm:$0xf0]  ;;  %v7436_v44 = vld [vmem:[#allocation5 + $0x7ac] sm:$0xf] }
 0x106   :  { %2266 = vmatpush.bf16.msrb.mxu0 %v5499_v50  ;;  %v7376_v50 = vld [vmem:[#allocation5 + $0x5cc] sm:$0xf] }
 0x107   :  { %2280 = vmatpush.bf16.msrb.mxu1 %v5883_v51  ;;  %v5648_v51 = vld [vmem:[#allocation5 + $0x5f8] sm:$0xf0] }
 0x108   :  { %2294 = vmatpush.bf16.msrb.mxu2 %v5119_v52  ;;  %2308 = vmatpush.bf16.msrb.mxu3 %v5503_v56  ;;  %v8041_v52 = vpop.f32.mrf.mxu0  ;;  %v7472_v56 = vld [vmem:[#allocation5 + $0x8cc] sm:$0xf]  ;;  %v5651_v62 = vor.u32 %v7376_v50, %v5648_v51  ;;  %v7430_v50 = vld [vmem:[#allocation5 + $0x774] sm:$0xf0] }
 0x109   :  { %v6035_v4 = vor.u32 %v7472_v56, %v6032_v58  ;;  %v7232_v51 = vld [vmem:[#allocation5 + $0x14c] sm:$0xf]  ;;  %v5891_v56 = vor.u32 %v7436_v44, %v5888_v45  ;;  %v5072_v58 = vld [vmem:[#allocation5 + $0x178] sm:$0xf0] }
 0x10a   :  { %2267 = vmatpush.bf16.msrb.mxu0 %v5451_v1  ;;  %v5982_v1 = vld [vmem:[#allocation5 + $0x868] sm:$0xf] }
 0x10b   :  { %2281 = vmatpush.bf16.msrb.mxu1 %v5835_v2  ;;  %v7466_v2 = vld [vmem:[#allocation5 + $0x894] sm:$0xf0]  ;;  %v8045_v11 = vpop.f32.mrf.mxu2 }
 0x10c   :  { %2295 = vmatpush.bf16.msrb.mxu2 %v5071_v3  ;;  %2309 = vmatpush.bf16.msrb.mxu3 %v5455_v8  ;;  %v7268_v3 = vld [vmem:[#allocation5 + $0x26c] sm:$0xf]  ;;  %v5600_v8 = vld [vmem:[#allocation5 + $0x598] sm:$0xf0]  ;;  %v8047_v14 = vpop.f32.mrf.mxu3  ;;  %v5983_v15 = vor.u32 %v7466_v2, %v5982_v1  ;;  %v8055_v30 = vpop.f32.mrf.mxu1  ;;  %v5839_v1 = vor.u32 %v7430_v50, %v5838_v49 }
 0x10d   :  { %v5312_v50 = vld [vmem:[#allocation5 + $0x358] sm:$0xf0] }
 0x10e   :  { %2268 = vmatpush.bf16.msrb.mxu0 %v5403_v16  ;;  %v5219_v16 = vor.u32 %v7268_v3, %v5216_v6 }
 0x10f   :  { %2282 = vmatpush.bf16.msrb.mxu1 %v5787_v17  ;;  %v5603_v17 = vor.u32 %v7364_v7, %v5600_v8  ;;  %v5790_v7 = vld [vmem:[#allocation5 + $0x6e8] sm:$0xf]  ;;  %v7418_v8 = vld [vmem:[#allocation5 + $0x714] sm:$0xf0] }
 0x110   :  { %2296 = vmatpush.bf16.msrb.mxu2 %v5023_v18  ;;  %2310 = vmatpush.bf16.msrb.mxu3 %v5407_v23  ;;  %v5934_v18 = vld [vmem:[#allocation5 + $0x808] sm:$0xf]  ;;  %v5168_v23 = vld [vmem:[#allocation5 + $0x238] sm:$0xf0] }
 0x111   :  { %v5935_v28 = vor.u32 %v7454_v19, %v5934_v18  ;;  %v5171_v31 = vor.u32 %v7256_v21, %v5168_v23  ;;  %v7412_v18 = vld [vmem:[#allocation5 + $0x6ec] sm:$0xf]  ;;  %v5792_v19 = vld [vmem:[#allocation5 + $0x718] sm:$0xf0]  ;;  %v5791_v21 = vor.u32 %v7418_v8, %v5790_v7  ;;  %v7549_v7 = vld [vmem:[#allocation8 + $0x230] sm:$0xf0] }
 0x112   :  { %2269 = vmatpush.bf16.msrb.mxu0 %v5355_v29  ;;  %v8053_v29 = vpop.f32.mrf.mxu0 }
 0x113   :  { %2283 = vmatpush.bf16.msrb.mxu1 %v5739_v32  ;;  %v5555_v32 = vor.u32 %v7352_v24, %v5552_v25  ;;  %v5742_v24 = vld [vmem:[#allocation5 + $0x688] sm:$0xf]  ;;  %v7406_v25 = vld [vmem:[#allocation5 + $0x6b4] sm:$0xf0] }
 0x114   :  { %2297 = vmatpush.bf16.msrb.mxu2 %v4975_v33  ;;  %2311 = vmatpush.bf16.msrb.mxu3 %v5359_v41  ;;  %v5886_v33 = vld [vmem:[#allocation5 + $0x7a8] sm:$0xf]  ;;  %v5120_v41 = vld [vmem:[#allocation5 + $0x1d8] sm:$0xf0]  ;;  %v8063_v3 = vpop.f32.mrf.mxu1 }
 0x115   :  { %v5887_v46 = vor.u32 %v7442_v34, %v5886_v33  ;;  %v5123_v47 = vor.u32 %v7244_v35, %v5120_v41  ;;  %v7304_v33 = vld [vmem:[#allocation5 + $0x38c] sm:$0xf]  ;;  %v5360_v34 = vld [vmem:[#allocation5 + $0x3b8] sm:$0xf0]  ;;  %v5743_v41 = vor.u32 %v7406_v25, %v5742_v24 }
 0x116   :  { %2270 = vmatpush.bf16.msrb.mxu0 %v5307_v48  ;;  %v5507_v48 = vor.u32 %v7340_v42, %v5504_v43  ;;  %v7400_v35 = vld [vmem:[#allocation5 + $0x68c] sm:$0xf]  ;;  %v5694_v42 = vld [vmem:[#allocation5 + $0x628] sm:$0xf]  ;;  %v7394_v43 = vld [vmem:[#allocation5 + $0x654] sm:$0xf0]  ;;  %v5363_v45 = vor.u32 %v7304_v33, %v5360_v34 }
 0x117   :  { %2284 = vmatpush.bf16.msrb.mxu1 %v5691_v54  ;;  %v8057_v54 = vpop.f32.mrf.mxu2  ;;  %v7546_v33 = vld [vmem:[#allocation8 + $0x218] sm:$0xf0]  ;;  %v6398_v34 = vld [vmem:[#allocation8 + $0x2d0] sm:$0xf] }
 0x118   :  { %2298 = vmatpush.bf16.msrb.mxu2 %v4927_v55  ;;  %2312 = vmatpush.bf16.msrb.mxu3 %v5311_v59  ;;  %v8059_v55 = vpop.f32.mrf.mxu3  ;;  %v7328_v59 = vld [vmem:[#allocation5 + $0x44c] sm:$0xf] }
 0x119   :  { %2271 = vmatmul.bf16.vlgmr.msrb.gmra.mxu0 %v7994_v5 }
 0x11a   :  { %2319 = vmatpush.bf16.msra.mxu0 %v6031_v60  ;;  %2285 = vmatmul.bf16.vlgmr.msrb.gmra.mxu1 %v7998_v20  ;;  %v5456_v60 = vld [vmem:[#allocation5 + $0x478] sm:$0xf0]  ;;  %v8061_v2 = vpop.f32.mrf.mxu0 }
 0x11b   :  { %2333 = vmatpush.bf16.msra.mxu1 %v5267_v61  ;;  %2299 = vmatmul.bf16.vlgmr.msrb.gmra.mxu2 %v7991_v57  ;;  %v7424_v61 = vld [vmem:[#allocation5 + $0x74c] sm:$0xf]  ;;  %v5459_v6 = vor.u32 %v7328_v59, %v5456_v60  ;;  %v6122_v60 = vld [vmem:[#allocation8 + $0xa8] sm:$0xf] }
 0x11c   :  { %2347 = vmatpush.bf16.msra.mxu2 %v5651_v62  ;;  %2361 = vmatpush.bf16.msra.mxu3 %v6035_v4  ;;  %v5840_v62 = vld [vmem:[#allocation5 + $0x778] sm:$0xf0]  ;;  %v5075_v4 = vor.u32 %v7232_v51, %v5072_v58  ;;  %v7388_v51 = vld [vmem:[#allocation5 + $0x62c] sm:$0xf]  ;;  %v8071_v59 = vpop.f32.mrf.mxu1 }
 0x11d   :  { %2313 = vmatmul.bf16.vlgmr.msrb.gmra.mxu3 %v7994_v5  ;;  %v5843_v10 = vor.u32 %v7424_v61, %v5840_v62  ;;  %v7501_v61 = vld [vmem:[#allocation8 + $0xb0] sm:$0xf0]  ;;  %v6218_v62 = vld [vmem:[#allocation8 + $0x168] sm:$0xf] }
 0x11e   :  { %2320 = vmatpush.bf16.msra.mxu0 %v5983_v15  ;;  %v5024_v15 = vld [vmem:[#allocation5 + $0x118] sm:$0xf0] }
 0x11f   :  { %2334 = vmatpush.bf16.msra.mxu1 %v5219_v16  ;;  %v7316_v16 = vld [vmem:[#allocation5 + $0x3ec] sm:$0xf]  ;;  %v8065_v27 = vpop.f32.mrf.mxu2 }
 0x120   :  { %2348 = vmatpush.bf16.msra.mxu2 %v5603_v17  ;;  %2362 = vmatpush.bf16.msra.mxu3 %v5987_v22  ;;  %v5408_v17 = vld [vmem:[#allocation5 + $0x418] sm:$0xf0]  ;;  %v5027_v22 = vor.u32 %v7220_v9, %v5024_v15  ;;  %v7573_v15 = vld [vmem:[#allocation8 + $0x2f0] sm:$0xf0] }
 0x121   :  { %v5411_v23 = vor.u32 %v7316_v16, %v5408_v17  ;;  %v6123_v17 = vor.u32 %v7501_v61, %v6122_v60 }
 0x122   :  { %2321 = vmatpush.bf16.msra.mxu0 %v5935_v28  ;;  %v8067_v28 = vpop.f32.mrf.mxu3  ;;  %v8069_v58 = vpop.f32.mrf.mxu0 }
 0x123   :  { %2335 = vmatpush.bf16.msra.mxu1 %v5171_v31  ;;  %v5795_v31 = vor.u32 %v7412_v18, %v5792_v19 }
 0x124   :  { %2349 = vmatpush.bf16.msra.mxu2 %v5555_v32  ;;  %2363 = vmatpush.bf16.msra.mxu3 %v5939_v36  ;;  %v4976_v32 = vld [vmem:[#allocation5 + $0xb8] sm:$0xf0] }
 0x125   :  { %v5744_v36 = vld [vmem:[#allocation5 + $0x6b8] sm:$0xf0]  ;;  %v4979_v44 = vor.u32 %v7208_v26, %v4976_v32 }
 0x126   :  { %2322 = vmatpush.bf16.msra.mxu0 %v5887_v46  ;;  %v7196_v46 = vld [vmem:[#allocation5 + $0x2c] sm:$0xf]  ;;  %v5747_v49 = vor.u32 %v7400_v35, %v5744_v36  ;;  %v6302_v32 = vld [vmem:[#allocation8 + $0x210] sm:$0xf]  ;;  %v7570_v35 = vld [vmem:[#allocation8 + $0x2d8] sm:$0xf0] }
 0x127   :  { %2336 = vmatpush.bf16.msra.mxu1 %v5123_v47  ;;  %v4928_v47 = vld [vmem:[#allocation5 + $0x58] sm:$0xf0]  ;;  %v8073_v24 = vpop.f32.mrf.mxu2  ;;  %v8077_v36 = vld [vmem:[#allocation7] sm:$0xff] }
 0x128   :  { %2350 = vmatpush.bf16.msra.mxu2 %v5507_v48  ;;  %2364 = vmatpush.bf16.msra.mxu3 %v5891_v56  ;;  %v7292_v48 = vld [vmem:[#allocation5 + $0x32c] sm:$0xf]  ;;  %v5696_v56 = vld [vmem:[#allocation5 + $0x658] sm:$0xf0]  ;;  %v4931_v8 = vor.u32 %v7196_v46, %v4928_v47  ;;  %v6098_v46 = vld [vmem:[#allocation8 + $0x78] sm:$0xf] }
 0x129   :  { %v5315_v9 = vor.u32 %v7292_v48, %v5312_v50  ;;  %v5699_v16 = vor.u32 %v7388_v51, %v5696_v56  ;;  %v7495_v47 = vld [vmem:[#allocation8 + $0x80] sm:$0xf0]  ;;  %v6194_v48 = vld [vmem:[#allocation8 + $0x138] sm:$0xf]  ;;  %v391_v60 = vperm.slane %v8077_v36, 0  ;;  %v392_v61 = vperm.slane %v8077_v36, 1 }
 0x12a   :  { %2323 = vmatpush.bf16.msra.mxu0 %v5839_v1  ;;  %v5695_v1 = vor.u32 %v7394_v43, %v5694_v42  ;;  %v8075_v25 = vpop.f32.mrf.mxu3  ;;  %v8079_v42 = vpop.f32.mrf.mxu0  ;;  %v7519_v50 = vld [vmem:[#allocation8 + $0x140] sm:$0xf0]  ;;  %v6290_v51 = vld [vmem:[#allocation8 + $0x1f8] sm:$0xf] }
 0x12b   :  { %2337 = vmatpush.bf16.msra.mxu1 %v5075_v4  ;;  %v7525_v4 = vld [vmem:[#allocation8 + $0x170] sm:$0xf0]  ;;  %v8081_v43 = vpop.f32.mrf.mxu1  ;;  %v7543_v56 = vld [vmem:[#allocation8 + $0x200] sm:$0xf0] }
 0x12c   :  { %2351 = vmatpush.bf16.msra.mxu2 %v5459_v6  ;;  %2365 = vmatpush.bf16.msra.mxu3 %v5843_v10  ;;  %v6314_v6 = vld [vmem:[#allocation8 + $0x228] sm:$0xf]  ;;  %v6219_v18 = vor.u32 %v7525_v4, %v6218_v62  ;;  %v6386_v62 = vld [vmem:[#allocation8 + $0x2b8] sm:$0xf]  ;;  %v6099_v4 = vor.u32 %v7495_v47, %v6098_v46  ;;  %v7537_v46 = vld [vmem:[#allocation8 + $0x1d0] sm:$0xf0] }
 0x12d   :  { %v6410_v10 = vld [vmem:[#allocation8 + $0x2e8] sm:$0xf]  ;;  %v6315_v19 = vor.u32 %v7549_v7, %v6314_v6  ;;  %v6195_v6 = vor.u32 %v7519_v50, %v6194_v48  ;;  %v6291_v7 = vor.u32 %v7543_v56, %v6290_v51  ;;  %v7561_v51 = vld [vmem:[#allocation8 + $0x290] sm:$0xf0] }
 0x12e   :  { %2324 = vmatpush.bf16.msra.mxu0 %v5791_v21  ;;  %v6110_v21 = vld [vmem:[#allocation8 + $0x90] sm:$0xf]  ;;  %v6411_v26 = vor.u32 %v7573_v15, %v6410_v10  ;;  %v6182_v10 = vld [vmem:[#allocation8 + $0x120] sm:$0xf]  ;;  %v6362_v50 = vld [vmem:[#allocation8 + $0x288] sm:$0xf] }
 0x12f   :  { %2338 = vmatpush.bf16.msra.mxu1 %v5027_v22  ;;  %v7498_v22 = vld [vmem:[#allocation8 + $0x98] sm:$0xf0]  ;;  %v8089_v15 = vpop.f32.mrf.mxu2 }
 0x130   :  { %2352 = vmatpush.bf16.msra.mxu2 %v5411_v23  ;;  %2366 = vmatpush.bf16.msra.mxu3 %v5795_v31  ;;  %v6206_v23 = vld [vmem:[#allocation8 + $0x150] sm:$0xf]  ;;  %v7522_v31 = vld [vmem:[#allocation8 + $0x158] sm:$0xf0] }
 0x132   :  { %2325 = vmatpush.bf16.msra.mxu0 %v5743_v41  ;;  %v6111_v41 = vor.u32 %v7498_v22, %v6110_v21  ;;  %v1923_v21 = vadd.f32 %v8031_v0, %v392_v61  ;;  %v6374_v22 = vld [vmem:[#allocation8 + $0x2a0] sm:$0xf]  ;;  %v7513_v0 = vld [vmem:[#allocation8 + $0x110] sm:$0xf0]  ;;  %v8101_v48 = vpop.f32.mrf.mxu0 }
 0x133   :  { %2339 = vmatpush.bf16.msra.mxu1 %v4979_v44  ;;  %v6207_v44 = vor.u32 %v7522_v31, %v6206_v23  ;;  %v7564_v23 = vld [vmem:[#allocation8 + $0x2a8] sm:$0xf0]  ;;  %v393_v31 = vperm.slane %v8077_v36, 2 }
 0x134   :  { %2353 = vmatpush.bf16.msra.mxu2 %v5363_v45  ;;  %2367 = vmatpush.bf16.msra.mxu3 %v5747_v49  ;;  %v6303_v45 = vor.u32 %v7546_v33, %v6302_v32  ;;  %v6399_v49 = vor.u32 %v7570_v35, %v6398_v34  ;;  %v394_v32 = vperm.slane %v8077_v36, 3  ;;  %v1937_v56 = vadd.f32 %v8041_v52, %v1923_v21 }
 0x135   :  { %v6363_v52 = vor.u32 %v7561_v51, %v6362_v50 }
 0x136   :  { %2326 = vmatpush.bf16.msra.mxu0 %v5695_v1  ;;  %v7567_v1 = vld [vmem:[#allocation8 + $0x2c0] sm:$0xf0] }
 0x137   :  { %2340 = vmatpush.bf16.msra.mxu1 %v4931_v8  ;;  %v6086_v8 = vld [vmem:[#allocation8 + $0x60] sm:$0xf] }
 0x138   :  { %2354 = vmatpush.bf16.msra.mxu2 %v5315_v9  ;;  %2368 = vmatpush.bf16.msra.mxu3 %v5699_v16  ;;  %v7492_v9 = vld [vmem:[#allocation8 + $0x68] sm:$0xf0]  ;;  %v6387_v16 = vor.u32 %v7567_v1, %v6386_v62  ;;  %v1967_v1 = vadd.f32 %v8057_v54, %v393_v31 }
 0x139   :  { %2327 = vmatmul.bf16.vlgmr.msra.gmra.mxu0 %v7998_v20  ;;  %v6087_v33 = vor.u32 %v7492_v9, %v6086_v8  ;;  %v2007_v8 = vadd.f32 %v8063_v3, %v394_v32  ;;  %v2009_v9 = vadd.f32 %v8071_v59, %v394_v32  ;;  %v7507_v32 = vld [vmem:[#allocation8 + $0xe0] sm:$0xf0] }
 0x13a   :  { %4339 = vmatpush.bf16.msrb.mxu0 %v6123_v17  ;;  %2341 = vmatmul.bf16.vlgmr.msra.gmra.mxu1 %v7991_v57  ;;  %v8091_v57 = vpop.f32.mrf.mxu3  ;;  %v6278_v17 = vld [vmem:[#allocation8 + $0x1e0] sm:$0xf]  ;;  %v1981_v21 = vadd.f32 %v8059_v55, %v1967_v1 }
 0x13b   :  { %4353 = vmatpush.bf16.msrb.mxu1 %v6219_v18  ;;  %2355 = vmatmul.bf16.vlgmr.msra.gmra.mxu2 %v7994_v5  ;;  %v7516_v5 = vld [vmem:[#allocation8 + $0x128] sm:$0xf0] }
 0x13c   :  { %4367 = vmatpush.bf16.msrb.mxu2 %v6315_v19  ;;  %4381 = vmatpush.bf16.msrb.mxu3 %v6411_v26  ;;  %v7540_v18 = vld [vmem:[#allocation8 + $0x1e8] sm:$0xf0]  ;;  %v1883_v19 = vadd.f32 %v8033_v12, %v391_v60  ;;  %v1925_v26 = vadd.f32 %v8039_v40, %v392_v61  ;;  %v6183_v34 = vor.u32 %v7516_v5, %v6182_v10  ;;  %v6254_v10 = vld [vmem:[#allocation8 + $0x1b0] sm:$0xf] }
 0x13d   :  { %2369 = vmatmul.bf16.vlgmr.msra.gmra.mxu3 %v7998_v20  ;;  %v1881_v20 = vadd.f32 %v8025_v37, %v391_v60  ;;  %v6279_v35 = vor.u32 %v7540_v18, %v6278_v17  ;;  %v7489_v37 = vld [vmem:[#allocation8 + $0x50] sm:$0xf0]  ;;  %v6375_v12 = vor.u32 %v7564_v23, %v6374_v22  ;;  %v1965_v61 = vadd.f32 %v8045_v11, %v393_v31  ;;  %v7534_v11 = vld [vmem:[#allocation8 + $0x1b8] sm:$0xf0]  ;;  %v6350_v5 = vld [vmem:[#allocation8 + $0x270] sm:$0xf] }
 0x13e   :  { %4340 = vmatpush.bf16.msrb.mxu0 %v6111_v41  ;;  %v6074_v41 = vld [vmem:[#allocation8 + $0x48] sm:$0xf]  ;;  %v1897_v47 = vadd.f32 %v8035_v13, %v1883_v19  ;;  %v1939_v60 = vadd.f32 %v8053_v29, %v1925_v26  ;;  %v7510_v29 = vld [vmem:[#allocation8 + $0xf8] sm:$0xf0]  ;;  %v8118_v18 = vadd.f32 %v8043_v53, %v1937_v56  ;;  %v6255_v22 = vor.u32 %v7534_v11, %v6254_v10  ;;  %v6050_v23 = vld [vmem:[#allocation8 + $0x18] sm:$0xf] }
 0x13f   :  { %4354 = vmatpush.bf16.msrb.mxu1 %v6207_v44  ;;  %v6170_v44 = vld [vmem:[#allocation8 + $0x108] sm:$0xf]  ;;  %v1895_v40 = vadd.f32 %v8027_v38, %v1881_v20  ;;  %v6075_v62 = vor.u32 %v7489_v37, %v6074_v41  ;;  %v7558_v17 = vld [vmem:[#allocation8 + $0x278] sm:$0xf0]  ;;  %v1979_v59 = vadd.f32 %v8047_v14, %v1965_v61  ;;  %v8124_v20 = vpop.f32.mrf.mxu2  ;;  %v7483_v53 = vld [vmem:[#allocation8 + $0x20] sm:$0xf0]  ;;  %v2023_v31 = vadd.f32 %v8073_v24, %v2009_v9 }
 0x140   :  { %4368 = vmatpush.bf16.msrb.mxu2 %v6303_v45  ;;  %4382 = vmatpush.bf16.msrb.mxu3 %v6399_v49  ;;  %v6266_v45 = vld [vmem:[#allocation8 + $0x1c8] sm:$0xf]  ;;  %v8103_v49 = vpop.f32.mrf.mxu1  ;;  %v6171_v38 = vor.u32 %v7513_v0, %v6170_v44  ;;  %v8115_v54 = vadd.f32 %v8037_v39, %v1897_v47  ;;  %v8121_v3 = vadd.f32 %v8055_v30, %v1939_v60  ;;  %v6146_v26 = vld [vmem:[#allocation8 + $0xd8] sm:$0xf]  ;;  %v7555_v37 = vld [vmem:[#allocation8 + $0x260] sm:$0xf0] }
 0x141   :  { %v6267_v13 = vor.u32 %v7537_v46, %v6266_v45  ;;  %v2021_v30 = vadd.f32 %v8065_v27, %v2007_v8  ;;  %v6351_v14 = vor.u32 %v7558_v17, %v6350_v5  ;;  %v6338_v41 = vld [vmem:[#allocation8 + $0x258] sm:$0xf]  ;;  %v2376_v44 = vmax.f32 %v8118_v18, 0.0  ;;  %v6038_v24 = vld [vmem:[#allocation8] sm:$0xf] }
 0x142   :  { %4341 = vmatpush.bf16.msrb.mxu0 %v6099_v4  ;;  %v6062_v4 = vld [vmem:[#allocation8 + $0x30] sm:$0xf]  ;;  %v8126_v19 = vpop.f32.mrf.mxu3  ;;  %v2387_v55 = vmax.f32 %v8115_v54, 0.0  ;;  %v1993_v0 = vadd.f32 %v8061_v2, %v1979_v59  ;;  %v6051_v27 = vor.u32 %v7483_v53, %v6050_v23  ;;  %v7480_v45 = vld [vmem:[#allocation8 + $0x8] sm:$0xf0]  ;;  %v1995_v46 = vadd.f32 %v8069_v58, %v1981_v21 }
 0x143   :  { %4355 = vmatpush.bf16.msrb.mxu1 %v6195_v6  ;;  %v7486_v6 = vld [vmem:[#allocation8 + $0x38] sm:$0xf0]  ;;  %v6147_v50 = vor.u32 %v7507_v32, %v6146_v26  ;;  %v6134_v56 = vld [vmem:[#allocation8 + $0xc0] sm:$0xf]  ;;  %v7504_v60 = vld [vmem:[#allocation8 + $0xc8] sm:$0xf0]  ;;  %v2037_v2 = vadd.f32 %v8075_v25, %v2023_v31  ;;  %v6339_v1 = vor.u32 %v7555_v37, %v6338_v41  ;;  %v6039_v8 = vor.u32 %v7480_v45, %v6038_v24 }
 0x144   :  { %4369 = vmatpush.bf16.msrb.mxu2 %v6291_v7  ;;  %4383 = vmatpush.bf16.msrb.mxu3 %v6387_v16  ;;  %v6158_v7 = vld [vmem:[#allocation8 + $0xf0] sm:$0xf]  ;;  %v8112_v16 = vadd.f32 %v8029_v63, %v1895_v40  ;;  %v6063_v63 = vor.u32 %v7486_v6, %v6062_v4  ;;  %v8137_v40 = vpop.f32.mrf.mxu0  ;;  %v6230_v61 = vld [vmem:[#allocation8 + $0x180] sm:$0xf]  ;;  %v7552_v58 = vld [vmem:[#allocation8 + $0x248] sm:$0xf0]  ;;  %v6135_v25 = vor.u32 %v7504_v60, %v6134_v56 }
 0x145   :  { %v6159_v39 = vor.u32 %v7510_v29, %v6158_v7  ;;  %v6506_v4 = vld [vmem:[#allocation8 + $0x3a8] sm:$0xf]  ;;  %v7597_v6 = vld [vmem:[#allocation8 + $0x3b0] sm:$0xf0]  ;;  %v2390_v17 = vmax.f32 %v2037_v2, 0.0  ;;  %v395_v60 = vperm.slane %v8077_v36, 4 }
 0x146   :  { %4342 = vmatpush.bf16.msrb.mxu0 %v6087_v33  ;;  %v6242_v33 = vld [vmem:[#allocation8 + $0x198] sm:$0xf]  ;;  %v6602_v7 = vld [vmem:[#allocation8 + $0x468] sm:$0xf]  ;;  %v7621_v9 = vld [vmem:[#allocation8 + $0x470] sm:$0xf0] }
 0x147   :  { %4356 = vmatpush.bf16.msrb.mxu1 %v6183_v34  ;;  %v7531_v34 = vld [vmem:[#allocation8 + $0x1a0] sm:$0xf0]  ;;  %v7645_v29 = vld [vmem:[#allocation8 + $0x530] sm:$0xf0]  ;;  %v8143_v10 = vpop.f32.mrf.mxu2  ;;  %v6794_v59 = vld [vmem:[#allocation8 + $0x5e8] sm:$0xf]  ;;  %v6603_v21 = vor.u32 %v7621_v9, %v6602_v7 }
 0x148   :  { %4370 = vmatpush.bf16.msrb.mxu2 %v6279_v35  ;;  %4384 = vmatpush.bf16.msrb.mxu3 %v6375_v12  ;;  %v2375_v35 = vmax.f32 %v8112_v16, 0.0  ;;  %v2388_v12 = vmax.f32 %v8121_v3, 0.0  ;;  %v8139_v47 = vpop.f32.mrf.mxu1  ;;  %v6243_v51 = vor.u32 %v7531_v34, %v6242_v33  ;;  %v2389_v16 = vmax.f32 %v1995_v46, 0.0  ;;  %v7594_v23 = vld [vmem:[#allocation8 + $0x398] sm:$0xf0] }
 0x149   :  { %v6507_v3 = vor.u32 %v7597_v6, %v6506_v4  ;;  %v6590_v53 = vld [vmem:[#allocation8 + $0x450] sm:$0xf]  ;;  %v7618_v26 = vld [vmem:[#allocation8 + $0x458] sm:$0xf0]  ;;  %v6578_v46 = vld [vmem:[#allocation8 + $0x438] sm:$0xf] }
 0x14a   :  { %4343 = vmatpush.bf16.msrb.mxu0 %v6075_v62  ;;  %v2035_v62 = vadd.f32 %v8067_v28, %v2021_v30  ;;  %v8145_v11 = vpop.f32.mrf.mxu3  ;;  %v2377_v28 = vmax.f32 %v1993_v0, 0.0  ;;  %v6686_v30 = vld [vmem:[#allocation8 + $0x510] sm:$0xf]  ;;  %v7642_v31 = vld [vmem:[#allocation8 + $0x518] sm:$0xf0]  ;;  %v8149_v32 = vpack.c.bf16 %v2388_v12, %v2376_v44 }
 0x14b   :  { %4357 = vmatpush.bf16.msrb.mxu1 %v6171_v38  ;;  %v7528_v38 = vld [vmem:[#allocation8 + $0x188] sm:$0xf0]  ;;  %v6782_v37 = vld [vmem:[#allocation8 + $0x5d0] sm:$0xf]  ;;  %v7666_v0 = vld [vmem:[#allocation8 + $0x5d8] sm:$0xf0] }
 0x14c   :  { %4371 = vmatpush.bf16.msrb.mxu2 %v6267_v13  ;;  %4385 = vmatpush.bf16.msrb.mxu3 %v6363_v52  ;;  %v6326_v13 = vld [vmem:[#allocation8 + $0x240] sm:$0xf]  ;;  %v6698_v52 = vld [vmem:[#allocation8 + $0x528] sm:$0xf]  ;;  %v6231_v54 = vor.u32 %v7528_v38, %v6230_v61  ;;  %v2378_v5 = vmax.f32 %v2035_v62, 0.0  ;;  %v8151_v33 = vpack.c.bf16 %v2389_v16, %v2377_v28  ;;  %v8155_v24 = vpop.f32.mrf.mxu0  ;;  %v6783_v61 = vor.u32 %v7666_v0, %v6782_v37 }
 0x14d   :  { %v6327_v18 = vor.u32 %v7552_v58, %v6326_v13  ;;  %v6482_v44 = vld [vmem:[#allocation8 + $0x378] sm:$0xf]  ;;  %v7591_v12 = vld [vmem:[#allocation8 + $0x380] sm:$0xf0]  ;;  %v6470_v6 = vld [vmem:[#allocation8 + $0x360] sm:$0xf]  ;;  %v2049_v28 = vadd.f32 %v8079_v42, %v395_v60  ;;  %v2051_v16 = vadd.f32 %v8101_v48, %v395_v60 }
 0x14e   :  { %4344 = vmatpush.bf16.msrb.mxu0 %v6063_v63  ;;  %v7669_v63 = vld [vmem:[#allocation8 + $0x5f0] sm:$0xf0]  ;;  %v7639_v56 = vld [vmem:[#allocation8 + $0x500] sm:$0xf0]  ;;  %v6483_v62 = vor.u32 %v7591_v12, %v6482_v44  ;;  %v6770_v38 = vld [vmem:[#allocation8 + $0x5b8] sm:$0xf] }
 0x14f   :  { %4358 = vmatpush.bf16.msrb.mxu1 %v6159_v39  ;;  %v6699_v39 = vor.u32 %v7645_v29, %v6698_v52  ;;  %v6795_v34 = vor.u32 %v7669_v63, %v6794_v59  ;;  %v2134_v2 = vpop.f32.mrf.mxu2  ;;  %v7663_v13 = vld [vmem:[#allocation8 + $0x5c0] sm:$0xf0]  ;;  %v7588_v7 = vld [vmem:[#allocation8 + $0x368] sm:$0xf0]  ;;  %v6662_v52 = vld [vmem:[#allocation8 + $0x4e0] sm:$0xf] }
 0x150   :  { %4372 = vmatpush.bf16.msrb.mxu2 %v6255_v22  ;;  %4386 = vmatpush.bf16.msrb.mxu3 %v6351_v14  ;;  %v6494_v22 = vld [vmem:[#allocation8 + $0x390] sm:$0xf]  ;;  %v8147_v14 = vpack.c.bf16 %v2387_v55, %v2375_v35  ;;  %v8157_v45 = vpop.f32.mrf.mxu1  ;;  %v6591_v35 = vor.u32 %v7618_v26, %v6590_v53  ;;  %v6687_v55 = vor.u32 %v7642_v31, %v6686_v30  ;;  %v7612_v9 = vld [vmem:[#allocation8 + $0x428] sm:$0xf0]  ;;  %v6458_v42 = vld [vmem:[#allocation8 + $0x348] sm:$0xf] }
 0x151   :  { %v6495_v41 = vor.u32 %v7594_v23, %v6494_v22  ;;  %v7636_v29 = vld [vmem:[#allocation8 + $0x4e8] sm:$0xf0]  ;;  %v7585_v22 = vld [vmem:[#allocation8 + $0x350] sm:$0xf0]  ;;  %v6554_v48 = vld [vmem:[#allocation8 + $0x408] sm:$0xf]  ;;  %v2063_v30 = vadd.f32 %v8081_v43, %v2049_v28  ;;  %v2065_v31 = vadd.f32 %v8103_v49, %v2051_v16 }
 0x152   :  { %4345 = vmatpush.bf16.msrb.mxu0 %v6051_v27  ;;  %v8153_v27 = vpack.c.bf16 %v2390_v17, %v2378_v5  ;;  %v6771_v5 = vor.u32 %v7663_v13, %v6770_v38  ;;  %v6471_v17 = vor.u32 %v7588_v7, %v6470_v6  ;;  %v7609_v23 = vld [vmem:[#allocation8 + $0x410] sm:$0xf0]  ;;  %v6650_v53 = vld [vmem:[#allocation8 + $0x4c8] sm:$0xf]  ;;  %v6459_v0 = vor.u32 %v7585_v22, %v6458_v42  ;;  %v7582_v43 = vld [vmem:[#allocation8 + $0x338] sm:$0xf0] }
 0x153   :  { %4359 = vmatpush.bf16.msrb.mxu1 %v6147_v50  ;;  %v7615_v50 = vld [vmem:[#allocation8 + $0x440] sm:$0xf0]  ;;  %v7633_v26 = vld [vmem:[#allocation8 + $0x4d0] sm:$0xf0]  ;;  %v6555_v12 = vor.u32 %v7609_v23, %v6554_v48  ;;  %v8179_v38 = vadd.f32 %v8089_v15, %v2063_v30  ;;  %v8183_v13 = vadd.f32 %v8124_v20, %v2065_v31 }
 0x154   :  { %4373 = vmatpush.bf16.msrb.mxu2 %v6243_v51  ;;  %4387 = vmatpush.bf16.msrb.mxu3 %v6339_v1  ;;  %v6674_v51 = vld [vmem:[#allocation8 + $0x4f8] sm:$0xf]  ;;  %v8164_v1 = vpop.f32.mrf.mxu3  ;;  %v6579_v58 = vor.u32 %v7615_v50, %v6578_v46  ;;  %v6651_v46 = vor.u32 %v7633_v26, %v6650_v53  ;;  %v6446_v50 = vld [vmem:[#allocation8 + $0x330] sm:$0xf]  ;;  %v7603_v16 = vld [vmem:[#allocation8 + $0x3e0] sm:$0xf0] }
 0x155   :  { %v6675_v4 = vor.u32 %v7639_v56, %v6674_v51  ;;  %v6542_v51 = vld [vmem:[#allocation8 + $0x3f0] sm:$0xf]  ;;  %v6447_v6 = vor.u32 %v7582_v43, %v6446_v50  ;;  %v7651_v42 = vld [vmem:[#allocation8 + $0x560] sm:$0xf0]  ;;  %v6518_v53 = vld [vmem:[#allocation8 + $0x3c0] sm:$0xf] }
 0x156   :  { %4346 = vmatpush.bf16.msrb.mxu0 %v6039_v8  ;;  %v6566_v8 = vld [vmem:[#allocation8 + $0x420] sm:$0xf]  ;;  %v8170_v59 = vpop.f32.mrf.mxu0  ;;  %v7600_v26 = vld [vmem:[#allocation8 + $0x3c8] sm:$0xf0] }
 0x157   :  { %4360 = vmatpush.bf16.msrb.mxu1 %v6135_v25  ;;  %v396_v25 = vperm.slane %v8077_v36, 5  ;;  %v6567_v63 = vor.u32 %v7612_v9, %v6566_v8 }
 0x158   :  { %4374 = vmatpush.bf16.msrb.mxu2 %v6231_v54  ;;  %4388 = vmatpush.bf16.msrb.mxu3 %v6327_v18  ;;  %v397_v54 = vperm.slane %v8077_v36, 6  ;;  %v6758_v18 = vld [vmem:[#allocation8 + $0x5a0] sm:$0xf] }
 0x159   :  { %4347 = vmatmul.bf16.vlgmr.msrb.gmra.mxu0 %v8147_v14  ;;  %v2093_v44 = vadd.f32 %v8126_v19, %v396_v25 }
 0x15a   :  { %4395 = vmatpush.bf16.msra.mxu0 %v6507_v3  ;;  %4361 = vmatmul.bf16.vlgmr.msrb.gmra.mxu1 %v8149_v32  ;;  %v7660_v3 = vld [vmem:[#allocation8 + $0x5a8] sm:$0xf0]  ;;  %v2133_v49 = vadd.f32 %v8143_v10, %v397_v54  ;;  %v6734_v10 = vld [vmem:[#allocation8 + $0x570] sm:$0xf] }
 0x15b   :  { %4409 = vmatpush.bf16.msra.mxu1 %v6603_v21  ;;  %4375 = vmatmul.bf16.vlgmr.msrb.gmra.mxu2 %v8151_v33  ;;  %v6663_v21 = vor.u32 %v7636_v29, %v6662_v52  ;;  %v6759_v37 = vor.u32 %v7660_v3, %v6758_v18  ;;  %v2107_v7 = vadd.f32 %v8155_v24, %v2093_v44  ;;  %v6434_v52 = vld [vmem:[#allocation8 + $0x318] sm:$0xf]  ;;  %v7579_v29 = vld [vmem:[#allocation8 + $0x320] sm:$0xf0]  ;;  %v2391_v24 = vmax.f32 %v8183_v13, 0.0 }
 0x15c   :  { %4423 = vmatpush.bf16.msra.mxu2 %v6699_v39  ;;  %4389 = vmatmul.bf16.vlgmr.msrb.gmra.mxu3 %v8153_v27  ;;  %v2174_v39 = vpop.f32.mrf.mxu1  ;;  %v2147_v20 = vadd.f32 %v8145_v11, %v2133_v49  ;;  %v6722_v11 = vld [vmem:[#allocation8 + $0x558] sm:$0xf]  ;;  %v7693_v44 = vld [vmem:[#allocation8 + $0x6b0] sm:$0xf0]  ;;  %v7082_v49 = vld [vmem:[#allocation8 + $0x828] sm:$0xf] }
 0x15d   :  { %4437 = vmatpush.bf16.msra.mxu3 %v6795_v34  ;;  %v2091_v34 = vadd.f32 %v8091_v57, %v396_v25  ;;  %v2135_v57 = vadd.f32 %v2134_v2, %v397_v54  ;;  %v7654_v2 = vld [vmem:[#allocation8 + $0x578] sm:$0xf0]  ;;  %v6626_v25 = vld [vmem:[#allocation8 + $0x498] sm:$0xf]  ;;  %v7627_v54 = vld [vmem:[#allocation8 + $0x4a0] sm:$0xf0]  ;;  %v2121_v22 = vadd.f32 %v8157_v45, %v2107_v7  ;;  %v6723_v43 = vor.u32 %v7651_v42, %v6722_v11 }
 0x15e   :  { %4396 = vmatpush.bf16.msra.mxu0 %v6495_v41  ;;  %v398_v41 = vperm.slane %v8077_v36, 7  ;;  %v2188_v56 = vpop.f32.mrf.mxu2  ;;  %v6638_v36 = vld [vmem:[#allocation8 + $0x4b0] sm:$0xf]  ;;  %v2162_v18 = vpop.f32.mrf.mxu0  ;;  %v6627_v23 = vor.u32 %v7627_v54, %v6626_v25  ;;  %v2161_v30 = vadd.f32 %v8170_v59, %v2147_v20  ;;  %v7714_v7 = vld [vmem:[#allocation8 + $0x758] sm:$0xf0] }
 0x15f   :  { %4410 = vmatpush.bf16.msra.mxu1 %v6591_v35  ;;  %v6746_v35 = vld [vmem:[#allocation8 + $0x588] sm:$0xf]  ;;  %v2105_v19 = vadd.f32 %v8137_v40, %v2091_v34  ;;  %v6530_v40 = vld [vmem:[#allocation8 + $0x3d8] sm:$0xf]  ;;  %v2149_v28 = vadd.f32 %v8164_v1, %v2135_v57  ;;  %v6422_v1 = vld [vmem:[#allocation8 + $0x300] sm:$0xf] }
 0x160   :  { %4424 = vmatpush.bf16.msra.mxu2 %v6687_v55  ;;  %v7657_v55 = vld [vmem:[#allocation8 + $0x590] sm:$0xf0]  ;;  %v2202_v60 = vpop.f32.mrf.mxu3  ;;  %v6531_v48 = vor.u32 %v7603_v16, %v6530_v40  ;;  %v2392_v59 = vmax.f32 %v2121_v22, 0.0  ;;  %v7735_v11 = vld [vmem:[#allocation8 + $0x800] sm:$0xf0] }
 0x161   :  { %4438 = vmatpush.bf16.msra.mxu3 %v6783_v61  ;;  %v7606_v61 = vld [vmem:[#allocation8 + $0x3f8] sm:$0xf0]  ;;  %v2163_v31 = vadd.f32 %v2162_v18, %v2149_v28  ;;  %v7741_v57 = vld [vmem:[#allocation8 + $0x830] sm:$0xf0]  ;;  %v7687_v18 = vld [vmem:[#allocation8 + $0x680] sm:$0xf0] }
 0x162   :  { %4397 = vmatpush.bf16.msra.mxu0 %v6483_v62  ;;  %v7630_v62 = vld [vmem:[#allocation8 + $0x4b8] sm:$0xf0]  ;;  %v6543_v8 = vor.u32 %v7606_v61, %v6542_v51  ;;  %v6519_v61 = vor.u32 %v7600_v26, %v6518_v53  ;;  %v7166_v53 = vld [vmem:[#allocation8 + $0x8d0] sm:$0xf]  ;;  %v6950_v26 = vld [vmem:[#allocation8 + $0x720] sm:$0xf] }
 0x163   :  { %4411 = vmatpush.bf16.msra.mxu1 %v6579_v58  ;;  %v2175_v58 = vadd.f32 %v2174_v39, %v398_v41  ;;  %v6639_v9 = vor.u32 %v7630_v62, %v6638_v36  ;;  %v6435_v39 = vor.u32 %v7579_v29, %v6434_v52  ;;  %v6710_v62 = vld [vmem:[#allocation8 + $0x540] sm:$0xf]  ;;  %v2393_v13 = vmax.f32 %v2163_v31, 0.0  ;;  %v7070_v52 = vld [vmem:[#allocation8 + $0x810] sm:$0xf] }
 0x164   :  { %4425 = vmatpush.bf16.msra.mxu2 %v6675_v4  ;;  %v6747_v4 = vor.u32 %v7657_v55, %v6746_v35  ;;  %v2176_v15 = vpop.f32.mrf.mxu1  ;;  %v6890_v35 = vld [vmem:[#allocation8 + $0x6a8] sm:$0xf]  ;;  %v7738_v29 = vld [vmem:[#allocation8 + $0x818] sm:$0xf0] }
 0x165   :  { %4439 = vmatpush.bf16.msra.mxu3 %v6771_v5  ;;  %v2379_v5 = vmax.f32 %v8179_v38, 0.0  ;;  %v2177_v3 = vadd.f32 %v2176_v15, %v398_v41  ;;  %v7071_v38 = vor.u32 %v7738_v29, %v7070_v52  ;;  %v7726_v52 = vld [vmem:[#allocation8 + $0x7b8] sm:$0xf0] }
 0x166   :  { %4398 = vmatpush.bf16.msra.mxu0 %v6471_v17  ;;  %v8190_v17 = vadd.f32 %v8139_v47, %v2105_v19  ;;  %v7576_v47 = vld [vmem:[#allocation8 + $0x308] sm:$0xf0]  ;;  %v2190_v34 = vpop.f32.mrf.mxu2  ;;  %v2381_v19 = vmax.f32 %v2161_v30, 0.0 }
 0x167   :  { %4412 = vmatpush.bf16.msra.mxu1 %v6567_v63  ;;  %v2189_v63 = vadd.f32 %v2188_v56, %v2175_v58  ;;  %v2191_v55 = vadd.f32 %v2190_v34, %v2177_v3  ;;  %v6423_v51 = vor.u32 %v7576_v47, %v6422_v1  ;;  %v6891_v58 = vor.u32 %v7693_v44, %v6890_v35  ;;  %v6962_v3 = vld [vmem:[#allocation8 + $0x738] sm:$0xf]  ;;  %v8209_v1 = vld [vmem:[#allocation7 + $0x8] sm:$0xf]  ;;  %v7684_v47 = vld [vmem:[#allocation8 + $0x668] sm:$0xf0] }
 0x168   :  { %4426 = vmatpush.bf16.msra.mxu2 %v6663_v21  ;;  %v6735_v21 = vor.u32 %v7654_v2, %v6734_v10  ;;  %v2204_v41 = vpop.f32.mrf.mxu3  ;;  %v2380_v45 = vmax.f32 %v8190_v17, 0.0  ;;  %v6878_v10 = vld [vmem:[#allocation8 + $0x690] sm:$0xf]  ;;  %v8198_v40 = vpack.c.bf16 %v2391_v24, %v2379_v5  ;;  %v8202_v16 = vpack.c.bf16 %v2393_v13, %v2381_v19  ;;  %v6866_v17 = vld [vmem:[#allocation8 + $0x678] sm:$0xf] }
 0x169   :  { %4440 = vmatpush.bf16.msra.mxu3 %v6759_v37  ;;  %v6614_v37 = vld [vmem:[#allocation8 + $0x480] sm:$0xf]  ;;  %v2203_v50 = vadd.f32 %v2202_v60, %v2189_v63  ;;  %v2205_v56 = vadd.f32 %v2204_v41, %v2191_v55  ;;  %v7690_v60 = vld [vmem:[#allocation8 + $0x698] sm:$0xf0]  ;;  %v6974_v2 = vld [vmem:[#allocation8 + $0x750] sm:$0xf]  ;;  %v6867_v22 = vor.u32 %v7687_v18, %v6866_v17 }
 0x16a   :  { %4399 = vmatpush.bf16.msra.mxu0 %v6459_v0  ;;  %v7624_v0 = vld [vmem:[#allocation8 + $0x488] sm:$0xf0]  ;;  %v8200_v20 = vpack.c.bf16 %v2392_v59, %v2380_v45  ;;  %v6879_v25 = vor.u32 %v7690_v60, %v6878_v10  ;;  %v6975_v54 = vor.u32 %v7714_v7, %v6974_v2  ;;  %v7711_v63 = vld [vmem:[#allocation8 + $0x740] sm:$0xf0]  ;;  %v7178_v5 = vld [vmem:[#allocation8 + $0x8e8] sm:$0xf] }
 0x16b   :  { %4413 = vmatpush.bf16.msra.mxu1 %v6555_v12  ;;  %v6986_v12 = vld [vmem:[#allocation8 + $0x768] sm:$0xf]  ;;  %v6615_v36 = vor.u32 %v7624_v0, %v6614_v37  ;;  %v2394_v15 = vmax.f32 %v2205_v56, 0.0  ;;  %v7765_v24 = vld [vmem:[#allocation8 + $0x8f0] sm:$0xf0]  ;;  %v399_v41 = vperm.slane %v8209_v1, 0 }
 0x16c   :  { %4427 = vmatpush.bf16.msra.mxu2 %v6651_v46  ;;  %v7717_v46 = vld [vmem:[#allocation8 + $0x770] sm:$0xf0]  ;;  %v7179_v42 = vor.u32 %v7765_v24, %v7178_v5  ;;  %v7708_v30 = vld [vmem:[#allocation8 + $0x728] sm:$0xf0]  ;;  %v7762_v34 = vld [vmem:[#allocation8 + $0x8d8] sm:$0xf0] }
 0x16d   :  { %4441 = vmatpush.bf16.msra.mxu3 %v6747_v4  ;;  %v6987_v4 = vor.u32 %v7717_v46, %v6986_v12  ;;  %v7046_v37 = vld [vmem:[#allocation8 + $0x7e0] sm:$0xf]  ;;  %v7732_v0 = vld [vmem:[#allocation8 + $0x7e8] sm:$0xf0]  ;;  %v7167_v35 = vor.u32 %v7762_v34, %v7166_v53  ;;  %v6951_v44 = vor.u32 %v7708_v30, %v6950_v26  ;;  %v6842_v45 = vld [vmem:[#allocation8 + $0x648] sm:$0xf] }
 0x16e   :  { %4400 = vmatpush.bf16.msra.mxu0 %v6447_v6  ;;  %v7648_v6 = vld [vmem:[#allocation8 + $0x548] sm:$0xf0]  ;;  %v7759_v59 = vld [vmem:[#allocation8 + $0x8c0] sm:$0xf0]  ;;  %v6926_v60 = vld [vmem:[#allocation8 + $0x6f0] sm:$0xf] }
 0x16f   :  { %4414 = vmatpush.bf16.msra.mxu1 %v6543_v8  ;;  %v7083_v8 = vor.u32 %v7741_v57, %v7082_v49  ;;  %v6711_v28 = vor.u32 %v7648_v6, %v6710_v62  ;;  %v7705_v49 = vld [vmem:[#allocation8 + $0x710] sm:$0xf0]  ;;  %v7047_v57 = vor.u32 %v7732_v0, %v7046_v37  ;;  %v7142_v6 = vld [vmem:[#allocation8 + $0x8a0] sm:$0xf]  ;;  %v7702_v2 = vld [vmem:[#allocation8 + $0x6f8] sm:$0xf0] }
 0x170   :  { %4428 = vmatpush.bf16.msra.mxu2 %v6639_v9  ;;  %v2382_v9 = vmax.f32 %v2203_v50, 0.0  ;;  %v7681_v50 = vld [vmem:[#allocation8 + $0x650] sm:$0xf0]  ;;  %v6818_v18 = vld [vmem:[#allocation8 + $0x618] sm:$0xf] }
 0x171   :  { %4442 = vmatpush.bf16.msra.mxu3 %v6735_v21  ;;  %v6843_v19 = vor.u32 %v7681_v50, %v6842_v45  ;;  %v7699_v5 = vld [vmem:[#allocation8 + $0x6e0] sm:$0xf0]  ;;  %v6806_v53 = vld [vmem:[#allocation8 + $0x600] sm:$0xf]  ;;  %v7672_v26 = vld [vmem:[#allocation8 + $0x608] sm:$0xf0] }
 0x172   :  { %4401 = vmatpush.bf16.msra.mxu0 %v6435_v39  ;;  %v8205_v21 = vpack.c.bf16 %v2394_v15, %v2382_v9  ;;  %v7058_v39 = vld [vmem:[#allocation8 + $0x7f8] sm:$0xf]  ;;  %v7022_v15 = vld [vmem:[#allocation8 + $0x7b0] sm:$0xf]  ;;  %v6902_v30 = vld [vmem:[#allocation8 + $0x6c0] sm:$0xf] }
 0x173   :  { %4415 = vmatpush.bf16.msra.mxu1 %v6531_v48  ;;  %v6963_v48 = vor.u32 %v7711_v63, %v6962_v3  ;;  %v7059_v31 = vor.u32 %v7735_v11, %v7058_v39  ;;  %v7675_v3 = vld [vmem:[#allocation8 + $0x620] sm:$0xf0]  ;;  %v6914_v63 = vld [vmem:[#allocation8 + $0x6d8] sm:$0xf]  ;;  %v7023_v24 = vor.u32 %v7726_v52, %v7022_v15  ;;  %v7130_v39 = vld [vmem:[#allocation8 + $0x888] sm:$0xf] }
 0x174   :  { %4429 = vmatpush.bf16.msra.mxu2 %v6627_v23  ;;  %v6854_v23 = vld [vmem:[#allocation8 + $0x660] sm:$0xf]  ;;  %v7753_v11 = vld [vmem:[#allocation8 + $0x890] sm:$0xf0]  ;;  %v6915_v34 = vor.u32 %v7699_v5, %v6914_v63  ;;  %v7696_v37 = vld [vmem:[#allocation8 + $0x6c8] sm:$0xf0] }
 0x175   :  { %4443 = vmatpush.bf16.msra.mxu3 %v6723_v43  ;;  %v6855_v55 = vor.u32 %v7684_v47, %v6854_v23  ;;  %v7154_v43 = vld [vmem:[#allocation8 + $0x8b8] sm:$0xf]  ;;  %v7131_v23 = vor.u32 %v7753_v11, %v7130_v39  ;;  %v7545_v52 = vld [vmem:[#allocation8 + $0x214] sm:$0xf]  ;;  %v6100_v63 = vld [vmem:[#allocation8 + $0x84] sm:$0xf0] }
 0x176   :  { %4402 = vmatpush.bf16.msra.mxu0 %v6423_v51  ;;  %v2216_v12 = vpop.f32.mrf.mxu0  ;;  %v6938_v51 = vld [vmem:[#allocation8 + $0x708] sm:$0xf]  ;;  %v7155_v62 = vor.u32 %v7759_v59, %v7154_v43  ;;  %v6124_v0 = vld [vmem:[#allocation8 + $0xb4] sm:$0xf0]  ;;  %v7548_v59 = vld [vmem:[#allocation8 + $0x22c] sm:$0xf] }
 0x177   :  { %4416 = vmatpush.bf16.msra.mxu1 %v6519_v61  ;;  %v2230_v46 = vpop.f32.mrf.mxu1  ;;  %v2217_v56 = vadd.f32 %v2216_v12, %v399_v41  ;;  %v7034_v61 = vld [vmem:[#allocation8 + $0x7c8] sm:$0xf]  ;;  %v6939_v13 = vor.u32 %v7705_v49, %v6938_v51  ;;  %v7118_v12 = vld [vmem:[#allocation8 + $0x870] sm:$0xf]  ;;  %v6220_v43 = vld [vmem:[#allocation8 + $0x174] sm:$0xf0] }
 0x178   :  { %4430 = vmatpush.bf16.msra.mxu2 %v6615_v36  ;;  %v7729_v36 = vld [vmem:[#allocation8 + $0x7d0] sm:$0xf0]  ;;  %v6998_v51 = vld [vmem:[#allocation8 + $0x780] sm:$0xf]  ;;  %v6196_v5 = vld [vmem:[#allocation8 + $0x144] sm:$0xf0] }
 0x179   :  { %4403 = vmatmul.bf16.vlgmr.msra.gmra.mxu0 %v8198_v40  ;;  %4444 = vmatpush.bf16.msra.mxu3 %v6711_v28  ;;  %v7035_v7 = vor.u32 %v7729_v36, %v7034_v61  ;;  %v2231_v9 = vadd.f32 %v2230_v46, %v2217_v56  ;;  %v7750_v46 = vld [vmem:[#allocation8 + $0x878] sm:$0xf0]  ;;  %v6316_v56 = vld [vmem:[#allocation8 + $0x234] sm:$0xf0]  ;;  %v6807_v36 = vor.u32 %v7672_v26, %v6806_v53  ;;  %v7572_v39 = vld [vmem:[#allocation8 + $0x2ec] sm:$0xf] }
 0x17a   :  { %4451 = vmatpush.bf16.msrb.mxu0 %v6891_v58  ;;  %4417 = vmatmul.bf16.vlgmr.msra.gmra.mxu1 %v8200_v20  ;;  %v6830_v58 = vld [vmem:[#allocation8 + $0x630] sm:$0xf]  ;;  %v7119_v49 = vor.u32 %v7750_v46, %v7118_v12  ;;  %v6319_v15 = vor.u32 %v7548_v59, %v6316_v56  ;;  %v7539_v12 = vld [vmem:[#allocation8 + $0x1e4] sm:$0xf]  ;;  %v6172_v56 = vld [vmem:[#allocation8 + $0x114] sm:$0xf0] }
 0x17b   :  { %4465 = vmatpush.bf16.msrb.mxu1 %v6987_v4  ;;  %4431 = vmatmul.bf16.vlgmr.msra.gmra.mxu2 %v8202_v16  ;;  %v7678_v4 = vld [vmem:[#allocation8 + $0x638] sm:$0xf0]  ;;  %v6280_v46 = vld [vmem:[#allocation8 + $0x1ec] sm:$0xf0] }
 0x17c   :  { %4479 = vmatpush.bf16.msrb.mxu2 %v7083_v8  ;;  %4445 = vmatmul.bf16.vlgmr.msra.gmra.mxu3 %v8205_v21  ;;  %v7756_v8 = vld [vmem:[#allocation8 + $0x8a8] sm:$0xf0]  ;;  %v6831_v28 = vor.u32 %v7678_v4, %v6830_v58 }
 0x17d   :  { %4493 = vmatpush.bf16.msrb.mxu3 %v7179_v42  ;;  %v7143_v29 = vor.u32 %v7756_v8, %v7142_v6  ;;  %v7497_v6 = vld [vmem:[#allocation8 + $0x94] sm:$0xf] }
 0x17e   :  { %4452 = vmatpush.bf16.msrb.mxu0 %v6879_v25  ;;  %v2244_v10 = vpop.f32.mrf.mxu2  ;;  %v6927_v25 = vor.u32 %v7702_v2, %v6926_v60  ;;  %v7521_v60 = vld [vmem:[#allocation8 + $0x154] sm:$0xf]  ;;  %v6208_v2 = vld [vmem:[#allocation8 + $0x15c] sm:$0xf0] }
 0x17f   :  { %4466 = vmatpush.bf16.msrb.mxu1 %v6975_v54  ;;  %v2218_v54 = vpop.f32.mrf.mxu0  ;;  %v2232_v17 = vpop.f32.mrf.mxu1  ;;  %v2245_v42 = vadd.f32 %v2244_v10, %v2231_v9  ;;  %v6112_v10 = vld [vmem:[#allocation8 + $0x9c] sm:$0xf0] }
 0x180   :  { %4480 = vmatpush.bf16.msrb.mxu2 %v7071_v38  ;;  %v2219_v38 = vadd.f32 %v2218_v54, %v399_v41  ;;  %v7500_v41 = vld [vmem:[#allocation8 + $0xac] sm:$0xf]  ;;  %v6115_v54 = vor.u32 %v7497_v6, %v6112_v10  ;;  %v6268_v6 = vld [vmem:[#allocation8 + $0x1d4] sm:$0xf0] }
 0x181   :  { %4494 = vmatpush.bf16.msrb.mxu3 %v7167_v35  ;;  %v2383_v45 = vmax.f32 %v2245_v42, 0.0  ;;  %v6127_v58 = vor.u32 %v7500_v41, %v6124_v0  ;;  %v6412_v42 = vld [vmem:[#allocation8 + $0x2f4] sm:$0xf0]  ;;  %v6184_v41 = vld [vmem:[#allocation8 + $0x12c] sm:$0xf0] }
 0x182   :  { %4453 = vmatpush.bf16.msrb.mxu0 %v6867_v22  ;;  %v7010_v22 = vld [vmem:[#allocation8 + $0x798] sm:$0xf]  ;;  %v2233_v47 = vadd.f32 %v2232_v17, %v2219_v38  ;;  %v6211_v17 = vor.u32 %v7521_v60, %v6208_v2  ;;  %v7518_v38 = vld [vmem:[#allocation8 + $0x13c] sm:$0xf]  ;;  %v6400_v0 = vld [vmem:[#allocation8 + $0x2dc] sm:$0xf0] }
 0x183   :  { %4467 = vmatpush.bf16.msrb.mxu1 %v6963_v48  ;;  %v7723_v48 = vld [vmem:[#allocation8 + $0x7a0] sm:$0xf0]  ;;  %v6199_v26 = vor.u32 %v7518_v38, %v6196_v5  ;;  %v7485_v2 = vld [vmem:[#allocation8 + $0x34] sm:$0xf] }
 0x184   :  { %4481 = vmatpush.bf16.msrb.mxu2 %v7059_v31  ;;  %v6819_v31 = vor.u32 %v7675_v3, %v6818_v18  ;;  %v2258_v18 = vpop.f32.mrf.mxu3  ;;  %v7494_v3 = vld [vmem:[#allocation8 + $0x7c] sm:$0xf] }
 0x185   :  { %4495 = vmatpush.bf16.msrb.mxu3 %v7155_v62  ;;  %v6903_v62 = vor.u32 %v7696_v37, %v6902_v30  ;;  %v6103_v53 = vor.u32 %v7494_v3, %v6100_v63  ;;  %v7491_v30 = vld [vmem:[#allocation8 + $0x64] sm:$0xf]  ;;  %v6256_v3 = vld [vmem:[#allocation8 + $0x1bc] sm:$0xf0] }
 0x186   :  { %4454 = vmatpush.bf16.msrb.mxu0 %v6855_v55  ;;  %v2246_v35 = vpop.f32.mrf.mxu2  ;;  %v7524_v55 = vld [vmem:[#allocation8 + $0x16c] sm:$0xf]  ;;  %v7515_v37 = vld [vmem:[#allocation8 + $0x124] sm:$0xf] }
 0x187   :  { %4468 = vmatpush.bf16.msrb.mxu1 %v6951_v44  ;;  %v7011_v44 = vor.u32 %v7723_v48, %v7010_v22  ;;  %v2247_v50 = vadd.f32 %v2246_v35, %v2233_v47  ;;  %v6223_v4 = vor.u32 %v7524_v55, %v6220_v43  ;;  %v400_v22 = vperm.slane %v8209_v1, 1  ;;  %v7542_v48 = vld [vmem:[#allocation8 + $0x1fc] sm:$0xf] }
 0x188   :  { %4482 = vmatpush.bf16.msrb.mxu2 %v7047_v57  ;;  %v7720_v57 = vld [vmem:[#allocation8 + $0x788] sm:$0xf0]  ;;  %v6415_v47 = vor.u32 %v7572_v39, %v6412_v42  ;;  %v6187_v43 = vor.u32 %v7515_v37, %v6184_v41  ;;  %v6052_v39 = vld [vmem:[#allocation8 + $0x24] sm:$0xf0]  ;;  %v6040_v37 = vld [vmem:[#allocation8 + $0xc] sm:$0xf0] }
 0x189   :  { %4496 = vmatpush.bf16.msrb.mxu3 %v7143_v29  ;;  %v2395_v61 = vmax.f32 %v2247_v50, 0.0  ;;  %v6304_v29 = vld [vmem:[#allocation8 + $0x21c] sm:$0xf0]  ;;  %v7530_v41 = vld [vmem:[#allocation8 + $0x19c] sm:$0xf] }
 0x18a   :  { %4455 = vmatpush.bf16.msrb.mxu0 %v6843_v19  ;;  %v7106_v19 = vld [vmem:[#allocation8 + $0x858] sm:$0xf]  ;;  %v6307_v11 = vor.u32 %v7545_v52, %v6304_v29  ;;  %v7509_v52 = vld [vmem:[#allocation8 + $0xf4] sm:$0xf]  ;;  %v6160_v29 = vld [vmem:[#allocation8 + $0xfc] sm:$0xf0] }
 0x18b   :  { %4469 = vmatpush.bf16.msrb.mxu1 %v6939_v13  ;;  %v7747_v13 = vld [vmem:[#allocation8 + $0x860] sm:$0xf0]  ;;  %v8213_v9 = vpack.c.bf16 %v2395_v61, %v2383_v45  ;;  %v7566_v61 = vld [vmem:[#allocation8 + $0x2bc] sm:$0xf]  ;;  %v6163_v5 = vor.u32 %v7509_v52, %v6160_v29 }
 0x18c   :  { %4483 = vmatpush.bf16.msrb.mxu2 %v7035_v7  ;;  %v6999_v7 = vor.u32 %v7720_v57, %v6998_v51  ;;  %v7107_v8 = vor.u32 %v7747_v13, %v7106_v19  ;;  %v7488_v51 = vld [vmem:[#allocation8 + $0x4c] sm:$0xf]  ;;  %v6283_v19 = vor.u32 %v7539_v12, %v6280_v46  ;;  %v6136_v12 = vld [vmem:[#allocation8 + $0xcc] sm:$0xf0] }
 0x18d   :  { %4497 = vmatpush.bf16.msrb.mxu3 %v7131_v23  ;;  %v6292_v23 = vld [vmem:[#allocation8 + $0x204] sm:$0xf0]  ;;  %v7512_v57 = vld [vmem:[#allocation8 + $0x10c] sm:$0xf] }
 0x18e   :  { %4456 = vmatpush.bf16.msrb.mxu0 %v6831_v28  ;;  %v7094_v28 = vld [vmem:[#allocation8 + $0x840] sm:$0xf]  ;;  %v6295_v35 = vor.u32 %v7542_v48, %v6292_v23  ;;  %v6175_v60 = vor.u32 %v7512_v57, %v6172_v56  ;;  %v6148_v48 = vld [vmem:[#allocation8 + $0xe4] sm:$0xf0]  ;;  %v7560_v23 = vld [vmem:[#allocation8 + $0x28c] sm:$0xf] }
 0x18f   :  { %4470 = vmatpush.bf16.msrb.mxu1 %v6927_v25  ;;  %v7744_v25 = vld [vmem:[#allocation8 + $0x848] sm:$0xf0]  ;;  %v6604_v57 = vld [vmem:[#allocation8 + $0x474] sm:$0xf0] }
 0x190   :  { %4484 = vmatpush.bf16.msrb.mxu2 %v7023_v24  ;;  %v7095_v24 = vor.u32 %v7744_v25, %v7094_v28  ;;  %v6376_v28 = vld [vmem:[#allocation8 + $0x2ac] sm:$0xf0]  ;;  %v7596_v46 = vld [vmem:[#allocation8 + $0x3ac] sm:$0xf] }
 0x191   :  { %4498 = vmatpush.bf16.msrb.mxu3 %v7119_v49  ;;  %v6076_v49 = vld [vmem:[#allocation8 + $0x54] sm:$0xf0] }
 0x192   :  { %4457 = vmatpush.bf16.msrb.mxu0 %v6819_v31  ;;  %v6088_v31 = vld [vmem:[#allocation8 + $0x6c] sm:$0xf0]  ;;  %v6079_v10 = vor.u32 %v7488_v51, %v6076_v49  ;;  %v6508_v51 = vld [vmem:[#allocation8 + $0x3b4] sm:$0xf0]  ;;  %v7620_v49 = vld [vmem:[#allocation8 + $0x46c] sm:$0xf] }
 0x193   :  { %4471 = vmatpush.bf16.msrb.mxu1 %v6915_v34  ;;  %v7569_v34 = vld [vmem:[#allocation8 + $0x2d4] sm:$0xf]  ;;  %v6091_v50 = vor.u32 %v7491_v30, %v6088_v31 }
 0x194   :  { %4485 = vmatpush.bf16.msrb.mxu2 %v7011_v44  ;;  %v6403_v55 = vor.u32 %v7569_v34, %v6400_v0  ;;  %v2259_v44 = vadd.f32 %v2258_v18, %v400_v22  ;;  %v7533_v18 = vld [vmem:[#allocation8 + $0x1b4] sm:$0xf]  ;;  %v7479_v34 = vld [vmem:[#allocation8 + $0x4] sm:$0xf]  ;;  %v6244_v0 = vld [vmem:[#allocation8 + $0x1a4] sm:$0xf0] }
 0x195   :  { %4499 = vmatpush.bf16.msrb.mxu3 %v7107_v8  ;;  %v7563_v8 = vld [vmem:[#allocation8 + $0x2a4] sm:$0xf] }
 0x196   :  { %4458 = vmatpush.bf16.msrb.mxu0 %v6807_v36  ;;  %v2272_v45 = vpop.f32.mrf.mxu0  ;;  %v6388_v36 = vld [vmem:[#allocation8 + $0x2c4] sm:$0xf0] }
 0x197   :  { %4472 = vmatpush.bf16.msrb.mxu1 %v6903_v62  ;;  %v2286_v59 = vpop.f32.mrf.mxu1  ;;  %v2260_v62 = vpop.f32.mrf.mxu3  ;;  %v6391_v13 = vor.u32 %v7566_v61, %v6388_v36  ;;  %v7527_v36 = vld [vmem:[#allocation8 + $0x184] sm:$0xf] }
 0x198   :  { %4486 = vmatpush.bf16.msrb.mxu2 %v6999_v7  ;;  %v6064_v7 = vld [vmem:[#allocation8 + $0x3c] sm:$0xf0] }
 0x199   :  { %4459 = vmatmul.bf16.vlgmr.msrb.gmra.mxu0 %v8213_v9  ;;  %4500 = vmatpush.bf16.msrb.mxu3 %v7095_v24  ;;  %v6067_v38 = vor.u32 %v7485_v2, %v6064_v7  ;;  %v7482_v24 = vld [vmem:[#allocation8 + $0x1c] sm:$0xf]  ;;  %v6496_v2 = vld [vmem:[#allocation8 + $0x39c] sm:$0xf0]  ;;  %v7617_v7 = vld [vmem:[#allocation8 + $0x454] sm:$0xf] }
 0x19a   :  { %4507 = vmatpush.bf16.msra.mxu0 %v6127_v58  ;;  %v2273_v58 = vadd.f32 %v2272_v45, %v2259_v44  ;;  %v7503_v44 = vld [vmem:[#allocation8 + $0xc4] sm:$0xf] }
 0x19b   :  { %4521 = vmatpush.bf16.msra.mxu1 %v6223_v4  ;;  %v7536_v4 = vld [vmem:[#allocation8 + $0x1cc] sm:$0xf] }
 0x19c   :  { %4535 = vmatpush.bf16.msra.mxu2 %v6319_v15  ;;  %v2261_v15 = vadd.f32 %v2260_v62, %v400_v22  ;;  %v6271_v25 = vor.u32 %v7536_v4, %v6268_v6  ;;  %v6232_v62 = vld [vmem:[#allocation8 + $0x18c] sm:$0xf0]  ;;  %v6340_v4 = vld [vmem:[#allocation8 + $0x264] sm:$0xf0]  ;;  %v6511_v6 = vor.u32 %v7596_v46, %v6508_v51  ;;  %v402_v51 = vperm.slane %v8209_v1, 3 }
 0x19d   :  { %4549 = vmatpush.bf16.msra.mxu3 %v6415_v47  ;;  %v6364_v47 = vld [vmem:[#allocation8 + $0x294] sm:$0xf0] }
 0x19e   :  { %4508 = vmatpush.bf16.msra.mxu0 %v6115_v54  ;;  %v6379_v54 = vor.u32 %v7563_v8, %v6376_v28  ;;  %v2274_v63 = vpop.f32.mrf.mxu0  ;;  %v6592_v8 = vld [vmem:[#allocation8 + $0x45c] sm:$0xf0]  ;;  %v2300_v29 = vpop.f32.mrf.mxu2 }
 0x19f   :  { %4522 = vmatpush.bf16.msra.mxu1 %v6211_v17  ;;  %v2287_v17 = vadd.f32 %v2286_v59, %v2273_v58  ;;  %v2275_v42 = vadd.f32 %v2274_v63, %v2261_v15  ;;  %v2288_v22 = vpop.f32.mrf.mxu1  ;;  %v6247_v59 = vor.u32 %v7530_v41, %v6244_v0  ;;  %v7554_v58 = vld [vmem:[#allocation8 + $0x25c] sm:$0xf]  ;;  %v6235_v15 = vor.u32 %v7527_v36, %v6232_v62  ;;  %v6484_v63 = vld [vmem:[#allocation8 + $0x384] sm:$0xf0]  ;;  %v6460_v41 = vld [vmem:[#allocation8 + $0x354] sm:$0xf0] }
 0x1a0   :  { %4536 = vmatpush.bf16.msra.mxu2 %v6307_v11  ;;  %v7506_v11 = vld [vmem:[#allocation8 + $0xdc] sm:$0xf]  ;;  %v6343_v52 = vor.u32 %v7554_v58, %v6340_v4  ;;  %v2314_v28 = vpop.f32.mrf.mxu3  ;;  %v7608_v0 = vld [vmem:[#allocation8 + $0x40c] sm:$0xf] }
 0x1a1   :  { %4550 = vmatpush.bf16.msra.mxu3 %v6403_v55  ;;  %v2384_v30 = vmax.f32 %v2287_v17, 0.0  ;;  %v2289_v31 = vadd.f32 %v2288_v22, %v2275_v42  ;;  %v6151_v55 = vor.u32 %v7506_v11, %v6148_v48  ;;  %v7587_v42 = vld [vmem:[#allocation8 + $0x364] sm:$0xf]  ;;  %v6472_v22 = vld [vmem:[#allocation8 + $0x36c] sm:$0xf0] }
 0x1a2   :  { %4509 = vmatpush.bf16.msra.mxu0 %v6103_v53  ;;  %v6259_v53 = vor.u32 %v7533_v18, %v6256_v3  ;;  %v6595_v18 = vor.u32 %v7617_v7, %v6592_v8  ;;  %v7590_v3 = vld [vmem:[#allocation8 + $0x37c] sm:$0xf]  ;;  %v7611_v48 = vld [vmem:[#allocation8 + $0x424] sm:$0xf]  ;;  %v6532_v7 = vld [vmem:[#allocation8 + $0x3e4] sm:$0xf0] }
 0x1a3   :  { %4523 = vmatpush.bf16.msra.mxu1 %v6199_v26  ;;  %v6367_v26 = vor.u32 %v7560_v23, %v6364_v47  ;;  %v2396_v45 = vmax.f32 %v2289_v31, 0.0  ;;  %v6568_v23 = vld [vmem:[#allocation8 + $0x42c] sm:$0xf0]  ;;  %v401_v47 = vperm.slane %v8209_v1, 2  ;;  %v7584_v31 = vld [vmem:[#allocation8 + $0x34c] sm:$0xf] }
 0x1a4   :  { %4537 = vmatpush.bf16.msra.mxu2 %v6295_v35  ;;  %v6055_v35 = vor.u32 %v7482_v24, %v6052_v39  ;;  %v6487_v39 = vor.u32 %v7590_v3, %v6484_v63  ;;  %v6463_v46 = vor.u32 %v7584_v31, %v6460_v41  ;;  %v7578_v58 = vld [vmem:[#allocation8 + $0x31c] sm:$0xf]  ;;  %v7644_v8 = vld [vmem:[#allocation8 + $0x52c] sm:$0xf]  ;;  %v7599_v63 = vld [vmem:[#allocation8 + $0x3c4] sm:$0xf] }
 0x1a5   :  { %4551 = vmatpush.bf16.msra.mxu3 %v6391_v13  ;;  %v8217_v61 = vpack.c.bf16 %v2396_v45, %v2384_v30  ;;  %v6139_v13 = vor.u32 %v7503_v44, %v6136_v12  ;;  %v6571_v30 = vor.u32 %v7611_v48, %v6568_v23  ;;  %v7641_v23 = vld [vmem:[#allocation8 + $0x514] sm:$0xf] }
 0x1a6   :  { %4510 = vmatpush.bf16.msra.mxu0 %v6091_v50  ;;  %v7557_v50 = vld [vmem:[#allocation8 + $0x274] sm:$0xf] }
 0x1a7   :  { %4524 = vmatpush.bf16.msra.mxu1 %v6187_v43  ;;  %v6352_v43 = vld [vmem:[#allocation8 + $0x27c] sm:$0xf0] }
 0x1a8   :  { %4538 = vmatpush.bf16.msra.mxu2 %v6283_v19  ;;  %v6355_v56 = vor.u32 %v7557_v50, %v6352_v43  ;;  %v6043_v19 = vor.u32 %v7479_v34, %v6040_v37  ;;  %4473 = vmatmul.bf16.vlgmr.msrb.gmra.mxu1 %v8217_v61  ;;  %v2316_v34 = vpop.f32.mrf.mxu3  ;;  %v7581_v50 = vld [vmem:[#allocation8 + $0x334] sm:$0xf]  ;;  %v6448_v43 = vld [vmem:[#allocation8 + $0x33c] sm:$0xf0] }
 0x1a9   :  { %4552 = vmatpush.bf16.msra.mxu3 %v6379_v54  ;;  %v6328_v54 = vld [vmem:[#allocation8 + $0x24c] sm:$0xf0] }
 0x1aa   :  { %4511 = vmatpush.bf16.msra.mxu0 %v6079_v10  ;;  %v6607_v10 = vor.u32 %v7620_v49, %v6604_v57  ;;  %v7605_v49 = vld [vmem:[#allocation8 + $0x3f4] sm:$0xf]  ;;  %v6544_v57 = vld [vmem:[#allocation8 + $0x3fc] sm:$0xf0] }
 0x1ab   :  { %4525 = vmatpush.bf16.msra.mxu1 %v6175_v60  ;;  %v7593_v60 = vld [vmem:[#allocation8 + $0x394] sm:$0xf] }
 0x1ac   :  { %4539 = vmatpush.bf16.msra.mxu2 %v6271_v25  ;;  %v7551_v25 = vld [vmem:[#allocation8 + $0x244] sm:$0xf]  ;;  %v6499_v17 = vor.u32 %v7593_v60, %v6496_v2  ;;  %v6436_v60 = vld [vmem:[#allocation8 + $0x324] sm:$0xf0]  ;;  %v7602_v2 = vld [vmem:[#allocation8 + $0x3dc] sm:$0xf] }
 0x1ad   :  { %4553 = vmatpush.bf16.msra.mxu3 %v6367_v26  ;;  %v6331_v24 = vor.u32 %v7551_v25, %v6328_v54  ;;  %v6475_v26 = vor.u32 %v7587_v42, %v6472_v22  ;;  %v6439_v25 = vor.u32 %v7578_v58, %v6436_v60  ;;  %v6535_v54 = vor.u32 %v7602_v2, %v6532_v7  ;;  %v7716_v42 = vld [vmem:[#allocation8 + $0x76c] sm:$0xf]  ;;  %v6988_v22 = vld [vmem:[#allocation8 + $0x774] sm:$0xf0]  ;;  %v7710_v58 = vld [vmem:[#allocation8 + $0x73c] sm:$0xf] }
 0x1ae   :  { %4512 = vmatpush.bf16.msra.mxu0 %v6067_v38  ;;  %v7614_v38 = vld [vmem:[#allocation8 + $0x43c] sm:$0xf]  ;;  %v6991_v41 = vor.u32 %v7716_v42, %v6988_v22  ;;  %v7635_v60 = vld [vmem:[#allocation8 + $0x4e4] sm:$0xf]  ;;  %v6664_v2 = vld [vmem:[#allocation8 + $0x4ec] sm:$0xf0] }
 0x1af   :  { %4526 = vmatpush.bf16.msra.mxu1 %v6163_v5  ;;  %v6580_v5 = vld [vmem:[#allocation8 + $0x444] sm:$0xf0]  ;;  %v7665_v7 = vld [vmem:[#allocation8 + $0x5d4] sm:$0xf]  ;;  %v7680_v22 = vld [vmem:[#allocation8 + $0x64c] sm:$0xf] }
 0x1b0   :  { %4540 = vmatpush.bf16.msra.mxu2 %v6259_v53  ;;  %v6583_v11 = vor.u32 %v7614_v38, %v6580_v5  ;;  %v2302_v53 = vpop.f32.mrf.mxu2  ;;  %v6520_v38 = vld [vmem:[#allocation8 + $0x3cc] sm:$0xf0]  ;;  %v7692_v5 = vld [vmem:[#allocation8 + $0x6ac] sm:$0xf] }
 0x1b1   :  { %4554 = vmatpush.bf16.msra.mxu3 %v6355_v56  ;;  %v2303_v12 = vadd.f32 %v2302_v53, %v401_v47  ;;  %v6451_v56 = vor.u32 %v7581_v50, %v6448_v43  ;;  %v7638_v50 = vld [vmem:[#allocation8 + $0x4fc] sm:$0xf]  ;;  %v6676_v43 = vld [vmem:[#allocation8 + $0x504] sm:$0xf0] }
 0x1b2   :  { %4513 = vmatpush.bf16.msra.mxu0 %v6055_v35  ;;  %v6556_v35 = vld [vmem:[#allocation8 + $0x414] sm:$0xf0] }
 0x1b3   :  { %4527 = vmatpush.bf16.msra.mxu1 %v6151_v55  ;;  %v2301_v55 = vadd.f32 %v2300_v29, %v401_v47  ;;  %v6559_v45 = vor.u32 %v7608_v0, %v6556_v35  ;;  %v2317_v36 = vadd.f32 %v2316_v34, %v2303_v12  ;;  %v6688_v47 = vld [vmem:[#allocation8 + $0x51c] sm:$0xf0]  ;;  %v7689_v0 = vld [vmem:[#allocation8 + $0x694] sm:$0xf] }
 0x1b4   :  { %4541 = vmatpush.bf16.msra.mxu2 %v6247_v59  ;;  %v7713_v12 = vld [vmem:[#allocation8 + $0x754] sm:$0xf] }
 0x1b5   :  { %4555 = vmatpush.bf16.msra.mxu3 %v6343_v52  ;;  %v2315_v59 = vadd.f32 %v2314_v28, %v2301_v55  ;;  %v6691_v55 = vor.u32 %v7641_v23, %v6688_v47  ;;  %v7704_v23 = vld [vmem:[#allocation8 + $0x70c] sm:$0xf]  ;;  %v6940_v47 = vld [vmem:[#allocation8 + $0x714] sm:$0xf0] }
 0x1b6   :  { %4514 = vmatpush.bf16.msra.mxu0 %v6043_v19  ;;  %v2328_v37 = vpop.f32.mrf.mxu0 }
 0x1b7   :  { %4528 = vmatpush.bf16.msra.mxu1 %v6139_v13  ;;  %v2342_v44 = vpop.f32.mrf.mxu1  ;;  %v2329_v62 = vadd.f32 %v2328_v37, %v2315_v59  ;;  %v6547_v13 = vor.u32 %v7605_v49, %v6544_v57  ;;  %v6796_v49 = vld [vmem:[#allocation8 + $0x5f4] sm:$0xf0] }
 0x1b8   :  { %4542 = vmatpush.bf16.msra.mxu2 %v6235_v15  ;;  %v2343_v4 = vadd.f32 %v2342_v44, %v402_v51  ;;  %v6700_v15 = vld [vmem:[#allocation8 + $0x534] sm:$0xf0]  ;;  %v6880_v44 = vld [vmem:[#allocation8 + $0x69c] sm:$0xf0] }
 0x1b9   :  { %4515 = vmatmul.bf16.vlgmr.msra.gmra.mxu0 %v8147_v14  ;;  %4556 = vmatpush.bf16.msra.mxu3 %v6331_v24  ;;  %v2385_v52 = vmax.f32 %v2329_v62, 0.0  ;;  %v7686_v62 = vld [vmem:[#allocation8 + $0x67c] sm:$0xf] }
 0x1ba   :  { %4563 = vmatpush.bf16.msrb.mxu0 %v6511_v6  ;;  %4529 = vmatmul.bf16.vlgmr.msra.gmra.mxu1 %v8149_v32 }
 0x1bb   :  { %4577 = vmatpush.bf16.msrb.mxu1 %v6607_v10 }
 0x1be   :  { %4564 = vmatpush.bf16.msrb.mxu0 %v6499_v17  ;;  %v2356_v19 = vpop.f32.mrf.mxu2  ;;  %v2330_v10 = vpop.f32.mrf.mxu0  ;;  %v7575_v17 = vld [vmem:[#allocation8 + $0x304] sm:$0xf] }
 0x1bf   :  { %4578 = vmatpush.bf16.msrb.mxu1 %v6595_v18  ;;  %v2331_v1 = vadd.f32 %v2330_v10, %v2317_v36  ;;  %v2344_v28 = vpop.f32.mrf.mxu1  ;;  %v6424_v18 = vld [vmem:[#allocation8 + $0x30c] sm:$0xf0]  ;;  %v2357_v3 = vadd.f32 %v2356_v19, %v2343_v4  ;;  %v6679_v19 = vor.u32 %v7638_v50, %v6676_v43  ;;  %v6964_v4 = vld [vmem:[#allocation8 + $0x744] sm:$0xf0]  ;;  %v7701_v50 = vld [vmem:[#allocation8 + $0x6f4] sm:$0xf] }
 0x1c0   :  { %v2370_v6 = vpop.f32.mrf.mxu3  ;;  %v2345_v48 = vadd.f32 %v2344_v28, %v402_v51  ;;  %v7668_v51 = vld [vmem:[#allocation8 + $0x5ec] sm:$0xf]  ;;  %v6667_v28 = vor.u32 %v7635_v60, %v6664_v2  ;;  %v6928_v43 = vld [vmem:[#allocation8 + $0x6fc] sm:$0xf0]  ;;  %v7698_v60 = vld [vmem:[#allocation8 + $0x6dc] sm:$0xf] }
 0x1c1   :  { %v2397_v29 = vmax.f32 %v2331_v1, 0.0  ;;  %v2371_v31 = vadd.f32 %v2370_v6, %v2357_v3  ;;  %v6799_v10 = vor.u32 %v7668_v51, %v6796_v49  ;;  %v6784_v1 = vld [vmem:[#allocation8 + $0x5dc] sm:$0xf0]  ;;  %v6916_v2 = vld [vmem:[#allocation8 + $0x6e4] sm:$0xf0] }
 0x1c2   :  { %4565 = vmatpush.bf16.msrb.mxu0 %v6487_v39  ;;  %v6703_v39 = vor.u32 %v7644_v8, %v6700_v15  ;;  %v8231_v8 = vld [vmem:[#allocation10] sm:$0x7] }
 0x1c3   :  { %4579 = vmatpush.bf16.msrb.mxu1 %v6583_v11  ;;  %v8224_v24 = vpack.c.bf16 %v2397_v29, %v2385_v52  ;;  %v6892_v11 = vld [vmem:[#allocation8 + $0x6b4] sm:$0xf0]  ;;  %v2386_v57 = vmax.f32 %v2371_v31, 0.0  ;;  %v6967_v52 = vor.u32 %v7710_v58, %v6964_v4  ;;  %v7683_v29 = vld [vmem:[#allocation8 + $0x664] sm:$0xf]  ;;  %v2797_v3 = vperm.slane %v8231_v8, 0 }
 0x1c4   :  { %v6895_v37 = vor.u32 %v7692_v5, %v6892_v11  ;;  %v7662_v5 = vld [vmem:[#allocation8 + $0x5bc] sm:$0xf] }
 0x1c5   :  { %4487 = vmatmul.bf16.vlgmr.msrb.gmra.mxu2 %v8224_v24 }
 0x1c6   :  { %4566 = vmatpush.bf16.msrb.mxu0 %v6475_v26  ;;  %v2358_v53 = vpop.f32.mrf.mxu2  ;;  %v6427_v26 = vor.u32 %v7575_v17, %v6424_v18  ;;  %4591 = vmatpush.bf16.msrb.mxu2 %v6703_v39  ;;  %v6952_v17 = vld [vmem:[#allocation8 + $0x72c] sm:$0xf0]  ;;  %v6787_v18 = vor.u32 %v7665_v7, %v6784_v1  ;;  %v6772_v39 = vld [vmem:[#allocation8 + $0x5c4] sm:$0xf0] }
 0x1c7   :  { %4580 = vmatpush.bf16.msrb.mxu1 %v6571_v30  ;;  %v6523_v30 = vor.u32 %v7599_v63, %v6520_v38  ;;  %v2359_v34 = vadd.f32 %v2358_v53, %v2345_v48  ;;  %v7632_v63 = vld [vmem:[#allocation8 + $0x4cc] sm:$0xf]  ;;  %v6652_v38 = vld [vmem:[#allocation8 + $0x4d4] sm:$0xf0]  ;;  %v6775_v31 = vor.u32 %v7662_v5, %v6772_v39 }
 0x1c8   :  { %v2372_v35 = vpop.f32.mrf.mxu3  ;;  %v6844_v48 = vld [vmem:[#allocation8 + $0x654] sm:$0xf0]  ;;  %v7740_v5 = vld [vmem:[#allocation8 + $0x82c] sm:$0xf] }
 0x1c9   :  { %v7084_v39 = vld [vmem:[#allocation8 + $0x834] sm:$0xf0] }
 0x1ca   :  { %4567 = vmatpush.bf16.msrb.mxu0 %v6463_v46  ;;  %v6976_v46 = vld [vmem:[#allocation8 + $0x75c] sm:$0xf0]  ;;  %4592 = vmatpush.bf16.msrb.mxu2 %v6691_v55  ;;  %v6847_v55 = vor.u32 %v7680_v22, %v6844_v48  ;;  %v6808_v22 = vld [vmem:[#allocation8 + $0x60c] sm:$0xf0]  ;;  %v7695_v48 = vld [vmem:[#allocation8 + $0x6c4] sm:$0xf] }
 0x1cb   :  { %4581 = vmatpush.bf16.msrb.mxu1 %v6559_v45  ;;  %v2373_v45 = vadd.f32 %v2372_v35, %v2359_v34  ;;  %v6979_v36 = vor.u32 %v7713_v12, %v6976_v46  ;;  %v7629_v34 = vld [vmem:[#allocation8 + $0x4b4] sm:$0xf]  ;;  %v6760_v35 = vld [vmem:[#allocation8 + $0x5ac] sm:$0xf0] }
 0x1cc   :  { %v7677_v12 = vld [vmem:[#allocation8 + $0x634] sm:$0xf] }
 0x1cd   :  { %v2398_v59 = vmax.f32 %v2373_v45, 0.0  ;;  %v6832_v45 = vld [vmem:[#allocation8 + $0x63c] sm:$0xf0] }
 0x1ce   :  { %4568 = vmatpush.bf16.msrb.mxu0 %v6451_v56  ;;  %v6883_v56 = vor.u32 %v7689_v0, %v6880_v44  ;;  %4593 = vmatpush.bf16.msrb.mxu2 %v6679_v19  ;;  %v7659_v0 = vld [vmem:[#allocation8 + $0x5a4] sm:$0xf]  ;;  %v6943_v44 = vor.u32 %v7704_v23, %v6940_v47  ;;  %v6931_v19 = vor.u32 %v7701_v50, %v6928_v43  ;;  %v6904_v23 = vld [vmem:[#allocation8 + $0x6cc] sm:$0xf0] }
 0x1cf   :  { %4582 = vmatpush.bf16.msrb.mxu1 %v6547_v13  ;;  %v6868_v13 = vld [vmem:[#allocation8 + $0x684] sm:$0xf0]  ;;  %v8227_v6 = vpack.c.bf16 %v2398_v59, %v2386_v57  ;;  %v6763_v49 = vor.u32 %v7659_v0, %v6760_v35  ;;  %v7626_v57 = vld [vmem:[#allocation8 + $0x49c] sm:$0xf]  ;;  %v6907_v35 = vor.u32 %v7695_v48, %v6904_v23 }
 0x1d0   :  { %v6871_v15 = vor.u32 %v7686_v62, %v6868_v13  ;;  %v6628_v59 = vld [vmem:[#allocation8 + $0x4a4] sm:$0xf0]  ;;  %v6835_v62 = vor.u32 %v7677_v12, %v6832_v45  ;;  %v7674_v13 = vld [vmem:[#allocation8 + $0x61c] sm:$0xf]  ;;  %v7647_v45 = vld [vmem:[#allocation8 + $0x544] sm:$0xf] }
 0x1d1   :  { %4501 = vmatmul.bf16.vlgmr.msrb.gmra.mxu3 %v8227_v6  ;;  %v6631_v8 = vor.u32 %v7626_v57, %v6628_v59  ;;  %v6118_v57 = vld [vmem:[#allocation8 + $0x98] sm:$0xf]  ;;  %v7499_v59 = vld [vmem:[#allocation8 + $0xa0] sm:$0xf0]  ;;  %v6190_v23 = vld [vmem:[#allocation8 + $0x128] sm:$0xf] }
 0x1d2   :  { %4569 = vmatpush.bf16.msrb.mxu0 %v6439_v25  ;;  %v6856_v25 = vld [vmem:[#allocation8 + $0x66c] sm:$0xf0]  ;;  %4605 = vmatpush.bf16.msrb.mxu3 %v6799_v10  ;;  %v6820_v10 = vld [vmem:[#allocation8 + $0x624] sm:$0xf0] }
 0x1d3   :  { %4583 = vmatpush.bf16.msrb.mxu1 %v6535_v54  ;;  %v7707_v54 = vld [vmem:[#allocation8 + $0x724] sm:$0xf]  ;;  %v6859_v11 = vor.u32 %v7683_v29, %v6856_v25  ;;  %4594 = vmatpush.bf16.msrb.mxu2 %v6667_v28  ;;  %v6616_v28 = vld [vmem:[#allocation8 + $0x48c] sm:$0xf0]  ;;  %v7653_v25 = vld [vmem:[#allocation8 + $0x574] sm:$0xf] }
 0x1d4   :  { %v6955_v42 = vor.u32 %v7707_v54, %v6952_v17  ;;  %v6736_v54 = vld [vmem:[#allocation8 + $0x57c] sm:$0xf0] }
 0x1d5   :  { %4543 = vmatmul.bf16.vlgmr.msra.gmra.mxu2 %v8151_v33  ;;  %v6739_v47 = vor.u32 %v7653_v25, %v6736_v54  ;;  %v7520_v25 = vld [vmem:[#allocation8 + $0x148] sm:$0xf0]  ;;  %v7731_v54 = vld [vmem:[#allocation8 + $0x7e4] sm:$0xf] }
 0x1d6   :  { %4570 = vmatpush.bf16.msrb.mxu0 %v6427_v26  ;;  %4606 = vmatpush.bf16.msrb.mxu3 %v6787_v18  ;;  %v4348_v53 = vpop.f32.mrf.mxu0 }
 0x1d7   :  { %4584 = vmatpush.bf16.msrb.mxu1 %v6523_v30  ;;  %v4362_v26 = vpop.f32.mrf.mxu1  ;;  %v6655_v30 = vor.u32 %v7632_v63, %v6652_v38  ;;  %v6823_v63 = vor.u32 %v7674_v13, %v6820_v10  ;;  %v6919_v38 = vor.u32 %v7698_v60, %v6916_v2  ;;  %v7734_v13 = vld [vmem:[#allocation8 + $0x7fc] sm:$0xf]  ;;  %v7764_v10 = vld [vmem:[#allocation8 + $0x8ec] sm:$0xf]  ;;  %v7180_v60 = vld [vmem:[#allocation8 + $0x8f4] sm:$0xf0]  ;;  %v6119_v2 = vor.u32 %v7499_v59, %v6118_v57 }
 0x1d8   :  { %v7487_v57 = vld [vmem:[#allocation8 + $0x40] sm:$0xf0] }
 0x1d9   :  { %4571 = vmatmul.bf16.vlgmr.msrb.gmra.mxu0 %v8198_v40  ;;  %4595 = vmatpush.bf16.msrb.mxu2 %v6655_v30  ;;  %v7502_v30 = vld [vmem:[#allocation8 + $0xb8] sm:$0xf0] }
 0x1da   :  { %4619 = vmatpush.bf16.msra.mxu0 %v6895_v37  ;;  %4585 = vmatmul.bf16.vlgmr.msrb.gmra.mxu1 %v8200_v20  ;;  %v4349_v37 = vadd.f32 %v4348_v53, %v2797_v3  ;;  %v7650_v53 = vld [vmem:[#allocation8 + $0x55c] sm:$0xf] }
 0x1db   :  { %4633 = vmatpush.bf16.msra.mxu1 %v6991_v41  ;;  %v6640_v41 = vld [vmem:[#allocation8 + $0x4bc] sm:$0xf0]  ;;  %4607 = vmatpush.bf16.msrb.mxu3 %v6775_v31  ;;  %v7087_v31 = vor.u32 %v7740_v5, %v7084_v39 }
 0x1dc   :  { %v4363_v46 = vadd.f32 %v4362_v26, %v4349_v37  ;;  %v6643_v51 = vor.u32 %v7629_v34, %v6640_v41  ;;  %v6130_v26 = vld [vmem:[#allocation8 + $0xb0] sm:$0xf]  ;;  %v6724_v34 = vld [vmem:[#allocation8 + $0x564] sm:$0xf0]  ;;  %v7526_v41 = vld [vmem:[#allocation8 + $0x178] sm:$0xf0] }
 0x1dd   :  { %v6226_v37 = vld [vmem:[#allocation8 + $0x170] sm:$0xf]  ;;  %v6727_v43 = vor.u32 %v7650_v53, %v6724_v34  ;;  %v7036_v53 = vld [vmem:[#allocation8 + $0x7d4] sm:$0xf0] }
 0x1de   :  { %4620 = vmatpush.bf16.msra.mxu0 %v6883_v56  ;;  %v7656_v56 = vld [vmem:[#allocation8 + $0x58c] sm:$0xf]  ;;  %v4376_v58 = vpop.f32.mrf.mxu2  ;;  %4596 = vmatpush.bf16.msrb.mxu2 %v6643_v51  ;;  %v4350_v1 = vpop.f32.mrf.mxu0  ;;  %v6227_v51 = vor.u32 %v7526_v41, %v6226_v37  ;;  %v6082_v37 = vld [vmem:[#allocation8 + $0x50] sm:$0xf]  ;;  %v7490_v41 = vld [vmem:[#allocation8 + $0x58] sm:$0xf0] }
 0x1df   :  { %4634 = vmatpush.bf16.msra.mxu1 %v6979_v36  ;;  %v6748_v36 = vld [vmem:[#allocation8 + $0x594] sm:$0xf0]  ;;  %v4390_v4 = vpop.f32.mrf.mxu3  ;;  %v4377_v7 = vadd.f32 %v4376_v58, %v4363_v46  ;;  %4608 = vmatpush.bf16.msrb.mxu3 %v6763_v49  ;;  %v4351_v29 = vadd.f32 %v4350_v1, %v2797_v3  ;;  %v4364_v18 = vpop.f32.mrf.mxu1  ;;  %v6131_v46 = vor.u32 %v7502_v30, %v6130_v26  ;;  %v6712_v49 = vld [vmem:[#allocation8 + $0x54c] sm:$0xf0]  ;;  %v7758_v26 = vld [vmem:[#allocation8 + $0x8bc] sm:$0xf] }
 0x1e0   :  { %v7156_v30 = vld [vmem:[#allocation8 + $0x8c4] sm:$0xf0] }
 0x1e1   :  { %v8236_v17 = vadd.f32 %v4390_v4, %v4377_v7  ;;  %4557 = vmatmul.bf16.vlgmr.msra.gmra.mxu3 %v8153_v27  ;;  %v7060_v4 = vld [vmem:[#allocation8 + $0x804] sm:$0xf0]  ;;  %v6715_v7 = vor.u32 %v7647_v45, %v6712_v49  ;;  %v7755_v45 = vld [vmem:[#allocation8 + $0x8a4] sm:$0xf]  ;;  %v6070_v49 = vld [vmem:[#allocation8 + $0x38] sm:$0xf] }
 0x1e2   :  { %4621 = vmatpush.bf16.msra.mxu0 %v6871_v15  ;;  %v6751_v15 = vor.u32 %v7656_v56, %v6748_v36  ;;  %4597 = vmatpush.bf16.msrb.mxu2 %v6631_v8  ;;  %v6106_v8 = vld [vmem:[#allocation8 + $0x80] sm:$0xf] }
 0x1e3   :  { %4635 = vmatpush.bf16.msra.mxu1 %v6967_v52  ;;  %v7623_v52 = vld [vmem:[#allocation8 + $0x484] sm:$0xf] }
 0x1e4   :  { %4609 = vmatpush.bf16.msrb.mxu3 %v6751_v15  ;;  %v6619_v3 = vor.u32 %v7623_v52, %v6616_v28  ;;  %v7496_v15 = vld [vmem:[#allocation8 + $0x88] sm:$0xf0]  ;;  %v7063_v52 = vor.u32 %v7734_v13, %v7060_v4  ;;  %v6202_v28 = vld [vmem:[#allocation8 + $0x140] sm:$0xf]  ;;  %v7012_v13 = vld [vmem:[#allocation8 + $0x7a4] sm:$0xf0] }
 0x1e5   :  { %v6107_v5 = vor.u32 %v7496_v15, %v6106_v8  ;;  %v6203_v39 = vor.u32 %v7520_v25, %v6202_v28  ;;  %v7752_v4 = vld [vmem:[#allocation8 + $0x88c] sm:$0xf]  ;;  %v7719_v28 = vld [vmem:[#allocation8 + $0x784] sm:$0xf]  ;;  %v7000_v25 = vld [vmem:[#allocation8 + $0x78c] sm:$0xf0] }
 0x1e6   :  { %4622 = vmatpush.bf16.msra.mxu0 %v6859_v11  ;;  %v7671_v11 = vld [vmem:[#allocation8 + $0x604] sm:$0xf]  ;;  %v4378_v12 = vpop.f32.mrf.mxu2  ;;  %4598 = vmatpush.bf16.msrb.mxu2 %v6619_v3  ;;  %v7517_v3 = vld [vmem:[#allocation8 + $0x130] sm:$0xf0] }
 0x1e7   :  { %4636 = vmatpush.bf16.msra.mxu1 %v6955_v42  ;;  %v4365_v42 = vadd.f32 %v4364_v18, %v4351_v29  ;;  %v6811_v0 = vor.u32 %v7671_v11, %v6808_v22  ;;  %v4392_v56 = vpop.f32.mrf.mxu3  ;;  %v7183_v29 = vor.u32 %v7764_v10, %v7180_v60  ;;  %v7048_v18 = vld [vmem:[#allocation8 + $0x7ec] sm:$0xf0]  ;;  %v6094_v11 = vld [vmem:[#allocation8 + $0x68] sm:$0xf]  ;;  %v6191_v34 = vor.u32 %v7517_v3, %v6190_v23  ;;  %v7132_v10 = vld [vmem:[#allocation8 + $0x894] sm:$0xf0] }
 0x1e8   :  { %4610 = vmatpush.bf16.msrb.mxu3 %v6739_v47  ;;  %v7051_v22 = vor.u32 %v7731_v54, %v7048_v18  ;;  %v7728_v47 = vld [vmem:[#allocation8 + $0x7cc] sm:$0xf]  ;;  %v6071_v60 = vor.u32 %v7487_v57, %v6070_v49  ;;  %v7135_v15 = vor.u32 %v7752_v4, %v7132_v10  ;;  %v7749_v54 = vld [vmem:[#allocation8 + $0x874] sm:$0xf]  ;;  %v7120_v18 = vld [vmem:[#allocation8 + $0x87c] sm:$0xf0] }
 0x1e9   :  { %v4379_v50 = vadd.f32 %v4378_v12, %v4365_v42  ;;  %4599 = vmatmul.bf16.vlgmr.msrb.gmra.mxu2 %v8202_v16  ;;  %v7493_v42 = vld [vmem:[#allocation8 + $0x70] sm:$0xf0]  ;;  %v7123_v23 = vor.u32 %v7749_v54, %v7120_v18  ;;  %v7595_v49 = vld [vmem:[#allocation8 + $0x3a0] sm:$0xf0]  ;;  %v6598_v57 = vld [vmem:[#allocation8 + $0x458] sm:$0xf] }
 0x1ea   :  { %4623 = vmatpush.bf16.msra.mxu0 %v6847_v55  ;;  %v7737_v55 = vld [vmem:[#allocation8 + $0x814] sm:$0xf]  ;;  %4647 = vmatpush.bf16.msra.mxu2 %v7087_v31  ;;  %v6095_v31 = vor.u32 %v7493_v42, %v6094_v11  ;;  %v6046_v11 = vld [vmem:[#allocation8 + $0x8] sm:$0xf] }
 0x1eb   :  { %4637 = vmatpush.bf16.msra.mxu1 %v6943_v44  ;;  %v7072_v44 = vld [vmem:[#allocation8 + $0x81c] sm:$0xf0]  ;;  %v8239_v58 = vadd.f32 %v4392_v56, %v4379_v50  ;;  %v7725_v12 = vld [vmem:[#allocation8 + $0x7b4] sm:$0xf]  ;;  %v7144_v50 = vld [vmem:[#allocation8 + $0x8ac] sm:$0xf0] }
 0x1ec   :  { %v7075_v36 = vor.u32 %v7737_v55, %v7072_v44  ;;  %4611 = vmatpush.bf16.msrb.mxu3 %v6727_v43  ;;  %v6178_v55 = vld [vmem:[#allocation8 + $0x110] sm:$0xf]  ;;  %v7514_v44 = vld [vmem:[#allocation8 + $0x118] sm:$0xf0]  ;;  %v6083_v43 = vor.u32 %v7490_v41, %v6082_v37  ;;  %v7147_v56 = vor.u32 %v7755_v45, %v7144_v50  ;;  %v7481_v42 = vld [vmem:[#allocation8 + $0x10] sm:$0xf0] }
 0x1ed   :  { %v7505_v3 = vld [vmem:[#allocation8 + $0xd0] sm:$0xf0]  ;;  %v6047_v37 = vor.u32 %v7481_v42, %v6046_v11  ;;  %v7622_v41 = vld [vmem:[#allocation8 + $0x478] sm:$0xf0]  ;;  %v7096_v45 = vld [vmem:[#allocation8 + $0x84c] sm:$0xf0] }
 0x1ee   :  { %4624 = vmatpush.bf16.msra.mxu0 %v6835_v62  ;;  %v6214_v62 = vld [vmem:[#allocation8 + $0x158] sm:$0xf]  ;;  %4648 = vmatpush.bf16.msra.mxu2 %v7075_v36  ;;  %v7613_v11 = vld [vmem:[#allocation8 + $0x430] sm:$0xf0]  ;;  %v7538_v42 = vld [vmem:[#allocation8 + $0x1d8] sm:$0xf0] }
 0x1ef   :  { %4638 = vmatpush.bf16.msra.mxu1 %v6931_v19  ;;  %v7523_v19 = vld [vmem:[#allocation8 + $0x160] sm:$0xf0]  ;;  %v6166_v36 = vld [vmem:[#allocation8 + $0xf8] sm:$0xf] }
 0x1f0   :  { %v6215_v1 = vor.u32 %v7523_v19, %v6214_v62  ;;  %4612 = vmatpush.bf16.msrb.mxu3 %v6715_v7  ;;  %v7511_v62 = vld [vmem:[#allocation8 + $0x100] sm:$0xf0]  ;;  %v7722_v19 = vld [vmem:[#allocation8 + $0x79c] sm:$0xf]  ;;  %v6058_v7 = vld [vmem:[#allocation8 + $0x20] sm:$0xf] }
 0x1f1   :  { %v7015_v8 = vor.u32 %v7722_v19, %v7012_v13  ;;  %v7574_v19 = vld [vmem:[#allocation8 + $0x2f8] sm:$0xf0] }
 0x1f2   :  { %4625 = vmatpush.bf16.msra.mxu0 %v6823_v63  ;;  %v7761_v63 = vld [vmem:[#allocation8 + $0x8d4] sm:$0xf]  ;;  %4649 = vmatpush.bf16.msra.mxu2 %v7063_v52  ;;  %v6154_v52 = vld [vmem:[#allocation8 + $0xe0] sm:$0xf] }
 0x1f3   :  { %4639 = vmatpush.bf16.msra.mxu1 %v6919_v38  ;;  %v7168_v38 = vld [vmem:[#allocation8 + $0x8dc] sm:$0xf0]  ;;  %4613 = vmatmul.bf16.vlgmr.msrb.gmra.mxu3 %v8205_v21 }
 0x1f4   :  { %4661 = vmatpush.bf16.msra.mxu3 %v7183_v29  ;;  %v7171_v48 = vor.u32 %v7761_v63, %v7168_v38  ;;  %v7508_v29 = vld [vmem:[#allocation8 + $0xe8] sm:$0xf0]  ;;  %v6322_v38 = vld [vmem:[#allocation8 + $0x230] sm:$0xf] }
 0x1f6   :  { %4626 = vmatpush.bf16.msra.mxu0 %v6811_v0  ;;  %4650 = vmatpush.bf16.msra.mxu2 %v7051_v22  ;;  %v7039_v0 = vor.u32 %v7728_v47, %v7036_v53  ;;  %v6142_v22 = vld [vmem:[#allocation8 + $0xc8] sm:$0xf]  ;;  %v7746_v47 = vld [vmem:[#allocation8 + $0x85c] sm:$0xf] }
 0x1f7   :  { %4640 = vmatpush.bf16.msra.mxu1 %v6907_v35  ;;  %v7159_v35 = vor.u32 %v7758_v26, %v7156_v30  ;;  %v7108_v53 = vld [vmem:[#allocation8 + $0x864] sm:$0xf0]  ;;  %v6514_v30 = vld [vmem:[#allocation8 + $0x3b0] sm:$0xf] }
 0x1f8   :  { %4662 = vmatpush.bf16.msra.mxu3 %v7171_v48  ;;  %v7003_v48 = vor.u32 %v7719_v28, %v7000_v25  ;;  %v6406_v28 = vld [vmem:[#allocation8 + $0x2d8] sm:$0xf]  ;;  %v7571_v25 = vld [vmem:[#allocation8 + $0x2e0] sm:$0xf0] }
 0x1f9   :  { %4627 = vmatmul.bf16.vlgmr.msra.gmra.mxu0 %v8213_v9 }
 0x1fa   :  { %4675 = vmatpush.bf16.msrb.mxu0 %v6131_v46  ;;  %4641 = vmatmul.bf16.vlgmr.msra.gmra.mxu1 %v8217_v61  ;;  %v7024_v46 = vld [vmem:[#allocation8 + $0x7bc] sm:$0xf0] }
 0x1fb   :  { %4689 = vmatpush.bf16.msrb.mxu1 %v6227_v51  ;;  %v6179_v51 = vor.u32 %v7514_v44, %v6178_v55  ;;  %4651 = vmatpush.bf16.msra.mxu2 %v7039_v0  ;;  %v7027_v59 = vor.u32 %v7725_v12, %v7024_v46  ;;  %v6310_v0 = vld [vmem:[#allocation8 + $0x218] sm:$0xf]  ;;  %v6143_v55 = vor.u32 %v7505_v3, %v6142_v22  ;;  %v7743_v46 = vld [vmem:[#allocation8 + $0x844] sm:$0xf]  ;;  %v6394_v22 = vld [vmem:[#allocation8 + $0x2c0] sm:$0xf] }
 0x1fc   :  { %4663 = vmatpush.bf16.msra.mxu3 %v7159_v35  ;;  %v7547_v35 = vld [vmem:[#allocation8 + $0x220] sm:$0xf0]  ;;  %v7111_v44 = vor.u32 %v7746_v47, %v7108_v53  ;;  %v7099_v13 = vor.u32 %v7743_v46, %v7096_v45  ;;  %v6466_v53 = vld [vmem:[#allocation8 + $0x350] sm:$0xf]  ;;  %v6454_v46 = vld [vmem:[#allocation8 + $0x338] sm:$0xf] }
 0x1fd   :  { %v7583_v45 = vld [vmem:[#allocation8 + $0x340] sm:$0xf0] }
 0x1fe   :  { %4676 = vmatpush.bf16.msrb.mxu0 %v6119_v2  ;;  %v6167_v2 = vor.u32 %v7511_v62, %v6166_v36  ;;  %v7544_v36 = vld [vmem:[#allocation8 + $0x208] sm:$0xf0]  ;;  %v6418_v62 = vld [vmem:[#allocation8 + $0x2f0] sm:$0xf] }
 0x1ff   :  { %4690 = vmatpush.bf16.msrb.mxu1 %v6215_v1  ;;  %v7484_v1 = vld [vmem:[#allocation8 + $0x28] sm:$0xf0]  ;;  %4652 = vmatpush.bf16.msra.mxu2 %v7027_v59  ;;  %v7619_v59 = vld [vmem:[#allocation8 + $0x460] sm:$0xf0] }
 0x200   :  { %4664 = vmatpush.bf16.msra.mxu3 %v7147_v56  ;;  %v6059_v63 = vor.u32 %v7484_v1, %v6058_v7  ;;  %v6298_v56 = vld [vmem:[#allocation8 + $0x200] sm:$0xf]  ;;  %v6599_v10 = vor.u32 %v7619_v59, %v6598_v57  ;;  %v7592_v7 = vld [vmem:[#allocation8 + $0x388] sm:$0xf0]  ;;  %v6370_v59 = vld [vmem:[#allocation8 + $0x290] sm:$0xf] }
 0x201   :  { %v6586_v1 = vld [vmem:[#allocation8 + $0x440] sm:$0xf]  ;;  %v7532_v57 = vld [vmem:[#allocation8 + $0x1a8] sm:$0xf0] }
 0x202   :  { %4677 = vmatpush.bf16.msrb.mxu0 %v6107_v5  ;;  %v7550_v5 = vld [vmem:[#allocation8 + $0x238] sm:$0xf0] }
 0x203   :  { %4691 = vmatpush.bf16.msrb.mxu1 %v6203_v39  ;;  %v6155_v39 = vor.u32 %v7508_v29, %v6154_v52  ;;  %4653 = vmatpush.bf16.msra.mxu2 %v7015_v8  ;;  %v6323_v26 = vor.u32 %v7550_v5, %v6322_v38  ;;  %v6419_v8 = vor.u32 %v7574_v19, %v6418_v62  ;;  %v6286_v52 = vld [vmem:[#allocation8 + $0x1e8] sm:$0xf]  ;;  %v7541_v29 = vld [vmem:[#allocation8 + $0x1f0] sm:$0xf0]  ;;  %v6442_v62 = vld [vmem:[#allocation8 + $0x320] sm:$0xf] }
 0x204   :  { %4665 = vmatpush.bf16.msra.mxu3 %v7135_v15  ;;  %v7616_v15 = vld [vmem:[#allocation8 + $0x448] sm:$0xf0]  ;;  %v6478_v38 = vld [vmem:[#allocation8 + $0x368] sm:$0xf]  ;;  %v7589_v5 = vld [vmem:[#allocation8 + $0x370] sm:$0xf0] }
 0x205   :  { %v6587_v18 = vor.u32 %v7616_v15, %v6586_v1  ;;  %v7529_v1 = vld [vmem:[#allocation8 + $0x190] sm:$0xf0]  ;;  %v7559_v15 = vld [vmem:[#allocation8 + $0x280] sm:$0xf0] }
 0x206   :  { %4678 = vmatpush.bf16.msrb.mxu0 %v6095_v31  ;;  %v7598_v31 = vld [vmem:[#allocation8 + $0x3b8] sm:$0xf0] }
 0x207   :  { %4692 = vmatpush.bf16.msrb.mxu1 %v6191_v34  ;;  %v6610_v34 = vld [vmem:[#allocation8 + $0x470] sm:$0xf]  ;;  %4654 = vmatpush.bf16.msra.mxu2 %v7003_v48  ;;  %v6515_v12 = vor.u32 %v7598_v31, %v6514_v30  ;;  %v7568_v48 = vld [vmem:[#allocation8 + $0x2c8] sm:$0xf0] }
 0x208   :  { %4666 = vmatpush.bf16.msra.mxu3 %v7123_v23  ;;  %v6611_v50 = vor.u32 %v7622_v41, %v6610_v34  ;;  %v6479_v23 = vor.u32 %v7589_v5, %v6478_v38  ;;  %v6562_v30 = vld [vmem:[#allocation8 + $0x410] sm:$0xf]  ;;  %v6395_v31 = vor.u32 %v7568_v48, %v6394_v22  ;;  %v7610_v34 = vld [vmem:[#allocation8 + $0x418] sm:$0xf0]  ;;  %v7535_v41 = vld [vmem:[#allocation8 + $0x1c0] sm:$0xf0] }
 0x209   :  { %v6526_v38 = vld [vmem:[#allocation8 + $0x3c8] sm:$0xf]  ;;  %v7601_v5 = vld [vmem:[#allocation8 + $0x3d0] sm:$0xf0]  ;;  %v7556_v22 = vld [vmem:[#allocation8 + $0x268] sm:$0xf0] }
 0x20a   :  { %4679 = vmatpush.bf16.msrb.mxu0 %v6083_v43  ;;  %v6311_v43 = vor.u32 %v7547_v35, %v6310_v0  ;;  %4655 = vmatmul.bf16.vlgmr.msra.gmra.mxu2 %v8224_v24  ;;  %v6382_v0 = vld [vmem:[#allocation8 + $0x2a8] sm:$0xf]  ;;  %v7565_v35 = vld [vmem:[#allocation8 + $0x2b0] sm:$0xf0]  ;;  %v6994_v48 = vld [vmem:[#allocation8 + $0x770] sm:$0xf] }
 0x20b   :  { %4693 = vmatpush.bf16.msrb.mxu1 %v6179_v51  ;;  %4703 = vmatpush.bf16.msrb.mxu2 %v6323_v26  ;;  %v6502_v51 = vld [vmem:[#allocation8 + $0x398] sm:$0xf]  ;;  %v7586_v26 = vld [vmem:[#allocation8 + $0x358] sm:$0xf0] }
 0x20c   :  { %4667 = vmatpush.bf16.msra.mxu3 %v7111_v44  ;;  %v6503_v4 = vor.u32 %v7595_v49, %v6502_v51  ;;  %v6563_v44 = vor.u32 %v7610_v34, %v6562_v30  ;;  %v7607_v51 = vld [vmem:[#allocation8 + $0x400] sm:$0xf0]  ;;  %v6250_v49 = vld [vmem:[#allocation8 + $0x1a0] sm:$0xf] }
 0x20e   :  { %4680 = vmatpush.bf16.msrb.mxu0 %v6071_v60  ;;  %v6299_v60 = vor.u32 %v7544_v36, %v6298_v56  ;;  %v7562_v56 = vld [vmem:[#allocation8 + $0x298] sm:$0xf0]  ;;  %v6455_v36 = vor.u32 %v7583_v45, %v6454_v46  ;;  %v6682_v46 = vld [vmem:[#allocation8 + $0x500] sm:$0xf]  ;;  %v7640_v45 = vld [vmem:[#allocation8 + $0x508] sm:$0xf0] }
 0x20f   :  { %4694 = vmatpush.bf16.msrb.mxu1 %v6167_v2  ;;  %4704 = vmatpush.bf16.msrb.mxu2 %v6311_v43  ;;  %v6490_v2 = vld [vmem:[#allocation8 + $0x380] sm:$0xf]  ;;  %v6383_v43 = vor.u32 %v7565_v35, %v6382_v0  ;;  %v6886_v0 = vld [vmem:[#allocation8 + $0x698] sm:$0xf]  ;;  %v7691_v35 = vld [vmem:[#allocation8 + $0x6a0] sm:$0xf0] }
 0x210   :  { %4668 = vmatpush.bf16.msra.mxu3 %v7099_v13  ;;  %v6491_v54 = vor.u32 %v7592_v7, %v6490_v2  ;;  %v6251_v13 = vor.u32 %v7532_v57, %v6250_v49  ;;  %v6371_v2 = vor.u32 %v7562_v56, %v6370_v59  ;;  %v6238_v7 = vld [vmem:[#allocation8 + $0x188] sm:$0xf]  ;;  %v6874_v59 = vld [vmem:[#allocation8 + $0x680] sm:$0xf]  ;;  %v7688_v56 = vld [vmem:[#allocation8 + $0x688] sm:$0xf0] }
 0x212   :  { %4681 = vmatpush.bf16.msrb.mxu0 %v6059_v63  ;;  %v6287_v63 = vor.u32 %v7541_v29, %v6286_v52  ;;  %v6706_v52 = vld [vmem:[#allocation8 + $0x530] sm:$0xf]  ;;  %v7646_v29 = vld [vmem:[#allocation8 + $0x538] sm:$0xf0] }
 0x213   :  { %4695 = vmatpush.bf16.msrb.mxu1 %v6155_v39  ;;  %4705 = vmatpush.bf16.msrb.mxu2 %v6299_v60  ;;  %v6574_v39 = vld [vmem:[#allocation8 + $0x428] sm:$0xf]  ;;  %v7604_v60 = vld [vmem:[#allocation8 + $0x3e8] sm:$0xf0] }
 0x214   :  { %4717 = vmatpush.bf16.msrb.mxu3 %v6419_v8  ;;  %v6575_v3 = vor.u32 %v7613_v11, %v6574_v39  ;;  %v6358_v8 = vld [vmem:[#allocation8 + $0x278] sm:$0xf]  ;;  %v6346_v11 = vld [vmem:[#allocation8 + $0x260] sm:$0xf] }
 0x215   :  { %4669 = vmatmul.bf16.vlgmr.msra.gmra.mxu3 %v8227_v6  ;;  %v6359_v39 = vor.u32 %v7559_v15, %v6358_v8  ;;  %v6347_v34 = vor.u32 %v7556_v22, %v6346_v11  ;;  %v7685_v8 = vld [vmem:[#allocation8 + $0x670] sm:$0xf0]  ;;  %v6946_v11 = vld [vmem:[#allocation8 + $0x710] sm:$0xf]  ;;  %v7631_v22 = vld [vmem:[#allocation8 + $0x4c0] sm:$0xf0] }
 0x216   :  { %4682 = vmatpush.bf16.msrb.mxu0 %v6047_v37  ;;  %v6262_v37 = vld [vmem:[#allocation8 + $0x1b8] sm:$0xf] }
 0x217   :  { %4696 = vmatpush.bf16.msrb.mxu1 %v6143_v55  ;;  %4706 = vmatpush.bf16.msrb.mxu2 %v6287_v63  ;;  %v6467_v55 = vor.u32 %v7586_v26, %v6466_v53  ;;  %v7577_v63 = vld [vmem:[#allocation8 + $0x310] sm:$0xf0]  ;;  %v7643_v53 = vld [vmem:[#allocation8 + $0x520] sm:$0xf0]  ;;  %v6527_v26 = vor.u32 %v7601_v5, %v6526_v38  ;;  %v6850_v38 = vld [vmem:[#allocation8 + $0x650] sm:$0xf] }
 0x218   :  { %v7682_v5 = vld [vmem:[#allocation8 + $0x658] sm:$0xf0] }
 0x219   :  { %4683 = vmatmul.bf16.vlgmr.msrb.gmra.mxu0 %v8147_v14  ;;  %v6407_v14 = vor.u32 %v7571_v25, %v6406_v28  ;;  %v6430_v25 = vld [vmem:[#allocation8 + $0x308] sm:$0xf] }
 0x21a   :  { %4731 = vmatpush.bf16.msra.mxu0 %v6515_v12  ;;  %4697 = vmatmul.bf16.vlgmr.msrb.gmra.mxu1 %v8149_v32  ;;  %v6274_v32 = vld [vmem:[#allocation8 + $0x1d0] sm:$0xf]  ;;  %v6263_v12 = vor.u32 %v7535_v41, %v6262_v37  ;;  %v7553_v41 = vld [vmem:[#allocation8 + $0x250] sm:$0xf0] }
 0x21b   :  { %4745 = vmatpush.bf16.msra.mxu1 %v6611_v50  ;;  %v6275_v47 = vor.u32 %v7538_v42, %v6274_v32  ;;  %4718 = vmatpush.bf16.msrb.mxu3 %v6407_v14  ;;  %v6550_v50 = vld [vmem:[#allocation8 + $0x3f8] sm:$0xf]  ;;  %v6707_v14 = vor.u32 %v7646_v29, %v6706_v52  ;;  %v6898_v32 = vld [vmem:[#allocation8 + $0x6b0] sm:$0xf]  ;;  %v7694_v42 = vld [vmem:[#allocation8 + $0x6b8] sm:$0xf0] }
 0x21c   :  { %v6551_v19 = vor.u32 %v7607_v51, %v6550_v50  ;;  %v6899_v30 = vor.u32 %v7694_v42, %v6898_v32  ;;  %v6802_v50 = vld [vmem:[#allocation8 + $0x5f0] sm:$0xf]  ;;  %v6887_v51 = vor.u32 %v7691_v35, %v6886_v0  ;;  %v6958_v52 = vld [vmem:[#allocation8 + $0x728] sm:$0xf]  ;;  %v7709_v29 = vld [vmem:[#allocation8 + $0x730] sm:$0xf0] }
 0x21d   :  { %4707 = vmatpush.bf16.msrb.mxu2 %v6275_v47  ;;  %v6694_v47 = vld [vmem:[#allocation8 + $0x518] sm:$0xf]  ;;  %v7706_v32 = vld [vmem:[#allocation8 + $0x718] sm:$0xf0]  ;;  %v6754_v0 = vld [vmem:[#allocation8 + $0x590] sm:$0xf] }
 0x21e   :  { %4732 = vmatpush.bf16.msra.mxu0 %v6503_v4  ;;  %v7580_v4 = vld [vmem:[#allocation8 + $0x328] sm:$0xf0]  ;;  %v6646_v42 = vld [vmem:[#allocation8 + $0x4b8] sm:$0xf]  ;;  %v7658_v35 = vld [vmem:[#allocation8 + $0x598] sm:$0xf0] }
 0x21f   :  { %4746 = vmatpush.bf16.msra.mxu1 %v6599_v10  ;;  %4719 = vmatpush.bf16.msrb.mxu3 %v6395_v31  ;;  %v6538_v10 = vld [vmem:[#allocation8 + $0x3e0] sm:$0xf]  ;;  %v6443_v28 = vor.u32 %v7580_v4, %v6442_v62  ;;  %v6334_v31 = vld [vmem:[#allocation8 + $0x248] sm:$0xf]  ;;  %v7637_v4 = vld [vmem:[#allocation8 + $0x4f0] sm:$0xf0] }
 0x220   :  { %v6335_v49 = vor.u32 %v7553_v41, %v6334_v31  ;;  %v6934_v31 = vld [vmem:[#allocation8 + $0x6f8] sm:$0xf]  ;;  %v7628_v41 = vld [vmem:[#allocation8 + $0x4a8] sm:$0xf0] }
 0x221   :  { %4708 = vmatpush.bf16.msrb.mxu2 %v6263_v12  ;;  %v7715_v12 = vld [vmem:[#allocation8 + $0x760] sm:$0xf0] }
 0x222   :  { %4733 = vmatpush.bf16.msra.mxu0 %v6491_v54  ;;  %v6539_v54 = vor.u32 %v7604_v60, %v6538_v10  ;;  %v6790_v10 = vld [vmem:[#allocation8 + $0x5d8] sm:$0xf]  ;;  %v7667_v60 = vld [vmem:[#allocation8 + $0x5e0] sm:$0xf0] }
 0x223   :  { %4747 = vmatpush.bf16.msra.mxu1 %v6587_v18  ;;  %4720 = vmatpush.bf16.msrb.mxu3 %v6383_v43  ;;  %v6239_v18 = vor.u32 %v7529_v1, %v6238_v7  ;;  %v7670_v43 = vld [vmem:[#allocation8 + $0x5f8] sm:$0xf0]  ;;  %v6862_v1 = vld [vmem:[#allocation8 + $0x668] sm:$0xf]  ;;  %v6791_v15 = vor.u32 %v7667_v60, %v6790_v10 }
 0x224   :  { %v6803_v62 = vor.u32 %v7670_v43, %v6802_v50  ;;  %v6755_v50 = vor.u32 %v7658_v35, %v6754_v0  ;;  %v6922_v43 = vld [vmem:[#allocation8 + $0x6e0] sm:$0xf] }
 0x225   :  { %4709 = vmatpush.bf16.msrb.mxu2 %v6251_v13  ;;  %v6670_v13 = vld [vmem:[#allocation8 + $0x4e8] sm:$0xf] }
 0x226   :  { %4734 = vmatpush.bf16.msra.mxu0 %v6479_v23  ;;  %v7718_v23 = vld [vmem:[#allocation8 + $0x778] sm:$0xf0] }
 0x227   :  { %4748 = vmatpush.bf16.msra.mxu1 %v6575_v3  ;;  %4721 = vmatpush.bf16.msrb.mxu3 %v6371_v2  ;;  %v6431_v3 = vor.u32 %v7577_v63, %v6430_v25  ;;  %v6995_v37 = vor.u32 %v7718_v23, %v6994_v48  ;;  %v6875_v2 = vor.u32 %v7688_v56, %v6874_v59  ;;  %v7634_v25 = vld [vmem:[#allocation8 + $0x4d8] sm:$0xf0]  ;;  %v6766_v48 = vld [vmem:[#allocation8 + $0x5a8] sm:$0xf]  ;;  %v7661_v23 = vld [vmem:[#allocation8 + $0x5b0] sm:$0xf0] }
 0x228   :  { %v6959_v63 = vor.u32 %v7709_v29, %v6958_v52  ;;  %v6742_v59 = vld [vmem:[#allocation8 + $0x578] sm:$0xf]  ;;  %v7655_v56 = vld [vmem:[#allocation8 + $0x580] sm:$0xf0] }
 0x229   :  { %4710 = vmatpush.bf16.msrb.mxu2 %v6239_v18  ;;  %v6863_v18 = vor.u32 %v7685_v8, %v6862_v1  ;;  %v6743_v60 = vor.u32 %v7655_v56, %v6742_v59  ;;  %v6730_v8 = vld [vmem:[#allocation8 + $0x560] sm:$0xf]  ;;  %v7078_v52 = vld [vmem:[#allocation8 + $0x818] sm:$0xf]  ;;  %v7739_v29 = vld [vmem:[#allocation8 + $0x820] sm:$0xf0] }
 0x22a   :  { %4735 = vmatpush.bf16.msra.mxu0 %v6467_v55  ;;  %v6695_v55 = vor.u32 %v7643_v53, %v6694_v47  ;;  %v6838_v47 = vld [vmem:[#allocation8 + $0x638] sm:$0xf]  ;;  %v7679_v53 = vld [vmem:[#allocation8 + $0x640] sm:$0xf0]  ;;  %v7138_v59 = vld [vmem:[#allocation8 + $0x890] sm:$0xf] }
 0x22b   :  { %4749 = vmatpush.bf16.msra.mxu1 %v6563_v44  ;;  %4722 = vmatpush.bf16.msrb.mxu3 %v6359_v39  ;;  %v6982_v44 = vld [vmem:[#allocation8 + $0x758] sm:$0xf] }
 0x22c   :  { %4711 = vmatmul.bf16.vlgmr.msrb.gmra.mxu2 %v8151_v33  ;;  %v6983_v57 = vor.u32 %v7715_v12, %v6982_v44  ;;  %v7712_v33 = vld [vmem:[#allocation8 + $0x748] sm:$0xf0]  ;;  %v6826_v12 = vld [vmem:[#allocation8 + $0x620] sm:$0xf] }
 0x22d   :  { %4759 = vmatpush.bf16.msra.mxu2 %v6707_v14 }
 0x22e   :  { %4736 = vmatpush.bf16.msra.mxu0 %v6455_v36  ;;  %v6683_v36 = vor.u32 %v7640_v45, %v6682_v46  ;;  %v7676_v46 = vld [vmem:[#allocation8 + $0x628] sm:$0xf0] }
 0x22f   :  { %4750 = vmatpush.bf16.msra.mxu1 %v6551_v19  ;;  %4723 = vmatpush.bf16.msrb.mxu3 %v6347_v34  ;;  %v6970_v19 = vld [vmem:[#allocation8 + $0x740] sm:$0xf]  ;;  %v7703_v34 = vld [vmem:[#allocation8 + $0x700] sm:$0xf0] }
 0x230   :  { %v6971_v7 = vor.u32 %v7712_v33, %v6970_v19  ;;  %v6935_v44 = vor.u32 %v7703_v34, %v6934_v31  ;;  %v7742_v19 = vld [vmem:[#allocation8 + $0x838] sm:$0xf0] }
 0x231   :  { %4760 = vmatpush.bf16.msra.mxu2 %v6695_v55  ;;  %v6839_v55 = vor.u32 %v7679_v53, %v6838_v47  ;;  %v7763_v47 = vld [vmem:[#allocation8 + $0x8e0] sm:$0xf0]  ;;  %v8262_v53 = vpop.f32.mrf.mxu3  ;;  %v7730_v34 = vld [vmem:[#allocation8 + $0x7d8] sm:$0xf0] }
 0x232   :  { %4737 = vmatpush.bf16.msra.mxu0 %v6443_v28  ;;  %v6658_v28 = vld [vmem:[#allocation8 + $0x4d0] sm:$0xf] }
 0x233   :  { %4751 = vmatpush.bf16.msra.mxu1 %v6539_v54  ;;  %4724 = vmatpush.bf16.msrb.mxu3 %v6335_v49  ;;  %v6778_v54 = vld [vmem:[#allocation8 + $0x5c0] sm:$0xf]  ;;  %v6659_v39 = vor.u32 %v7634_v25, %v6658_v28  ;;  %v6622_v49 = vld [vmem:[#allocation8 + $0x488] sm:$0xf]  ;;  %v8253_v25 = vpop.f32.mrf.mxu0 }
 0x235   :  { %4761 = vmatpush.bf16.msra.mxu2 %v6683_v36  ;;  %v6827_v36 = vor.u32 %v7676_v46, %v6826_v12  ;;  %v7150_v12 = vld [vmem:[#allocation8 + $0x8a8] sm:$0xf]  ;;  %v7757_v46 = vld [vmem:[#allocation8 + $0x8b0] sm:$0xf0] }
 0x236   :  { %4738 = vmatpush.bf16.msra.mxu0 %v6431_v3  ;;  %4725 = vmatmul.bf16.vlgmr.msrb.gmra.mxu3 %v8153_v27  ;;  %v6851_v3 = vor.u32 %v7682_v5, %v6850_v38  ;;  %v6947_v27 = vor.u32 %v7706_v32, %v6946_v11  ;;  %v6718_v38 = vld [vmem:[#allocation8 + $0x548] sm:$0xf]  ;;  %v7649_v5 = vld [vmem:[#allocation8 + $0x550] sm:$0xf0]  ;;  %v7186_v11 = vld [vmem:[#allocation8 + $0x8f0] sm:$0xf] }
 0x237   :  { %4752 = vmatpush.bf16.msra.mxu1 %v6527_v26  ;;  %4773 = vmatpush.bf16.msra.mxu3 %v6803_v62  ;;  %v6647_v26 = vor.u32 %v7631_v22, %v6646_v42  ;;  %v7090_v62 = vld [vmem:[#allocation8 + $0x830] sm:$0xf]  ;;  %v7766_v32 = vld [vmem:[#allocation8 + $0x8f8] sm:$0xf0]  ;;  %v6719_v42 = vor.u32 %v7649_v5, %v6718_v38 }
 0x238   :  { %v7091_v1 = vor.u32 %v7742_v19, %v7090_v62 }
 0x239   :  { %4739 = vmatmul.bf16.vlgmr.msra.gmra.mxu0 %v8198_v40  ;;  %v6671_v40 = vor.u32 %v7637_v4, %v6670_v13  ;;  %v6814_v13 = vld [vmem:[#allocation8 + $0x608] sm:$0xf]  ;;  %v7673_v4 = vld [vmem:[#allocation8 + $0x610] sm:$0xf0] }
 0x23a   :  { %4787 = vmatpush.bf16.msrb.mxu0 %v6899_v30  ;;  %4753 = vmatmul.bf16.vlgmr.msra.gmra.mxu1 %v8200_v20  ;;  %v7664_v20 = vld [vmem:[#allocation8 + $0x5c8] sm:$0xf0]  ;;  %v6767_v30 = vor.u32 %v7661_v23, %v6766_v48  ;;  %v7187_v48 = vor.u32 %v7766_v32, %v7186_v11  ;;  %v7054_v23 = vld [vmem:[#allocation8 + $0x7e8] sm:$0xf] }
 0x23b   :  { %4801 = vmatpush.bf16.msrb.mxu1 %v6995_v37  ;;  %4762 = vmatpush.bf16.msra.mxu2 %v6671_v40  ;;  %v6779_v14 = vor.u32 %v7664_v20, %v6778_v54  ;;  %v6634_v37 = vld [vmem:[#allocation8 + $0x4a0] sm:$0xf]  ;;  %v7652_v40 = vld [vmem:[#allocation8 + $0x568] sm:$0xf0]  ;;  %v8255_v20 = vpop.f32.mrf.mxu1  ;;  %v8264_v31 = vpop.f32.mrf.mxu0 }
 0x23c   :  { %4774 = vmatpush.bf16.msra.mxu3 %v6791_v15  ;;  %v6635_v45 = vor.u32 %v7628_v41, %v6634_v37  ;;  %v6815_v15 = vor.u32 %v7673_v4, %v6814_v13  ;;  %v6731_v54 = vor.u32 %v7652_v40, %v6730_v8  ;;  %v7760_v37 = vld [vmem:[#allocation8 + $0x8c8] sm:$0xf0]  ;;  %v7721_v13 = vld [vmem:[#allocation8 + $0x790] sm:$0xf0]  ;;  %v7126_v4 = vld [vmem:[#allocation8 + $0x878] sm:$0xf] }
 0x23d   :  { %v7748_v8 = vld [vmem:[#allocation8 + $0x868] sm:$0xf0] }
 0x23e   :  { %4788 = vmatpush.bf16.msrb.mxu0 %v6887_v51  ;;  %v7700_v51 = vld [vmem:[#allocation8 + $0x6e8] sm:$0xf0] }
 0x23f   :  { %4802 = vmatpush.bf16.msrb.mxu1 %v6983_v57  ;;  %4763 = vmatpush.bf16.msra.mxu2 %v6659_v39  ;;  %v7625_v57 = vld [vmem:[#allocation8 + $0x490] sm:$0xf0]  ;;  %v6923_v33 = vor.u32 %v7700_v51, %v6922_v43  ;;  %v7066_v39 = vld [vmem:[#allocation8 + $0x800] sm:$0xf]  ;;  %v7151_v43 = vor.u32 %v7757_v46, %v7150_v12 }
 0x240   :  { %4775 = vmatpush.bf16.msra.mxu3 %v6779_v14  ;;  %v6623_v10 = vor.u32 %v7625_v57, %v6622_v49  ;;  %v7736_v14 = vld [vmem:[#allocation8 + $0x808] sm:$0xf0]  ;;  %v7018_v51 = vld [vmem:[#allocation8 + $0x7a0] sm:$0xf] }
 0x241   :  { %v7067_v22 = vor.u32 %v7736_v14, %v7066_v39  ;;  %v7724_v57 = vld [vmem:[#allocation8 + $0x7a8] sm:$0xf0] }
 0x242   :  { %4789 = vmatpush.bf16.msrb.mxu0 %v6875_v2  ;;  %v6910_v2 = vld [vmem:[#allocation8 + $0x6c8] sm:$0xf]  ;;  %v7019_v62 = vor.u32 %v7724_v57, %v7018_v51 }
 0x243   :  { %4803 = vmatpush.bf16.msrb.mxu1 %v6971_v7  ;;  %4764 = vmatpush.bf16.msra.mxu2 %v6647_v26  ;;  %v7697_v7 = vld [vmem:[#allocation8 + $0x6d0] sm:$0xf0]  ;;  %v8266_v41 = vpop.f32.mrf.mxu1  ;;  %v8273_v49 = vpop.f32.mrf.mxu0 }
 0x244   :  { %4776 = vmatpush.bf16.msra.mxu3 %v6767_v30  ;;  %v6911_v28 = vor.u32 %v7697_v7, %v6910_v2  ;;  %v7042_v30 = vld [vmem:[#allocation8 + $0x7d0] sm:$0xf] }
 0x246   :  { %4790 = vmatpush.bf16.msrb.mxu0 %v6863_v18  ;;  %v8257_v18 = vpop.f32.mrf.mxu2 }
 0x247   :  { %4804 = vmatpush.bf16.msrb.mxu1 %v6959_v63  ;;  %4765 = vmatpush.bf16.msra.mxu2 %v6635_v45  ;;  %v7079_v63 = vor.u32 %v7739_v29, %v7078_v52  ;;  %v8271_v45 = vpop.f32.mrf.mxu3 }
 0x248   :  { %4777 = vmatpush.bf16.msra.mxu3 %v6755_v50 }
 0x24a   :  { %4791 = vmatpush.bf16.msrb.mxu0 %v6851_v3  ;;  %v7733_v3 = vld [vmem:[#allocation8 + $0x7f0] sm:$0xf0] }
 0x24b   :  { %4805 = vmatpush.bf16.msrb.mxu1 %v6947_v27  ;;  %4766 = vmatpush.bf16.msra.mxu2 %v6623_v10  ;;  %v7174_v27 = vld [vmem:[#allocation8 + $0x8d8] sm:$0xf]  ;;  %v8275_v56 = vpop.f32.mrf.mxu1  ;;  %v7751_v10 = vld [vmem:[#allocation8 + $0x880] sm:$0xf0]  ;;  %v8281_v40 = vpop.f32.mrf.mxu0 }
 0x24c   :  { %4778 = vmatpush.bf16.msra.mxu3 %v6743_v60  ;;  %v7175_v26 = vor.u32 %v7763_v47, %v7174_v27  ;;  %v7127_v7 = vor.u32 %v7751_v10, %v7126_v4 }
 0x24e   :  { %4792 = vmatpush.bf16.msrb.mxu0 %v6839_v55  ;;  %4767 = vmatmul.bf16.vlgmr.msra.gmra.mxu2 %v8202_v16  ;;  %v7055_v16 = vor.u32 %v7733_v3, %v7054_v23  ;;  %v8268_v0 = vpop.f32.mrf.mxu2  ;;  %v7030_v55 = vld [vmem:[#allocation8 + $0x7b8] sm:$0xf] }
 0x24f   :  { %4806 = vmatpush.bf16.msrb.mxu1 %v6935_v44  ;;  %4815 = vmatpush.bf16.msrb.mxu2 %v7091_v1  ;;  %v7727_v44 = vld [vmem:[#allocation8 + $0x7c0] sm:$0xf0]  ;;  %v7114_v1 = vld [vmem:[#allocation8 + $0x860] sm:$0xf] }
 0x250   :  { %4779 = vmatpush.bf16.msra.mxu3 %v6731_v54  ;;  %v7031_v50 = vor.u32 %v7727_v44, %v7030_v55  ;;  %v7115_v29 = vor.u32 %v7748_v8, %v7114_v1  ;;  %v7745_v54 = vld [vmem:[#allocation8 + $0x850] sm:$0xf0]  ;;  %v4405_v55 = vadd.f32 %v8253_v25, %v8236_v17 }
 0x252   :  { %4793 = vmatpush.bf16.msrb.mxu0 %v6827_v36  ;;  %v4419_v51 = vadd.f32 %v8255_v20, %v4405_v55 }
 0x253   :  { %4807 = vmatpush.bf16.msrb.mxu1 %v6923_v33  ;;  %4816 = vmatpush.bf16.msrb.mxu2 %v7079_v63  ;;  %v7006_v33 = vld [vmem:[#allocation8 + $0x788] sm:$0xf]  ;;  %v4516_v5 = vpop.f32.mrf.mxu0 }
 0x254   :  { %4780 = vmatpush.bf16.msra.mxu3 %v6719_v42  ;;  %v8279_v60 = vpop.f32.mrf.mxu3  ;;  %v7007_v2 = vor.u32 %v7721_v13, %v7006_v33  ;;  %v4407_v33 = vadd.f32 %v8264_v31, %v8239_v58 }
 0x256   :  { %4794 = vmatpush.bf16.msrb.mxu0 %v6815_v15  ;;  %v8277_v36 = vpop.f32.mrf.mxu2  ;;  %v8283_v15 = vpop.f32.mrf.mxu1 }
 0x257   :  { %4808 = vmatpush.bf16.msrb.mxu1 %v6911_v28  ;;  %4817 = vmatpush.bf16.msrb.mxu2 %v7067_v22  ;;  %v7102_v28 = vld [vmem:[#allocation8 + $0x848] sm:$0xf] }
 0x258   :  { %4829 = vmatpush.bf16.msrb.mxu3 %v7187_v48  ;;  %v7103_v63 = vor.u32 %v7745_v54, %v7102_v28  ;;  %v8291_v48 = vld [vmem:[#allocation10] sm:$0x7] }
 0x259   :  { %4795 = vmatmul.bf16.vlgmr.msrb.gmra.mxu0 %v8213_v9  ;;  %v7162_v9 = vld [vmem:[#allocation8 + $0x8c0] sm:$0xf]  ;;  %4781 = vmatmul.bf16.vlgmr.msra.gmra.mxu3 %v8205_v21  ;;  %v7754_v21 = vld [vmem:[#allocation8 + $0x898] sm:$0xf0]  ;;  %v2798_v23 = vperm.slane %v8291_v48, 1 }
 0x25a   :  { %4809 = vmatmul.bf16.vlgmr.msrb.gmra.mxu1 %v8217_v61  ;;  %v7043_v61 = vor.u32 %v7730_v34, %v7042_v30  ;;  %v7163_v35 = vor.u32 %v7760_v37, %v7162_v9  ;;  %v7139_v19 = vor.u32 %v7754_v21, %v7138_v59  ;;  %v4433_v59 = vadd.f32 %v8257_v18, %v4419_v51 }
 0x25b   :  { %4818 = vmatpush.bf16.msrb.mxu2 %v7055_v16  ;;  %v4518_v32 = vpop.f32.mrf.mxu0  ;;  %v4517_v3 = vadd.f32 %v4516_v5, %v2798_v23 }
 0x25c   :  { %4830 = vmatpush.bf16.msrb.mxu3 %v7175_v26  ;;  %v8288_v38 = vpop.f32.mrf.mxu3  ;;  %v4519_v9 = vadd.f32 %v4518_v32, %v2798_v23  ;;  %v4447_v4 = vadd.f32 %v8262_v53, %v4433_v59 }
 0x25e   :  { %v8285_v52 = vpop.f32.mrf.mxu2  ;;  %v4530_v39 = vpop.f32.mrf.mxu1  ;;  %v4461_v20 = vadd.f32 %v8273_v49, %v4447_v4 }
 0x25f   :  { %4819 = vmatpush.bf16.msrb.mxu2 %v7043_v61  ;;  %v4531_v47 = vadd.f32 %v4530_v39, %v4517_v3 }
 0x260   :  { %4831 = vmatpush.bf16.msrb.mxu3 %v7163_v35  ;;  %v4475_v8 = vadd.f32 %v8275_v56, %v4461_v20 }
 0x262   :  { %v4489_v58 = vadd.f32 %v8277_v36, %v4475_v8 }
 0x263   :  { %4820 = vmatpush.bf16.msrb.mxu2 %v7031_v50 }
 0x264   :  { %4832 = vmatpush.bf16.msrb.mxu3 %v7151_v43  ;;  %v4558_v11 = vpop.f32.mrf.mxu3  ;;  %v4503_v5 = vadd.f32 %v8279_v60, %v4489_v58 }
 0x266   :  { %v4544_v14 = vpop.f32.mrf.mxu2  ;;  %v4532_v42 = vpop.f32.mrf.mxu1 }
 0x267   :  { %4821 = vmatpush.bf16.msrb.mxu2 %v7019_v62  ;;  %v4545_v16 = vadd.f32 %v4544_v14, %v4531_v47  ;;  %v4533_v37 = vadd.f32 %v4532_v42, %v4519_v9 }
 0x268   :  { %4833 = vmatpush.bf16.msrb.mxu3 %v7139_v19 }
 0x269   :  { %v4559_v34 = vadd.f32 %v4558_v11, %v4545_v16  ;;  %v2799_v16 = vperm.slane %v8291_v48, 2 }
 0x26b   :  { %4822 = vmatpush.bf16.msrb.mxu2 %v7007_v2 }
 0x26c   :  { %4834 = vmatpush.bf16.msrb.mxu3 %v7127_v7  ;;  %v4560_v27 = vpop.f32.mrf.mxu3  ;;  %v4421_v7 = vadd.f32 %v8266_v41, %v4407_v33 }
 0x26e   :  { %4823 = vmatmul.bf16.vlgmr.msrb.gmra.mxu2 %v8224_v24  ;;  %v4546_v22 = vpop.f32.mrf.mxu2  ;;  %v4572_v24 = vpop.f32.mrf.mxu0  ;;  %v4435_v18 = vadd.f32 %v8268_v0, %v4421_v7 }
 0x26f   :  { %v4586_v26 = vpop.f32.mrf.mxu1  ;;  %v4573_v61 = vadd.f32 %v4572_v24, %v4559_v34  ;;  %v4547_v44 = vadd.f32 %v4546_v22, %v4533_v37 }
 0x270   :  { %4835 = vmatpush.bf16.msrb.mxu3 %v7115_v29 }
 0x271   :  { %v4561_v12 = vadd.f32 %v4560_v27, %v4547_v44  ;;  %v4587_v46 = vadd.f32 %v4586_v26, %v4573_v61 }
 0x274   :  { %4836 = vmatpush.bf16.msrb.mxu3 %v7103_v63  ;;  %v4449_v63 = vadd.f32 %v8271_v45, %v4435_v18 }
 0x276   :  { %v4600_v30 = vpop.f32.mrf.mxu2  ;;  %v4614_v35 = vpop.f32.mrf.mxu3  ;;  %v4463_v49 = vadd.f32 %v8281_v40, %v4449_v63 }
 0x277   :  { %4837 = vmatmul.bf16.vlgmr.msrb.gmra.mxu3 %v8227_v6  ;;  %v4574_v6 = vpop.f32.mrf.mxu0  ;;  %v4588_v50 = vpop.f32.mrf.mxu1  ;;  %v4601_v57 = vadd.f32 %v4600_v30, %v4587_v46 }
 0x278   :  { %v4575_v21 = vadd.f32 %v4574_v6, %v4561_v12  ;;  %v4477_v56 = vadd.f32 %v8283_v15, %v4463_v49 }
 0x279   :  { %v4615_v62 = vadd.f32 %v4614_v35, %v4601_v57 }
 0x27a   :  { %v4589_v17 = vadd.f32 %v4588_v50, %v4575_v21  ;;  %v4491_v36 = vadd.f32 %v8285_v52, %v4477_v56 }
 0x27c   :  { %v4505_v23 = vadd.f32 %v8288_v38, %v4491_v36 }
 0x27e   :  { %v4602_v43 = vpop.f32.mrf.mxu2  ;;  %v4616_v13 = vpop.f32.mrf.mxu3 }
 0x27f   :  { %v4628_v19 = vpop.f32.mrf.mxu0  ;;  %v4642_v10 = vpop.f32.mrf.mxu1  ;;  %v4603_v1 = vadd.f32 %v4602_v43, %v4589_v17 }
 0x280   :  { %v4629_v25 = vadd.f32 %v4628_v19, %v4615_v62 }
 0x281   :  { %v4617_v29 = vadd.f32 %v4616_v13, %v4603_v1 }
 0x282   :  { %v4643_v28 = vadd.f32 %v4642_v10, %v4629_v25 }
 0x287   :  { %v4630_v54 = vpop.f32.mrf.mxu0  ;;  %v4644_v11 = vpop.f32.mrf.mxu1 }
 0x288   :  { %v4631_v39 = vadd.f32 %v4630_v54, %v4617_v29 }
 0x28a   :  { %v4645_v32 = vadd.f32 %v4644_v11, %v4631_v39 }
 0x28d   :  { %v4656_v2 = vpop.f32.mrf.mxu2 }
 0x28e   :  { %v4657_v31 = vadd.f32 %v4656_v2, %v4643_v28 }
 0x295   :  { %v4658_v0 = vpop.f32.mrf.mxu2 }
 0x296   :  { %v4659_v42 = vadd.f32 %v4658_v0, %v4645_v32  ;;  %v4684_v60 = vpop.f32.mrf.mxu0 }
 0x297   :  { %v4698_v24 = vpop.f32.mrf.mxu1  ;;  %v4685_v30 = vadd.f32 %v4684_v60, %v2799_v16 }
 0x298   :  { %v4670_v53 = vpop.f32.mrf.mxu3 }
 0x299   :  { %v4671_v41 = vadd.f32 %v4670_v53, %v4657_v31  ;;  %v4699_v9 = vadd.f32 %v4698_v24, %v4685_v30 }
 0x29b   :  { %v4843_v14 = vpack.c.bf16 %v4671_v41, %v4503_v5 }
 0x29d   :  { %4847 = vst [vmem:[#allocation11] sm:$0xff] %v4843_v14 }
 0x29e   :  { %v4686_v40 = vpop.f32.mrf.mxu0 }
 0x29f   :  { %v4700_v26 = vpop.f32.mrf.mxu1  ;;  %v4687_v38 = vadd.f32 %v4686_v40, %v2799_v16 }
 0x2a0   :  { %v4672_v22 = vpop.f32.mrf.mxu3 }
 0x2a1   :  { %v4673_v45 = vadd.f32 %v4672_v22, %v4659_v42  ;;  %v4701_v55 = vadd.f32 %v4700_v26, %v4687_v38 }
 0x2a3   :  { %v4845_v3 = vpack.c.bf16 %v4673_v45, %v4505_v23 }
 0x2a5   :  { %4849 = vst [vmem:[#allocation11 + $0xc] sm:$0xff] %v4845_v3 }
 0x2af   :  { %v4712_v27 = vpop.f32.mrf.mxu2 }
 0x2b0   :  { %v4713_v37 = vadd.f32 %v4712_v27, %v4699_v9 }
 0x2b6   :  { %v4740_v34 = vpop.f32.mrf.mxu0 }
 0x2b7   :  { %v4714_v15 = vpop.f32.mrf.mxu2  ;;  %v4754_v61 = vpop.f32.mrf.mxu1 }
 0x2b8   :  { %v4715_v50 = vadd.f32 %v4714_v15, %v4701_v55 }
 0x2b9   :  { %v4726_v47 = vpop.f32.mrf.mxu3 }
 0x2ba   :  { %v4727_v35 = vadd.f32 %v4726_v47, %v4713_v37 }
 0x2bc   :  { %v4741_v44 = vadd.f32 %v4740_v34, %v4727_v35 }
 0x2be   :  { %v4742_v12 = vpop.f32.mrf.mxu0  ;;  %v4755_v51 = vadd.f32 %v4754_v61, %v4741_v44 }
 0x2bf   :  { %v4756_v57 = vpop.f32.mrf.mxu1 }
 0x2c1   :  { %v4728_v52 = vpop.f32.mrf.mxu3 }
 0x2c2   :  { %v4729_v43 = vadd.f32 %v4728_v52, %v4715_v50 }
 0x2c4   :  { %v4743_v21 = vadd.f32 %v4742_v12, %v4729_v43 }
 0x2c6   :  { %v4757_v13 = vadd.f32 %v4756_v57, %v4743_v21 }
 0x2d1   :  { %v4768_v6 = vpop.f32.mrf.mxu2 }
 0x2d2   :  { %v4769_v59 = vadd.f32 %v4768_v6, %v4755_v51 }
 0x2d6   :  { %v4796_v19 = vpop.f32.mrf.mxu0 }
 0x2d7   :  { %v4810_v17 = vpop.f32.mrf.mxu1 }
 0x2d9   :  { %v4770_v48 = vpop.f32.mrf.mxu2 }
 0x2da   :  { %v4771_v10 = vadd.f32 %v4770_v48, %v4757_v13 }
 0x2dc   :  { %v4782_v46 = vpop.f32.mrf.mxu3 }
 0x2dd   :  { %v4783_v62 = vadd.f32 %v4782_v46, %v4769_v59 }
 0x2de   :  { %v4798_v1 = vpop.f32.mrf.mxu0 }
 0x2df   :  { %v4797_v4 = vadd.f32 %v4796_v19, %v4783_v62  ;;  %v4812_v58 = vpop.f32.mrf.mxu1 }
 0x2e1   :  { %v4811_v7 = vadd.f32 %v4810_v17, %v4797_v4 }
 0x2e4   :  { %v4784_v33 = vpop.f32.mrf.mxu3 }
 0x2e5   :  { %v4785_v2 = vadd.f32 %v4784_v33, %v4771_v10 }
 0x2e7   :  { %v4799_v8 = vadd.f32 %v4798_v1, %v4785_v2 }
 0x2e9   :  { %v4813_v54 = vadd.f32 %v4812_v58, %v4799_v8 }
 0x2f1   :  { %v4824_v25 = vpop.f32.mrf.mxu2 }
 0x2f2   :  { %v4825_v20 = vadd.f32 %v4824_v25, %v4811_v7 }
 0x2f9   :  { %v4826_v31 = vpop.f32.mrf.mxu2 }
 0x2fa   :  { %v4838_v18 = vpop.f32.mrf.mxu3  ;;  %v4827_v53 = vadd.f32 %v4826_v31, %v4813_v54 }
 0x2fb   :  { %v4839_v29 = vadd.f32 %v4838_v18, %v4825_v20 }
 0x2fd   :  { %v4844_v28 = vpack.c.bf16 %v4839_v29, %v4839_v29 }
 0x2ff   :  { %4848 = vst [vmem:[#allocation11 + $0x8] sm:$0xf] %v4844_v28 }
 0x302   :  { %v4840_v63 = vpop.f32.mrf.mxu3 }
 0x303   :  { %v4841_v5 = vadd.f32 %v4840_v63, %v4827_v53 }
 0x305   :  { %v4846_v39 = vpack.c.bf16 %v4841_v5, %v4841_v5 }
 0x307   :  { %4850 = vst [vmem:[#allocation11 + $0x14] sm:$0xf] %v4846_v39 }
 0x308   :  { %4863 = dma.vmem_to_hbm [thread:$0]  %s4856_s4, 384, %s4858_s21, [#allocation4], %s7934_s1, %s7934_s1, %s7935_s8  }
 0x309   :  { %7928 = dma.done.wait [#allocation4], 384  }
 0x30a   :  { %7929 = vsyncadd [#allocation4], 4294966912 }
 0x30b   :  { %4868 = vsyncpa [#allocation3], 1 }
 0x30c   :  { %4869 = vsyncpa [#allocation6], 1 }
 0x30d   :  { %4870 = vsyncpa [#allocation9], 1 }
 0x30e   :  { %4871 = vsyncpa [#allocation4], 1 }

</bundles_post_ra>
